<compile_context>
chip_gen: v5e
topology: v5e:2x2
jax: 0.10.0
libtpu: 0.0.40
codegen_flags: <defaults>
</compile_context>

<pallas_src>
import functools

import jax
import jax.numpy as jnp
from jax.experimental import pallas as pl
from jax.experimental.pallas import tpu as pltpu

LANES = 128


def _round_up(x, m):
    return (x + m - 1) // m * m


# ------------------------- interpolation matrices ---------------------------


def _interp_matrix(out_size, in_size):
    """1-D bilinear interpolation matrix, PyTorch align_corners=False convention."""
    if out_size == in_size:
        return jnp.eye(out_size, dtype=jnp.float32)
    scale = in_size / out_size
    dst = jnp.arange(out_size, dtype=jnp.float32)
    src = jnp.maximum(scale * (dst + 0.5) - 0.5, 0.0)
    i0 = jnp.clip(jnp.floor(src).astype(jnp.int32), 0, in_size - 1)
    i1 = jnp.minimum(i0 + 1, in_size - 1)
    w1 = src - i0.astype(jnp.float32)
    w0 = 1.0 - w1
    rows = jnp.arange(out_size)
    m = jnp.zeros((out_size, in_size), jnp.float32)
    m = m.at[rows, i0].add(w0)
    m = m.at[rows, i1].add(w1)
    return m


# ----------------------------- Pallas kernels -------------------------------


def _upconv_stats_kernel(x1_ref, x2_ref, a_ref, w1_ref, w2_ref, g_ref, b_ref,
                         y_ref, aff_ref,
                         p1_scr, p2_scr, mean_scr, m2_scr,
                         *, H, W, C1, C2, k, dil, pad, eps, n_total, mxu_dtype):
    """Per-image: bilinear upsample + fused concat-conv + BN-statistics accumulation."""
    n = pl.program_id(0)

    # ---- bilinear upsample of x1: one MXU matmul with the interpolation matrix ----
    up = jnp.dot(a_ref[...], x1_ref[0], preferred_element_type=jnp.float32)   # (H*W, C1)

    # ---- zero-padded NHWC images in VMEM (in-kernel padding; nothing extra in HBM) ----
    p1_scr[...] = jnp.zeros_like(p1_scr)
    p2_scr[...] = jnp.zeros_like(p2_scr)
    p1_scr[pad:pad + H, pad:pad + W, :] = up.reshape(H, W, C1)
    p2_scr[pad:pad + H, pad:pad + W, :] = x2_ref[0].astype(jnp.float32)

    # ---- k*k conv: in-kernel patch extraction + small GEMMs, f32 accumulation ----
    cpad = y_ref.shape[-1]
    acc = jnp.zeros((H * W, cpad), jnp.float32)
    for kh in range(k):
        for kw in range(k):
            h0, w0 = kh * dil, kw * dil
            pa = p1_scr[h0:h0 + H, w0:w0 + W, :].reshape(H * W, C1).astype(mxu_dtype)
            pb = p2_scr[h0:h0 + H, w0:w0 + W, :].reshape(H * W, C2).astype(mxu_dtype)
            acc = acc + jnp.dot(pa, w1_ref[kh, kw], preferred_element_type=jnp.float32)
            acc = acc + jnp.dot(pb, w2_ref[kh, kw], preferred_element_type=jnp.float32)
    y_ref[...] = acc                                                  # lane-dense (M_img, 128)

    # ---- BatchNorm statistics: centered per-image moments, Chan/Welford merge ----
    cnt_b = float(H * W)
    m_tile = jnp.mean(acc, axis=0, keepdims=True)                     # (1, Cpad)
    m2_tile = jnp.sum((acc - m_tile) ** 2, axis=0, keepdims=True)     # (1, Cpad)

    @pl.when(n == 0)
    def _():
        mean_scr[...] = m_tile
        m2_scr[...] = m2_tile
        aff_ref[...] = jnp.zeros_like(aff_ref)

    @pl.when(n > 0)
    def _():
        cnt_a = n.astype(jnp.float32) * cnt_b
        tot = cnt_a + cnt_b
        delta = m_tile - mean_scr[...]
        mean_scr[...] = mean_scr[...] + delta * (cnt_b / tot)
        m2_scr[...] = m2_scr[...] + m2_tile + delta * delta * (cnt_a * cnt_b / tot)

    @pl.when(n == pl.num_programs(0) - 1)
    def _():
        var = jnp.maximum(m2_scr[...] / n_total, 0.0)                 # biased variance
        scale = g_ref[...] * jax.lax.rsqrt(var + eps)
        shift = b_ref[...] - mean_scr[...] * scale
        aff_ref[0:1, :] = scale
        aff_ref[1:2, :] = shift


def _bn_relu_kernel(y_ref, aff_ref, o_ref):
    """Phase 2: apply the BN affine (scale, shift) and ReLU, lane-dense tiles."""
    scale = aff_ref[0:1, :]
    shift = aff_ref[1:2, :]
    o_ref[...] = jnp.maximum(y_ref[...] * scale + shift, 0.0).astype(o_ref.dtype)


# -------------------------------- wrapper ------------------------------------


def up_conv_bn_relu(x1, x2, weight, gamma, beta, *, kernel_size=3, dilation=1,
                    up_flag=True, eps=1e-5, mxu_dtype=jnp.bfloat16):
    """Forward pass of UpConvBNReLU.  x1, x2: NCHW; weight: OIHW (Cout, C1+C2, k, k)."""
    n, c1, h1, w1_sp = x1.shape
    n2, c2, H, W = x2.shape
    assert n == n2
    cout = weight.shape[0]
    assert weight.shape[1] == c1 + c2
    k, dil = kernel_size, dilation
    pad = k // 2 if dil == 1 else dil
    assert 2 * pad == (k - 1) * dil, "same-size conv required"

    cpad = max(LANES, _round_up(cout, LANES))            # lane-dense padded Cout

    # --- constant parameter / layout prep (no data arithmetic) ---
    if up_flag:
        interp = jnp.kron(_interp_matrix(H, h1), _interp_matrix(W, w1_sp))   # (H*W, h1*w1)
    else:
        assert (h1, w1_sp) == (H, W)
        interp = jnp.eye(H * W, dtype=jnp.float32)
    # TODO(synk): for large spatial sizes replace the dense kron interpolation matrix with
    # the separable row/col form (two matmuls) to keep the matrix O(H*Hi + W*Wi).

    w_hwio = jnp.transpose(weight, (2, 3, 1, 0))                             # (k, k, Cin, Cout)
    w_hwio = jnp.pad(w_hwio, ((0, 0), (0, 0), (0, 0), (0, cpad - cout)))
    w_a = w_hwio[:, :, :c1, :].astype(mxu_dtype)                             # x1-channel taps
    w_b = w_hwio[:, :, c1:, :].astype(mxu_dtype)                             # x2-channel taps
    g = jnp.pad(gamma.astype(jnp.float32), (0, cpad - cout)).reshape(1, cpad)
    b = jnp.pad(beta.astype(jnp.float32), (0, cpad - cout)).reshape(1, cpad)

    # NCHW -> NHWC (layout glue only; a fused NHWC caller could skip these transposes)
    x1_nhwc = jnp.transpose(x1, (0, 2, 3, 1)).reshape(n, h1 * w1_sp, c1)
    x2_nhwc = jnp.transpose(x2, (0, 2, 3, 1))

    M = n * H * W
    m_img = H * W
    hp, wp = H + 2 * pad, W + 2 * pad

    conv_kernel = functools.partial(
        _upconv_stats_kernel, H=H, W=W, C1=c1, C2=c2, k=k, dil=dil, pad=pad,
        eps=eps, n_total=float(M), mxu_dtype=mxu_dtype)

    # ---- phase 1: fused upsample + concat-conv + BN statistics (grid over images) ----
    y, affine = pl.pallas_call(
        conv_kernel,
        grid=(n,),
        in_specs=[
            pl.BlockSpec((1, h1 * w1_sp, c1), lambda i: (i, 0, 0)),       # x1 (flattened HW)
            pl.BlockSpec((1, H, W, c2), lambda i: (i, 0, 0, 0)),          # x2
            pl.BlockSpec((H * W, h1 * w1_sp), lambda i: (0, 0)),          # interp matrix
            pl.BlockSpec((k, k, c1, cpad), lambda i: (0, 0, 0, 0)),       # weights (x1 chans)
            pl.BlockSpec((k, k, c2, cpad), lambda i: (0, 0, 0, 0)),       # weights (x2 chans)
            pl.BlockSpec((1, cpad), lambda i: (0, 0)),                    # gamma
            pl.BlockSpec((1, cpad), lambda i: (0, 0)),                    # beta
        ],
        out_specs=(
            pl.BlockSpec((m_img, cpad), lambda i: (i, 0)),                # conv activations
            pl.BlockSpec((2, cpad), lambda i: (0, 0)),                    # (scale, shift)
        ),
        out_shape=(
            jax.ShapeDtypeStruct((M, cpad), jnp.float32),
            jax.ShapeDtypeStruct((2, cpad), jnp.float32),
        ),
        scratch_shapes=[
            pltpu.VMEM((hp, wp, c1), jnp.float32),                        # padded x1_up image
            pltpu.VMEM((hp, wp, c2), jnp.float32),                        # padded x2 image
            pltpu.VMEM((1, cpad), jnp.float32),                           # running mean
            pltpu.VMEM((1, cpad), jnp.float32),                           # running centered M2
        ],
        compiler_params=pltpu.CompilerParams(
            dimension_semantics=("arbitrary",),        # cross-step BN-stat reduction
            vmem_limit_bytes=32 * 1024 * 1024),
    )(x1_nhwc, x2_nhwc, interp, w_a, w_b, g, b)

    # ---- phase 2: apply BN affine + ReLU, tiled over M, lane-dense output ----
    mt = m_img   # production: pick the largest M tile that fits double-buffered VMEM
    out2d = pl.pallas_call(
        _bn_relu_kernel,
        grid=(M // mt,),
        in_specs=[
            pl.BlockSpec((mt, cpad), lambda i: (i, 0)),
            pl.BlockSpec((2, cpad), lambda i: (0, 0)),
        ],
        out_specs=pl.BlockSpec((mt, cpad), lambda i: (i, 0)),
        out_shape=jax.ShapeDtypeStruct((M, cpad), x2.dtype),
        compiler_params=pltpu.CompilerParams(
            dimension_semantics=("parallel",),
            vmem_limit_bytes=32 * 1024 * 1024),
    )(y, affine)

    out = out2d[:, :cout].reshape(n, H, W, cout)
    return jnp.transpose(out, (0, 3, 1, 2))              # NHWC -> NCHW


# ------------------------------- reference -----------------------------------


def reference(x1, x2, weight, gamma, beta, *, kernel_size=3, dilation=1,
              up_flag=True, eps=1e-5):
    """Pure-JAX reference for UpConvBNReLU (training-mode BatchNorm)."""
    if up_flag:
        n, c1 = x1.shape[:2]
        x1 = jax.image.resize(x1, (n, c1) + x2.shape[2:], method="bilinear")
    x = jnp.concatenate([x1, x2], axis=1)
    pad = kernel_size // 2 if dilation == 1 else dilation
    y = jax.lax.conv_general_dilated(
        x, weight, (1, 1), ((pad, pad), (pad, pad)),
        rhs_dilation=(dilation, dilation),
        dimension_numbers=("NCHW", "OIHW", "NCHW"))
    mean = jnp.mean(y, axis=(0, 2, 3), keepdims=True)
    var = jnp.mean((y - mean) ** 2, axis=(0, 2, 3), keepdims=True)
    y = (y - mean) / jnp.sqrt(var + eps)
    y = y * gamma.reshape(1, -1, 1, 1) + beta.reshape(1, -1, 1, 1)
    return jnp.maximum(y, 0.0)


# ---------------------------------- main --------------------------------------

if __name__ == "__main__":
    key = jax.random.PRNGKey(0)
    k1, k2, kw = jax.random.split(key, 3)

    N = 2
    C1, C2, Cout, K = 4, 4, 8, 3
    H, W = 16, 16

    x1 = jax.random.normal(k1, (N, C1, H // 2, W // 2), dtype=jnp.float32)
    x2 = jax.random.normal(k2, (N, C2, H, W), dtype=jnp.float32)
    weight = jax.random.normal(kw, (Cout, C1 + C2, K, K), dtype=jnp.float32) * 0.1
    gamma = jnp.ones((Cout,), jnp.float32)    # PyTorch default BN init
    beta = jnp.zeros((Cout,), jnp.float32)

    y = up_conv_bn_relu(x1, x2, weight, gamma, beta,
                        kernel_size=K, dilation=1, up_flag=True)
    y = jax.block_until_ready(y)
    assert y.shape == (N, Cout, H, W), y.shape

    y_ref = reference(x1, x2, weight, gamma, beta, kernel_size=K, dilation=1, up_flag=True)
    err = float(jnp.max(jnp.abs(y - y_ref)))
    assert err < 5e-2, f"max abs diff vs reference: {err}"

    print("KERNEL_OK")
</pallas_src>

<mosaic_0001>
module attributes {stable_mosaic.version = 11 : i64} {
  func.func @_upconv_stats_kernel(%arg0: i32, %arg1: memref<1x64x4xf32, #tpu.memory_space<vmem>>, %arg2: memref<1x16x16x4xf32, #tpu.memory_space<vmem>>, %arg3: memref<256x64xf32, #tpu.memory_space<vmem>>, %arg4: memref<3x3x4x128xbf16, #tpu.memory_space<vmem>>, %arg5: memref<3x3x4x128xbf16, #tpu.memory_space<vmem>>, %arg6: memref<1x128xf32, #tpu.memory_space<vmem>>, %arg7: memref<1x128xf32, #tpu.memory_space<vmem>>, %arg8: memref<256x128xf32, #tpu.memory_space<vmem>>, %arg9: memref<2x128xf32, #tpu.memory_space<vmem>>, %arg10: memref<18x18x4xf32, #tpu.memory_space<vmem>>, %arg11: memref<18x18x4xf32, #tpu.memory_space<vmem>>, %arg12: memref<1x128xf32, #tpu.memory_space<vmem>>, %arg13: memref<1x128xf32, #tpu.memory_space<vmem>>) attributes {dimension_semantics = [#tpu.dimension_semantics<arbitrary>], iteration_bounds = array<i64: 2>, scalar_prefetch = 0 : i64, scratch_operands = 4 : i64, tpu.core_type = #tpu.core_type<tc>, window_params = [{transform_indices = @transform_0, window_bounds = array<i64: 1, 64, 4>}, {transform_indices = @transform_1, window_bounds = array<i64: 1, 16, 16, 4>}, {pipeline_mode = #tpu.pipeline_mode<synchronous>, transform_indices = @transform_2, window_bounds = array<i64: 256, 64>}, {pipeline_mode = #tpu.pipeline_mode<synchronous>, transform_indices = @transform_3, window_bounds = array<i64: 3, 3, 4, 128>}, {pipeline_mode = #tpu.pipeline_mode<synchronous>, transform_indices = @transform_4, window_bounds = array<i64: 3, 3, 4, 128>}, {pipeline_mode = #tpu.pipeline_mode<synchronous>, transform_indices = @transform_5, window_bounds = array<i64: 1, 128>}, {pipeline_mode = #tpu.pipeline_mode<synchronous>, transform_indices = @transform_6, window_bounds = array<i64: 1, 128>}, {transform_indices = @transform_7, window_bounds = array<i64: 256, 128>}, {pipeline_mode = #tpu.pipeline_mode<synchronous>, transform_indices = @transform_8, window_bounds = array<i64: 2, 128>}]} {
    %c0 = arith.constant 0 : index
    %c0_0 = arith.constant 0 : index
    %0 = vector.load %arg3[%c0, %c0_0] : memref<256x64xf32, #tpu.memory_space<vmem>>, vector<256x64xf32>
    %c0_1 = arith.constant 0 : index
    %c0_2 = arith.constant 0 : index
    %c0_3 = arith.constant 0 : index
    %1 = vector.load %arg1[%c0_1, %c0_2, %c0_3] : memref<1x64x4xf32, #tpu.memory_space<vmem>>, vector<1x64x4xf32>
    %2 = vector.shape_cast %1 : vector<1x64x4xf32> to vector<64x4xf32>
    %cst = arith.constant dense<0.000000e+00> : vector<256x4xf32>
    %3 = tpu.matmul %0, %2, %cst {dimension_numbers = #tpu.dot_dimension_numbers<[1], [0], [0], [1], [0, 0, 1, 1], [], []>} : vector<256x64xf32>, vector<64x4xf32>, vector<256x4xf32> -> vector<256x4xf32>
    %cst_4 = arith.constant 0.000000e+00 : f32
    %4 = vector.broadcast %cst_4 : f32 to vector<18x18x4xf32>
    %c0_5 = arith.constant 0 : index
    %c0_6 = arith.constant 0 : index
    %c0_7 = arith.constant 0 : index
    %5 = vector.load %arg10[%c0_5, %c0_6, %c0_7] : memref<18x18x4xf32, #tpu.memory_space<vmem>>, vector<18x18x4xf32>
    tpu.vector_store %arg10[%c0_5, %c0_6, %c0_7], %4 {strides = array<i32>} : memref<18x18x4xf32, #tpu.memory_space<vmem>>, vector<18x18x4xf32>,
    %cst_8 = arith.constant 0.000000e+00 : f32
    %6 = vector.broadcast %cst_8 : f32 to vector<18x18x4xf32>
    %c0_9 = arith.constant 0 : index
    %c0_10 = arith.constant 0 : index
    %c0_11 = arith.constant 0 : index
    %7 = vector.load %arg11[%c0_9, %c0_10, %c0_11] : memref<18x18x4xf32, #tpu.memory_space<vmem>>, vector<18x18x4xf32>
    tpu.vector_store %arg11[%c0_9, %c0_10, %c0_11], %6 {strides = array<i32>} : memref<18x18x4xf32, #tpu.memory_space<vmem>>, vector<18x18x4xf32>,
    %8 = vector.shape_cast %3 : vector<256x4xf32> to vector<16x16x4xf32>
    %c1 = arith.constant 1 : index
    %c1_12 = arith.constant 1 : index
    %c0_13 = arith.constant 0 : index
    %9 = vector.load %arg10[%c1, %c1_12, %c0_13] : memref<18x18x4xf32, #tpu.memory_space<vmem>>, vector<16x16x4xf32>
    tpu.vector_store %arg10[%c1, %c1_12, %c0_13], %8 {strides = array<i32>} : memref<18x18x4xf32, #tpu.memory_space<vmem>>, vector<16x16x4xf32>,
    %c0_14 = arith.constant 0 : index
    %c0_15 = arith.constant 0 : index
    %c0_16 = arith.constant 0 : index
    %c0_17 = arith.constant 0 : index
    %10 = vector.load %arg2[%c0_14, %c0_15, %c0_16, %c0_17] : memref<1x16x16x4xf32, #tpu.memory_space<vmem>>, vector<1x16x16x4xf32>
    %11 = vector.shape_cast %10 : vector<1x16x16x4xf32> to vector<16x16x4xf32>
    %c1_18 = arith.constant 1 : index
    %c1_19 = arith.constant 1 : index
    %c0_20 = arith.constant 0 : index
    %12 = vector.load %arg11[%c1_18, %c1_19, %c0_20] : memref<18x18x4xf32, #tpu.memory_space<vmem>>, vector<16x16x4xf32>
    tpu.vector_store %arg11[%c1_18, %c1_19, %c0_20], %11 {strides = array<i32>} : memref<18x18x4xf32, #tpu.memory_space<vmem>>, vector<16x16x4xf32>,
    %cst_21 = arith.constant 0.000000e+00 : f32
    %13 = vector.broadcast %cst_21 : f32 to vector<256x128xf32>
    %c0_22 = arith.constant 0 : index
    %c0_23 = arith.constant 0 : index
    %c0_24 = arith.constant 0 : index
    %14 = vector.load %arg10[%c0_22, %c0_23, %c0_24] : memref<18x18x4xf32, #tpu.memory_space<vmem>>, vector<16x16x4xf32>
    %15 = vector.shape_cast %14 : vector<16x16x4xf32> to vector<256x4xf32>
    %16 = arith.truncf %15 : vector<256x4xf32> to vector<256x4xbf16>
    %c0_25 = arith.constant 0 : index
    %c0_26 = arith.constant 0 : index
    %c0_27 = arith.constant 0 : index
    %17 = vector.load %arg11[%c0_25, %c0_26, %c0_27] : memref<18x18x4xf32, #tpu.memory_space<vmem>>, vector<16x16x4xf32>
    %18 = vector.shape_cast %17 : vector<16x16x4xf32> to vector<256x4xf32>
    %19 = arith.truncf %18 : vector<256x4xf32> to vector<256x4xbf16>
    %c0_28 = arith.constant 0 : index
    %c0_29 = arith.constant 0 : index
    %c0_30 = arith.constant 0 : index
    %c0_31 = arith.constant 0 : index
    %20 = vector.load %arg4[%c0_28, %c0_29, %c0_30, %c0_31] : memref<3x3x4x128xbf16, #tpu.memory_space<vmem>>, vector<1x1x4x128xbf16>
    %21 = vector.shape_cast %20 : vector<1x1x4x128xbf16> to vector<4x128xbf16>
    %cst_32 = arith.constant dense<0.000000e+00> : vector<256x128xf32>
    %22 = tpu.matmul %16, %21, %cst_32 {dimension_numbers = #tpu.dot_dimension_numbers<[1], [0], [0], [1], [0, 0, 1, 1], [], []>} : vector<256x4xbf16>, vector<4x128xbf16>, vector<256x128xf32> -> vector<256x128xf32>
    %23 = arith.addf %13, %22 : vector<256x128xf32>
    %c0_33 = arith.constant 0 : index
    %c0_34 = arith.constant 0 : index
    %c0_35 = arith.constant 0 : index
    %c0_36 = arith.constant 0 : index
    %24 = vector.load %arg5[%c0_33, %c0_34, %c0_35, %c0_36] : memref<3x3x4x128xbf16, #tpu.memory_space<vmem>>, vector<1x1x4x128xbf16>
    %25 = vector.shape_cast %24 : vector<1x1x4x128xbf16> to vector<4x128xbf16>
    %cst_37 = arith.constant dense<0.000000e+00> : vector<256x128xf32>
    %26 = tpu.matmul %19, %25, %cst_37 {dimension_numbers = #tpu.dot_dimension_numbers<[1], [0], [0], [1], [0, 0, 1, 1], [], []>} : vector<256x4xbf16>, vector<4x128xbf16>, vector<256x128xf32> -> vector<256x128xf32>
    %27 = arith.addf %23, %26 : vector<256x128xf32>
    %c0_38 = arith.constant 0 : index
    %c1_39 = arith.constant 1 : index
    %c0_40 = arith.constant 0 : index
    %28 = vector.load %arg10[%c0_38, %c1_39, %c0_40] : memref<18x18x4xf32, #tpu.memory_space<vmem>>, vector<16x16x4xf32>
    %29 = vector.shape_cast %28 : vector<16x16x4xf32> to vector<256x4xf32>
    %30 = arith.truncf %29 : vector<256x4xf32> to vector<256x4xbf16>
    %c0_41 = arith.constant 0 : index
    %c1_42 = arith.constant 1 : index
    %c0_43 = arith.constant 0 : index
    %31 = vector.load %arg11[%c0_41, %c1_42, %c0_43] : memref<18x18x4xf32, #tpu.memory_space<vmem>>, vector<16x16x4xf32>
    %32 = vector.shape_cast %31 : vector<16x16x4xf32> to vector<256x4xf32>
    %33 = arith.truncf %32 : vector<256x4xf32> to vector<256x4xbf16>
    %c0_44 = arith.constant 0 : index
    %c1_45 = arith.constant 1 : index
    %c0_46 = arith.constant 0 : index
    %c0_47 = arith.constant 0 : index
    %34 = vector.load %arg4[%c0_44, %c1_45, %c0_46, %c0_47] : memref<3x3x4x128xbf16, #tpu.memory_space<vmem>>, vector<1x1x4x128xbf16>
    %35 = vector.shape_cast %34 : vector<1x1x4x128xbf16> to vector<4x128xbf16>
    %cst_48 = arith.constant dense<0.000000e+00> : vector<256x128xf32>
    %36 = tpu.matmul %30, %35, %cst_48 {dimension_numbers = #tpu.dot_dimension_numbers<[1], [0], [0], [1], [0, 0, 1, 1], [], []>} : vector<256x4xbf16>, vector<4x128xbf16>, vector<256x128xf32> -> vector<256x128xf32>
    %37 = arith.addf %27, %36 : vector<256x128xf32>
    %c0_49 = arith.constant 0 : index
    %c1_50 = arith.constant 1 : index
    %c0_51 = arith.constant 0 : index
    %c0_52 = arith.constant 0 : index
    %38 = vector.load %arg5[%c0_49, %c1_50, %c0_51, %c0_52] : memref<3x3x4x128xbf16, #tpu.memory_space<vmem>>, vector<1x1x4x128xbf16>
    %39 = vector.shape_cast %38 : vector<1x1x4x128xbf16> to vector<4x128xbf16>
    %cst_53 = arith.constant dense<0.000000e+00> : vector<256x128xf32>
    %40 = tpu.matmul %33, %39, %cst_53 {dimension_numbers = #tpu.dot_dimension_numbers<[1], [0], [0], [1], [0, 0, 1, 1], [], []>} : vector<256x4xbf16>, vector<4x128xbf16>, vector<256x128xf32> -> vector<256x128xf32>
    %41 = arith.addf %37, %40 : vector<256x128xf32>
    %c0_54 = arith.constant 0 : index
    %c2 = arith.constant 2 : index
    %c0_55 = arith.constant 0 : index
    %42 = vector.load %arg10[%c0_54, %c2, %c0_55] : memref<18x18x4xf32, #tpu.memory_space<vmem>>, vector<16x16x4xf32>
    %43 = vector.shape_cast %42 : vector<16x16x4xf32> to vector<256x4xf32>
    %44 = arith.truncf %43 : vector<256x4xf32> to vector<256x4xbf16>
    %c0_56 = arith.constant 0 : index
    %c2_57 = arith.constant 2 : index
    %c0_58 = arith.constant 0 : index
    %45 = vector.load %arg11[%c0_56, %c2_57, %c0_58] : memref<18x18x4xf32, #tpu.memory_space<vmem>>, vector<16x16x4xf32>
    %46 = vector.shape_cast %45 : vector<16x16x4xf32> to vector<256x4xf32>
    %47 = arith.truncf %46 : vector<256x4xf32> to vector<256x4xbf16>
    %c0_59 = arith.constant 0 : index
    %c2_60 = arith.constant 2 : index
    %c0_61 = arith.constant 0 : index
    %c0_62 = arith.constant 0 : index
    %48 = vector.load %arg4[%c0_59, %c2_60, %c0_61, %c0_62] : memref<3x3x4x128xbf16, #tpu.memory_space<vmem>>, vector<1x1x4x128xbf16>
    %49 = vector.shape_cast %48 : vector<1x1x4x128xbf16> to vector<4x128xbf16>
    %cst_63 = arith.constant dense<0.000000e+00> : vector<256x128xf32>
    %50 = tpu.matmul %44, %49, %cst_63 {dimension_numbers = #tpu.dot_dimension_numbers<[1], [0], [0], [1], [0, 0, 1, 1], [], []>} : vector<256x4xbf16>, vector<4x128xbf16>, vector<256x128xf32> -> vector<256x128xf32>
    %51 = arith.addf %41, %50 : vector<256x128xf32>
    %c0_64 = arith.constant 0 : index
    %c2_65 = arith.constant 2 : index
    %c0_66 = arith.constant 0 : index
    %c0_67 = arith.constant 0 : index
    %52 = vector.load %arg5[%c0_64, %c2_65, %c0_66, %c0_67] : memref<3x3x4x128xbf16, #tpu.memory_space<vmem>>, vector<1x1x4x128xbf16>
    %53 = vector.shape_cast %52 : vector<1x1x4x128xbf16> to vector<4x128xbf16>
    %cst_68 = arith.constant dense<0.000000e+00> : vector<256x128xf32>
    %54 = tpu.matmul %47, %53, %cst_68 {dimension_numbers = #tpu.dot_dimension_numbers<[1], [0], [0], [1], [0, 0, 1, 1], [], []>} : vector<256x4xbf16>, vector<4x128xbf16>, vector<256x128xf32> -> vector<256x128xf32>
    %55 = arith.addf %51, %54 : vector<256x128xf32>
    %c1_69 = arith.constant 1 : index
    %c0_70 = arith.constant 0 : index
    %c0_71 = arith.constant 0 : index
    %56 = vector.load %arg10[%c1_69, %c0_70, %c0_71] : memref<18x18x4xf32, #tpu.memory_space<vmem>>, vector<16x16x4xf32>
    %57 = vector.shape_cast %56 : vector<16x16x4xf32> to vector<256x4xf32>
    %58 = arith.truncf %57 : vector<256x4xf32> to vector<256x4xbf16>
    %c1_72 = arith.constant 1 : index
    %c0_73 = arith.constant 0 : index
    %c0_74 = arith.constant 0 : index
    %59 = vector.load %arg11[%c1_72, %c0_73, %c0_74] : memref<18x18x4xf32, #tpu.memory_space<vmem>>, vector<16x16x4xf32>
    %60 = vector.shape_cast %59 : vector<16x16x4xf32> to vector<256x4xf32>
    %61 = arith.truncf %60 : vector<256x4xf32> to vector<256x4xbf16>
    %c1_75 = arith.constant 1 : index
    %c0_76 = arith.constant 0 : index
    %c0_77 = arith.constant 0 : index
    %c0_78 = arith.constant 0 : index
    %62 = vector.load %arg4[%c1_75, %c0_76, %c0_77, %c0_78] : memref<3x3x4x128xbf16, #tpu.memory_space<vmem>>, vector<1x1x4x128xbf16>
    %63 = vector.shape_cast %62 : vector<1x1x4x128xbf16> to vector<4x128xbf16>
    %cst_79 = arith.constant dense<0.000000e+00> : vector<256x128xf32>
    %64 = tpu.matmul %58, %63, %cst_79 {dimension_numbers = #tpu.dot_dimension_numbers<[1], [0], [0], [1], [0, 0, 1, 1], [], []>} : vector<256x4xbf16>, vector<4x128xbf16>, vector<256x128xf32> -> vector<256x128xf32>
    %65 = arith.addf %55, %64 : vector<256x128xf32>
    %c1_80 = arith.constant 1 : index
    %c0_81 = arith.constant 0 : index
    %c0_82 = arith.constant 0 : index
    %c0_83 = arith.constant 0 : index
    %66 = vector.load %arg5[%c1_80, %c0_81, %c0_82, %c0_83] : memref<3x3x4x128xbf16, #tpu.memory_space<vmem>>, vector<1x1x4x128xbf16>
    %67 = vector.shape_cast %66 : vector<1x1x4x128xbf16> to vector<4x128xbf16>
    %cst_84 = arith.constant dense<0.000000e+00> : vector<256x128xf32>
    %68 = tpu.matmul %61, %67, %cst_84 {dimension_numbers = #tpu.dot_dimension_numbers<[1], [0], [0], [1], [0, 0, 1, 1], [], []>} : vector<256x4xbf16>, vector<4x128xbf16>, vector<256x128xf32> -> vector<256x128xf32>
    %69 = arith.addf %65, %68 : vector<256x128xf32>
    %c1_85 = arith.constant 1 : index
    %c1_86 = arith.constant 1 : index
    %c0_87 = arith.constant 0 : index
    %70 = vector.load %arg10[%c1_85, %c1_86, %c0_87] : memref<18x18x4xf32, #tpu.memory_space<vmem>>, vector<16x16x4xf32>
    %71 = vector.shape_cast %70 : vector<16x16x4xf32> to vector<256x4xf32>
    %72 = arith.truncf %71 : vector<256x4xf32> to vector<256x4xbf16>
    %c1_88 = arith.constant 1 : index
    %c1_89 = arith.constant 1 : index
    %c0_90 = arith.constant 0 : index
    %73 = vector.load %arg11[%c1_88, %c1_89, %c0_90] : memref<18x18x4xf32, #tpu.memory_space<vmem>>, vector<16x16x4xf32>
    %74 = vector.shape_cast %73 : vector<16x16x4xf32> to vector<256x4xf32>
    %75 = arith.truncf %74 : vector<256x4xf32> to vector<256x4xbf16>
    %c1_91 = arith.constant 1 : index
    %c1_92 = arith.constant 1 : index
    %c0_93 = arith.constant 0 : index
    %c0_94 = arith.constant 0 : index
    %76 = vector.load %arg4[%c1_91, %c1_92, %c0_93, %c0_94] : memref<3x3x4x128xbf16, #tpu.memory_space<vmem>>, vector<1x1x4x128xbf16>
    %77 = vector.shape_cast %76 : vector<1x1x4x128xbf16> to vector<4x128xbf16>
    %cst_95 = arith.constant dense<0.000000e+00> : vector<256x128xf32>
    %78 = tpu.matmul %72, %77, %cst_95 {dimension_numbers = #tpu.dot_dimension_numbers<[1], [0], [0], [1], [0, 0, 1, 1], [], []>} : vector<256x4xbf16>, vector<4x128xbf16>, vector<256x128xf32> -> vector<256x128xf32>
    %79 = arith.addf %69, %78 : vector<256x128xf32>
    %c1_96 = arith.constant 1 : index
    %c1_97 = arith.constant 1 : index
    %c0_98 = arith.constant 0 : index
    %c0_99 = arith.constant 0 : index
    %80 = vector.load %arg5[%c1_96, %c1_97, %c0_98, %c0_99] : memref<3x3x4x128xbf16, #tpu.memory_space<vmem>>, vector<1x1x4x128xbf16>
    %81 = vector.shape_cast %80 : vector<1x1x4x128xbf16> to vector<4x128xbf16>
    %cst_100 = arith.constant dense<0.000000e+00> : vector<256x128xf32>
    %82 = tpu.matmul %75, %81, %cst_100 {dimension_numbers = #tpu.dot_dimension_numbers<[1], [0], [0], [1], [0, 0, 1, 1], [], []>} : vector<256x4xbf16>, vector<4x128xbf16>, vector<256x128xf32> -> vector<256x128xf32>
    %83 = arith.addf %79, %82 : vector<256x128xf32>
    %c1_101 = arith.constant 1 : index
    %c2_102 = arith.constant 2 : index
    %c0_103 = arith.constant 0 : index
    %84 = vector.load %arg10[%c1_101, %c2_102, %c0_103] : memref<18x18x4xf32, #tpu.memory_space<vmem>>, vector<16x16x4xf32>
    %85 = vector.shape_cast %84 : vector<16x16x4xf32> to vector<256x4xf32>
    %86 = arith.truncf %85 : vector<256x4xf32> to vector<256x4xbf16>
    %c1_104 = arith.constant 1 : index
    %c2_105 = arith.constant 2 : index
    %c0_106 = arith.constant 0 : index
    %87 = vector.load %arg11[%c1_104, %c2_105, %c0_106] : memref<18x18x4xf32, #tpu.memory_space<vmem>>, vector<16x16x4xf32>
    %88 = vector.shape_cast %87 : vector<16x16x4xf32> to vector<256x4xf32>
    %89 = arith.truncf %88 : vector<256x4xf32> to vector<256x4xbf16>
    %c1_107 = arith.constant 1 : index
    %c2_108 = arith.constant 2 : index
    %c0_109 = arith.constant 0 : index
    %c0_110 = arith.constant 0 : index
    %90 = vector.load %arg4[%c1_107, %c2_108, %c0_109, %c0_110] : memref<3x3x4x128xbf16, #tpu.memory_space<vmem>>, vector<1x1x4x128xbf16>
    %91 = vector.shape_cast %90 : vector<1x1x4x128xbf16> to vector<4x128xbf16>
    %cst_111 = arith.constant dense<0.000000e+00> : vector<256x128xf32>
    %92 = tpu.matmul %86, %91, %cst_111 {dimension_numbers = #tpu.dot_dimension_numbers<[1], [0], [0], [1], [0, 0, 1, 1], [], []>} : vector<256x4xbf16>, vector<4x128xbf16>, vector<256x128xf32> -> vector<256x128xf32>
    %93 = arith.addf %83, %92 : vector<256x128xf32>
    %c1_112 = arith.constant 1 : index
    %c2_113 = arith.constant 2 : index
    %c0_114 = arith.constant 0 : index
    %c0_115 = arith.constant 0 : index
    %94 = vector.load %arg5[%c1_112, %c2_113, %c0_114, %c0_115] : memref<3x3x4x128xbf16, #tpu.memory_space<vmem>>, vector<1x1x4x128xbf16>
    %95 = vector.shape_cast %94 : vector<1x1x4x128xbf16> to vector<4x128xbf16>
    %cst_116 = arith.constant dense<0.000000e+00> : vector<256x128xf32>
    %96 = tpu.matmul %89, %95, %cst_116 {dimension_numbers = #tpu.dot_dimension_numbers<[1], [0], [0], [1], [0, 0, 1, 1], [], []>} : vector<256x4xbf16>, vector<4x128xbf16>, vector<256x128xf32> -> vector<256x128xf32>
    %97 = arith.addf %93, %96 : vector<256x128xf32>
    %c2_117 = arith.constant 2 : index
    %c0_118 = arith.constant 0 : index
    %c0_119 = arith.constant 0 : index
    %98 = vector.load %arg10[%c2_117, %c0_118, %c0_119] : memref<18x18x4xf32, #tpu.memory_space<vmem>>, vector<16x16x4xf32>
    %99 = vector.shape_cast %98 : vector<16x16x4xf32> to vector<256x4xf32>
    %100 = arith.truncf %99 : vector<256x4xf32> to vector<256x4xbf16>
    %c2_120 = arith.constant 2 : index
    %c0_121 = arith.constant 0 : index
    %c0_122 = arith.constant 0 : index
    %101 = vector.load %arg11[%c2_120, %c0_121, %c0_122] : memref<18x18x4xf32, #tpu.memory_space<vmem>>, vector<16x16x4xf32>
    %102 = vector.shape_cast %101 : vector<16x16x4xf32> to vector<256x4xf32>
    %103 = arith.truncf %102 : vector<256x4xf32> to vector<256x4xbf16>
    %c2_123 = arith.constant 2 : index
    %c0_124 = arith.constant 0 : index
    %c0_125 = arith.constant 0 : index
    %c0_126 = arith.constant 0 : index
    %104 = vector.load %arg4[%c2_123, %c0_124, %c0_125, %c0_126] : memref<3x3x4x128xbf16, #tpu.memory_space<vmem>>, vector<1x1x4x128xbf16>
    %105 = vector.shape_cast %104 : vector<1x1x4x128xbf16> to vector<4x128xbf16>
    %cst_127 = arith.constant dense<0.000000e+00> : vector<256x128xf32>
    %106 = tpu.matmul %100, %105, %cst_127 {dimension_numbers = #tpu.dot_dimension_numbers<[1], [0], [0], [1], [0, 0, 1, 1], [], []>} : vector<256x4xbf16>, vector<4x128xbf16>, vector<256x128xf32> -> vector<256x128xf32>
    %107 = arith.addf %97, %106 : vector<256x128xf32>
    %c2_128 = arith.constant 2 : index
    %c0_129 = arith.constant 0 : index
    %c0_130 = arith.constant 0 : index
    %c0_131 = arith.constant 0 : index
    %108 = vector.load %arg5[%c2_128, %c0_129, %c0_130, %c0_131] : memref<3x3x4x128xbf16, #tpu.memory_space<vmem>>, vector<1x1x4x128xbf16>
    %109 = vector.shape_cast %108 : vector<1x1x4x128xbf16> to vector<4x128xbf16>
    %cst_132 = arith.constant dense<0.000000e+00> : vector<256x128xf32>
    %110 = tpu.matmul %103, %109, %cst_132 {dimension_numbers = #tpu.dot_dimension_numbers<[1], [0], [0], [1], [0, 0, 1, 1], [], []>} : vector<256x4xbf16>, vector<4x128xbf16>, vector<256x128xf32> -> vector<256x128xf32>
    %111 = arith.addf %107, %110 : vector<256x128xf32>
    %c2_133 = arith.constant 2 : index
    %c1_134 = arith.constant 1 : index
    %c0_135 = arith.constant 0 : index
    %112 = vector.load %arg10[%c2_133, %c1_134, %c0_135] : memref<18x18x4xf32, #tpu.memory_space<vmem>>, vector<16x16x4xf32>
    %113 = vector.shape_cast %112 : vector<16x16x4xf32> to vector<256x4xf32>
    %114 = arith.truncf %113 : vector<256x4xf32> to vector<256x4xbf16>
    %c2_136 = arith.constant 2 : index
    %c1_137 = arith.constant 1 : index
    %c0_138 = arith.constant 0 : index
    %115 = vector.load %arg11[%c2_136, %c1_137, %c0_138] : memref<18x18x4xf32, #tpu.memory_space<vmem>>, vector<16x16x4xf32>
    %116 = vector.shape_cast %115 : vector<16x16x4xf32> to vector<256x4xf32>
    %117 = arith.truncf %116 : vector<256x4xf32> to vector<256x4xbf16>
    %c2_139 = arith.constant 2 : index
    %c1_140 = arith.constant 1 : index
    %c0_141 = arith.constant 0 : index
    %c0_142 = arith.constant 0 : index
    %118 = vector.load %arg4[%c2_139, %c1_140, %c0_141, %c0_142] : memref<3x3x4x128xbf16, #tpu.memory_space<vmem>>, vector<1x1x4x128xbf16>
    %119 = vector.shape_cast %118 : vector<1x1x4x128xbf16> to vector<4x128xbf16>
    %cst_143 = arith.constant dense<0.000000e+00> : vector<256x128xf32>
    %120 = tpu.matmul %114, %119, %cst_143 {dimension_numbers = #tpu.dot_dimension_numbers<[1], [0], [0], [1], [0, 0, 1, 1], [], []>} : vector<256x4xbf16>, vector<4x128xbf16>, vector<256x128xf32> -> vector<256x128xf32>
    %121 = arith.addf %111, %120 : vector<256x128xf32>
    %c2_144 = arith.constant 2 : index
    %c1_145 = arith.constant 1 : index
    %c0_146 = arith.constant 0 : index
    %c0_147 = arith.constant 0 : index
    %122 = vector.load %arg5[%c2_144, %c1_145, %c0_146, %c0_147] : memref<3x3x4x128xbf16, #tpu.memory_space<vmem>>, vector<1x1x4x128xbf16>
    %123 = vector.shape_cast %122 : vector<1x1x4x128xbf16> to vector<4x128xbf16>
    %cst_148 = arith.constant dense<0.000000e+00> : vector<256x128xf32>
    %124 = tpu.matmul %117, %123, %cst_148 {dimension_numbers = #tpu.dot_dimension_numbers<[1], [0], [0], [1], [0, 0, 1, 1], [], []>} : vector<256x4xbf16>, vector<4x128xbf16>, vector<256x128xf32> -> vector<256x128xf32>
    %125 = arith.addf %121, %124 : vector<256x128xf32>
    %c2_149 = arith.constant 2 : index
    %c2_150 = arith.constant 2 : index
    %c0_151 = arith.constant 0 : index
    %126 = vector.load %arg10[%c2_149, %c2_150, %c0_151] : memref<18x18x4xf32, #tpu.memory_space<vmem>>, vector<16x16x4xf32>
    %127 = vector.shape_cast %126 : vector<16x16x4xf32> to vector<256x4xf32>
    %128 = arith.truncf %127 : vector<256x4xf32> to vector<256x4xbf16>
    %c2_152 = arith.constant 2 : index
    %c2_153 = arith.constant 2 : index
    %c0_154 = arith.constant 0 : index
    %129 = vector.load %arg11[%c2_152, %c2_153, %c0_154] : memref<18x18x4xf32, #tpu.memory_space<vmem>>, vector<16x16x4xf32>
    %130 = vector.shape_cast %129 : vector<16x16x4xf32> to vector<256x4xf32>
    %131 = arith.truncf %130 : vector<256x4xf32> to vector<256x4xbf16>
    %c2_155 = arith.constant 2 : index
    %c2_156 = arith.constant 2 : index
    %c0_157 = arith.constant 0 : index
    %c0_158 = arith.constant 0 : index
    %132 = vector.load %arg4[%c2_155, %c2_156, %c0_157, %c0_158] : memref<3x3x4x128xbf16, #tpu.memory_space<vmem>>, vector<1x1x4x128xbf16>
    %133 = vector.shape_cast %132 : vector<1x1x4x128xbf16> to vector<4x128xbf16>
    %cst_159 = arith.constant dense<0.000000e+00> : vector<256x128xf32>
    %134 = tpu.matmul %128, %133, %cst_159 {dimension_numbers = #tpu.dot_dimension_numbers<[1], [0], [0], [1], [0, 0, 1, 1], [], []>} : vector<256x4xbf16>, vector<4x128xbf16>, vector<256x128xf32> -> vector<256x128xf32>
    %135 = arith.addf %125, %134 : vector<256x128xf32>
    %c2_160 = arith.constant 2 : index
    %c2_161 = arith.constant 2 : index
    %c0_162 = arith.constant 0 : index
    %c0_163 = arith.constant 0 : index
    %136 = vector.load %arg5[%c2_160, %c2_161, %c0_162, %c0_163] : memref<3x3x4x128xbf16, #tpu.memory_space<vmem>>, vector<1x1x4x128xbf16>
    %137 = vector.shape_cast %136 : vector<1x1x4x128xbf16> to vector<4x128xbf16>
    %cst_164 = arith.constant dense<0.000000e+00> : vector<256x128xf32>
    %138 = tpu.matmul %131, %137, %cst_164 {dimension_numbers = #tpu.dot_dimension_numbers<[1], [0], [0], [1], [0, 0, 1, 1], [], []>} : vector<256x4xbf16>, vector<4x128xbf16>, vector<256x128xf32> -> vector<256x128xf32>
    %139 = arith.addf %135, %138 : vector<256x128xf32>
    %c0_165 = arith.constant 0 : index
    %c0_166 = arith.constant 0 : index
    %140 = vector.load %arg8[%c0_165, %c0_166] : memref<256x128xf32, #tpu.memory_space<vmem>>, vector<256x128xf32>
    tpu.vector_store %arg8[%c0_165, %c0_166], %139 {strides = array<i32>} : memref<256x128xf32, #tpu.memory_space<vmem>>, vector<256x128xf32>,
    %cst_167 = arith.constant dense<0.000000e+00> : vector<128xf32>
    %141 = vector.multi_reduction <add>, %139, %cst_167 [0] : vector<256x128xf32> to vector<128xf32>
    %142 = vector.shape_cast %141 : vector<128xf32> to vector<1x128xf32>
    %cst_168 = arith.constant 2.560000e+02 : f32
    %143 = vector.broadcast %cst_168 : f32 to vector<1x128xf32>
    %144 = arith.divf %142, %143 : vector<1x128xf32>
    %145 = vector.broadcast %144 : vector<1x128xf32> to vector<256x128xf32>
    %146 = arith.subf %139, %145 : vector<256x128xf32>
    %147 = arith.mulf %146, %146 : vector<256x128xf32>
    %cst_169 = arith.constant dense<0.000000e+00> : vector<128xf32>
    %148 = vector.multi_reduction <add>, %147, %cst_169 [0] : vector<256x128xf32> to vector<128xf32>
    %149 = vector.shape_cast %148 : vector<128xf32> to vector<1x128xf32>
    %c0_i32 = arith.constant 0 : i32
    %150 = arith.cmpi eq, %arg0, %c0_i32 : i32
    %151 = arith.extui %150 : i1 to i32
    %c0_i32_170 = arith.constant 0 : i32
    %152 = arith.cmpi ne, %151, %c0_i32_170 : i32
    scf.if %152 {
      %c0_174 = arith.constant 0 : index
      %c0_175 = arith.constant 0 : index
      %159 = vector.load %arg12[%c0_174, %c0_175] : memref<1x128xf32, #tpu.memory_space<vmem>>, vector<1x128xf32>
      tpu.vector_store %arg12[%c0_174, %c0_175], %144 {strides = array<i32>} : memref<1x128xf32, #tpu.memory_space<vmem>>, vector<1x128xf32>,
      %c0_176 = arith.constant 0 : index
      %c0_177 = arith.constant 0 : index
      %160 = vector.load %arg13[%c0_176, %c0_177] : memref<1x128xf32, #tpu.memory_space<vmem>>, vector<1x128xf32>
      tpu.vector_store %arg13[%c0_176, %c0_177], %149 {strides = array<i32>} : memref<1x128xf32, #tpu.memory_space<vmem>>, vector<1x128xf32>,
      %cst_178 = arith.constant 0.000000e+00 : f32
      %161 = vector.broadcast %cst_178 : f32 to vector<2x128xf32>
      %c0_179 = arith.constant 0 : index
      %c0_180 = arith.constant 0 : index
      %162 = vector.load %arg9[%c0_179, %c0_180] : memref<2x128xf32, #tpu.memory_space<vmem>>, vector<2x128xf32>
      tpu.vector_store %arg9[%c0_179, %c0_180], %161 {strides = array<i32>} : memref<2x128xf32, #tpu.memory_space<vmem>>, vector<2x128xf32>,
    } else {
    }
    %c0_i32_171 = arith.constant 0 : i32
    %153 = arith.cmpi sgt, %arg0, %c0_i32_171 : i32
    %154 = arith.extui %153 : i1 to i32
    %c0_i32_172 = arith.constant 0 : i32
    %155 = arith.cmpi ne, %154, %c0_i32_172 : i32
    scf.if %155 {
      %159 = arith.sitofp %arg0 : i32 to f32
      %cst_174 = arith.constant 2.560000e+02 : f32
      %160 = arith.mulf %159, %cst_174 : f32
      %cst_175 = arith.constant 2.560000e+02 : f32
      %161 = arith.addf %160, %cst_175 : f32
      %c0_176 = arith.constant 0 : index
      %c0_177 = arith.constant 0 : index
      %162 = vector.load %arg12[%c0_176, %c0_177] : memref<1x128xf32, #tpu.memory_space<vmem>>, vector<1x128xf32>
      %163 = arith.subf %144, %162 : vector<1x128xf32>
      %c0_178 = arith.constant 0 : index
      %c0_179 = arith.constant 0 : index
      %164 = vector.load %arg12[%c0_178, %c0_179] : memref<1x128xf32, #tpu.memory_space<vmem>>, vector<1x128xf32>
      %cst_180 = arith.constant 2.560000e+02 : f32
      %165 = arith.divf %cst_180, %161 : f32
      %166 = vector.broadcast %165 : f32 to vector<1x128xf32>
      %167 = arith.mulf %163, %166 : vector<1x128xf32>
      %168 = arith.addf %164, %167 : vector<1x128xf32>
      %c0_181 = arith.constant 0 : index
      %c0_182 = arith.constant 0 : index
      %169 = vector.load %arg12[%c0_181, %c0_182] : memref<1x128xf32, #tpu.memory_space<vmem>>, vector<1x128xf32>
      tpu.vector_store %arg12[%c0_181, %c0_182], %168 {strides = array<i32>} : memref<1x128xf32, #tpu.memory_space<vmem>>, vector<1x128xf32>,
      %c0_183 = arith.constant 0 : index
      %c0_184 = arith.constant 0 : index
      %170 = vector.load %arg13[%c0_183, %c0_184] : memref<1x128xf32, #tpu.memory_space<vmem>>, vector<1x128xf32>
      %171 = arith.addf %170, %149 : vector<1x128xf32>
      %172 = arith.mulf %163, %163 : vector<1x128xf32>
      %cst_185 = arith.constant 2.560000e+02 : f32
      %173 = arith.mulf %160, %cst_185 : f32
      %174 = arith.divf %173, %161 : f32
      %175 = vector.broadcast %174 : f32 to vector<1x128xf32>
      %176 = arith.mulf %172, %175 : vector<1x128xf32>
      %177 = arith.addf %171, %176 : vector<1x128xf32>
      %c0_186 = arith.constant 0 : index
      %c0_187 = arith.constant 0 : index
      %178 = vector.load %arg13[%c0_186, %c0_187] : memref<1x128xf32, #tpu.memory_space<vmem>>, vector<1x128xf32>
      tpu.vector_store %arg13[%c0_186, %c0_187], %177 {strides = array<i32>} : memref<1x128xf32, #tpu.memory_space<vmem>>, vector<1x128xf32>,
    } else {
    }
    %c1_i32 = arith.constant 1 : i32
    %156 = arith.cmpi eq, %arg0, %c1_i32 : i32
    %157 = arith.extui %156 : i1 to i32
    %c0_i32_173 = arith.constant 0 : i32
    %158 = arith.cmpi ne, %157, %c0_i32_173 : i32
    scf.if %158 {
      %c0_174 = arith.constant 0 : index
      %c0_175 = arith.constant 0 : index
      %159 = vector.load %arg13[%c0_174, %c0_175] : memref<1x128xf32, #tpu.memory_space<vmem>>, vector<1x128xf32>
      %cst_176 = arith.constant 5.120000e+02 : f32
      %160 = vector.broadcast %cst_176 : f32 to vector<1x128xf32>
      %161 = arith.divf %159, %160 : vector<1x128xf32>
      %cst_177 = arith.constant 0.000000e+00 : f32
      %162 = vector.broadcast %cst_177 : f32 to vector<1x128xf32>
      %163 = arith.maximumf %161, %162 : vector<1x128xf32>
      %c0_178 = arith.constant 0 : index
      %c0_179 = arith.constant 0 : index
      %164 = vector.load %arg6[%c0_178, %c0_179] : memref<1x128xf32, #tpu.memory_space<vmem>>, vector<1x128xf32>
      %cst_180 = arith.constant 9.99999974E-6 : f32
      %165 = vector.broadcast %cst_180 : f32 to vector<1x128xf32>
      %166 = arith.addf %163, %165 : vector<1x128xf32>
      %167 = math.rsqrt %166 : vector<1x128xf32>
      %168 = arith.mulf %164, %167 : vector<1x128xf32>
      %c0_181 = arith.constant 0 : index
      %c0_182 = arith.constant 0 : index
      %169 = vector.load %arg7[%c0_181, %c0_182] : memref<1x128xf32, #tpu.memory_space<vmem>>, vector<1x128xf32>
      %c0_183 = arith.constant 0 : index
      %c0_184 = arith.constant 0 : index
      %170 = vector.load %arg12[%c0_183, %c0_184] : memref<1x128xf32, #tpu.memory_space<vmem>>, vector<1x128xf32>
      %171 = arith.mulf %170, %168 : vector<1x128xf32>
      %172 = arith.subf %169, %171 : vector<1x128xf32>
      %c0_185 = arith.constant 0 : index
      %c0_186 = arith.constant 0 : index
      %173 = vector.load %arg9[%c0_185, %c0_186] : memref<2x128xf32, #tpu.memory_space<vmem>>, vector<1x128xf32>
      tpu.vector_store %arg9[%c0_185, %c0_186], %168 {strides = array<i32>} : memref<2x128xf32, #tpu.memory_space<vmem>>, vector<1x128xf32>,
      %c1_187 = arith.constant 1 : index
      %c0_188 = arith.constant 0 : index
      %174 = vector.load %arg9[%c1_187, %c0_188] : memref<2x128xf32, #tpu.memory_space<vmem>>, vector<1x128xf32>
      tpu.vector_store %arg9[%c1_187, %c0_188], %172 {strides = array<i32>} : memref<2x128xf32, #tpu.memory_space<vmem>>, vector<1x128xf32>,
    } else {
    }
    return
  }
  func.func @transform_0(%arg0: i32) -> (i32, i32, i32) {
    %c0_i32 = arith.constant 0 : i32
    %c0_i32_0 = arith.constant 0 : i32
    %c0_i32_1 = arith.constant 0 : i32
    return %arg0, %c0_i32, %c0_i32_0 : i32, i32, i32
  }
  func.func @transform_1(%arg0: i32) -> (i32, i32, i32, i32) {
    %c0_i32 = arith.constant 0 : i32
    %c0_i32_0 = arith.constant 0 : i32
    %c0_i32_1 = arith.constant 0 : i32
    %c0_i32_2 = arith.constant 0 : i32
    return %arg0, %c0_i32, %c0_i32_0, %c0_i32_1 : i32, i32, i32, i32
  }
  func.func @transform_2(%arg0: i32) -> (i32, i32) {
    %c0_i32 = arith.constant 0 : i32
    %c0_i32_0 = arith.constant 0 : i32
    %c0_i32_1 = arith.constant 0 : i32
    return %c0_i32, %c0_i32_0 : i32, i32
  }
  func.func @transform_3(%arg0: i32) -> (i32, i32, i32, i32) {
    %c0_i32 = arith.constant 0 : i32
    %c0_i32_0 = arith.constant 0 : i32
    %c0_i32_1 = arith.constant 0 : i32
    %c0_i32_2 = arith.constant 0 : i32
    %c0_i32_3 = arith.constant 0 : i32
    return %c0_i32, %c0_i32_0, %c0_i32_1, %c0_i32_2 : i32, i32, i32, i32
  }
  func.func @transform_4(%arg0: i32) -> (i32, i32, i32, i32) {
    %c0_i32 = arith.constant 0 : i32
    %c0_i32_0 = arith.constant 0 : i32
    %c0_i32_1 = arith.constant 0 : i32
    %c0_i32_2 = arith.constant 0 : i32
    %c0_i32_3 = arith.constant 0 : i32
    return %c0_i32, %c0_i32_0, %c0_i32_1, %c0_i32_2 : i32, i32, i32, i32
  }
  func.func @transform_5(%arg0: i32) -> (i32, i32) {
    %c0_i32 = arith.constant 0 : i32
    %c0_i32_0 = arith.constant 0 : i32
    %c0_i32_1 = arith.constant 0 : i32
    return %c0_i32, %c0_i32_0 : i32, i32
  }
  func.func @transform_6(%arg0: i32) -> (i32, i32) {
    %c0_i32 = arith.constant 0 : i32
    %c0_i32_0 = arith.constant 0 : i32
    %c0_i32_1 = arith.constant 0 : i32
    return %c0_i32, %c0_i32_0 : i32, i32
  }
  func.func @transform_7(%arg0: i32) -> (i32, i32) {
    %c0_i32 = arith.constant 0 : i32
    %c0_i32_0 = arith.constant 0 : i32
    return %arg0, %c0_i32 : i32, i32
  }
  func.func @transform_8(%arg0: i32) -> (i32, i32) {
    %c0_i32 = arith.constant 0 : i32
    %c0_i32_0 = arith.constant 0 : i32
    %c0_i32_1 = arith.constant 0 : i32
    return %c0_i32, %c0_i32_0 : i32, i32
  }
}

</mosaic_0001>

<bundles_post_ra>
// kernel: tpu_custom_call.1
= control target key start
LH: loop header
LB: loop body
LE: loop exit
PB: predicated region body
PF: predicated region fallthrough
CT: control target
= control target key end

     0   :  { %s7716_s0 = inlined_call_operand.vmem [shape: f32[2,64,4], index: 0, kind: input, shape index: {}]   ;;  %s7717_s1 = inlined_call_operand.vmem [shape: f32[2,16,16,4], index: 1, kind: input, shape index: {}]   ;;  %s7718_s2 = inlined_call_operand.vmem [shape: f32[256,64], index: 2, kind: input, shape index: {}]   ;;  %s7719_s3 = inlined_call_operand.vmem [shape: bf16[3,3,4,128], index: 3, kind: input, shape index: {}]   ;;  %s7720_s4 = inlined_call_operand.vmem [shape: bf16[3,3,4,128], index: 4, kind: input, shape index: {}]   ;;  %s7721_s5 = inlined_call_operand.vmem [shape: f32[1,128], index: 5, kind: input, shape index: {}]   ;;  %s7722_s6 = inlined_call_operand.vmem [shape: f32[1,128], index: 6, kind: input, shape index: {}]   ;;  %s7723_s7 = inlined_call_operand.hbm [shape: f32[512,128], index: 7, kind: output, shape index: {0}]   ;;  %s7724_s8 = inlined_call_operand.hbm [shape: f32[2,128], index: 8, kind: output, shape index: {1}]  }
   0x1   :  { %7725 = sst [smem:[#allocation12_spill]] %s7716_s0 }
   0x2   :  { %7726 = sst [smem:[#allocation13_spill]] %s7717_s1 }
   0x3   :  { %14 = vsyncpa [#allocation7], 0 }
   0x4   :  { %16 = vsyncpa [#allocation7 + $0x1], 0 }
   0x5   :  { %17 = vsyncpa [#allocation9], 0  ;;  %s5674_s27 = smov 0   ;;  %s5676_s28 = smov 0  }
   0x6   :  { %s5678_s29 = smov 0   ;;  %s5680_s30 = smov 0  }
   0x7 LB: > { %s5695_s9 = sadd.s32 4294967295, %s5620_s30   ;;  %s5103_s10 = sadd.s32 4294967294, %s5620_s30   ;;  %s5620_s30 = sphi %s5680_s30, %s7734_s30   ;;  %s5616_s29 = sphi %s5678_s29, %s7733_s29   ;;  %s5612_s28 = sphi %s5676_s28, %s7732_s28   ;;  %s5608_s27 = sphi %s5674_s27, %s7731_s27  }
   0x8   : > { %s5699_s11 = sadd.s32 1, %s5620_s30   ;;  %s187_s12 = sadd.s32 1, %s5616_s29 }
   0x9   : > { %s184_s13 = ssub.s32 %s5620_s30, %s5699_s11  ;;  %p197_p0 = scmp.ne.s32.totalorder %s5616_s29, %s5612_s28 }
   0xa   : > { %p185_p1 = scmp.eq.s32.totalorder %s184_s13, 0  ;;  %p198_p2 = scmp.eq.s32.totalorder %s5695_s9, 1 }
   0xb   : > { %p203_p3 = scmp.ne.s32.totalorder %s5612_s28, %s5608_s27  ;;  %p204_p4 = scmp.eq.s32.totalorder %s5103_s10, 1 }
   0xc   : > { %s5710_s14 = scalar_select %p185_p1, %s5616_s29, %s187_s12  }
   0xd   : > { %p5714_p5 = por %p198_p2, %p197_p0  ;;  %p5718_p6 = por %p204_p4, %p203_p3 }
   0xe   : > { %p5106_p7 = scmp.ge.s32.totalorder %s5620_s30, 1  ;;  %p274_p8 = scmp.lt.s32.totalorder %s5620_s30, 3 }
  0x10   : > { %p275_p9 = pnand %p5106_p7, %p274_p8 }
  0x11   : > { %p313_p10 = scmp.lt.s32.totalorder (!%p275_p9), %s5695_s9, 1  ;;  %s7729_s0 = sld [smem:[#allocation12_spill]] (!%p275_p9) }
  0x12   : > { %278 = sbr.rel (%p275_p9) target bundleno = 1890 (0x762), region = 48  ;;  %s7730_s1 = sld [smem:[#allocation13_spill]] (!%p275_p9) }
  0x13   : > { %s308_s13 = sand.u32 (!%p275_p9), 1, %s5612_s28   ;;  %p5448_p11 = scmp.ne.s32.totalorder (!%p275_p9), %s5695_s9, 0 }
  0x14   : > { %s5107_s17 = sshll.u32 (!%p275_p9), %s308_s13, 8 }
  0x15   : > { %s7364_s18 = scalar_lea.vmem (!%p275_p9), [#allocation6], %s5107_s17 }
  0x17   : > { %v880_v0 = vld [vmem:[%s7720_s4] sm:$0x3]  ;;  %vm929_vm0 = vcmask 1041408   ;;  %vm575_vm1 = vcmask 31744   ;;  %vm578_vm2 = vcmask 25600   ;;  %v5622_v2 = vmov 0.0  }
  0x18   : > { %v5729_v1 = vsel %vm929_vm0, %v880_v0, 0  ;;  %640 = vst.msk [vmem:[#allocation3 + $0x48] sm:$0xff] %vm575_vm1, %v5622_v2  ;;  %s314_s19 = scalar_select %p313_p10, %s5695_s9, 1  ;;  %v325_v16 = vld [vmem:[%s7718_s2] sm:$0xff]  ;;  %vm365_vm3 = vcmask 523264   ;;  %v326_v17 = vld [vmem:[%s7718_s2 + $0x8] sm:$0xff] }
  0x19   : > { %5461 = vmatpush.bf16.msra.mxu1 %v5729_v1  ;;  %641 = vst.msk [vmem:[#allocation3 + $0x50] sm:$0xff] %vm575_vm1, %v5622_v2  ;;  %v327_v18 = vld [vmem:[%s7718_s2 + $0x10] sm:$0xff]  ;;  %v328_v19 = vld [vmem:[%s7718_s2 + $0x18] sm:$0xff]  ;;  %v329_v20 = vld [vmem:[%s7718_s2 + $0x20] sm:$0xff] }
  0x1a   : > { %642 = vst.msk [vmem:[#allocation3 + $0x58] sm:$0x3] %vm578_vm2, %v5622_v2  ;;  %s5458_s20 = sshll.u32 %s314_s19, 6  ;;  %s5459_s21 = sshll.u32 %s314_s19, 8  ;;  %v330_v25 = vld [vmem:[%s7718_s2 + $0x28] sm:$0xff]  ;;  %v331_v31 = vld [vmem:[%s7718_s2 + $0x30] sm:$0xff] }
  0x1b   : > { %576 = vst.msk [vmem:[#allocation2] sm:$0xff] %vm575_vm1, %v5622_v2  ;;  %s5744_s24 = scalar_lea.vmem %s7729_s0, %s5458_s20  ;;  %s5749_s10 = scalar_lea.vmem %s7730_s1, %s5459_s21  ;;  %v332_v34 = vld [vmem:[%s7718_s2 + $0x38] sm:$0xff]  ;;  %v333_v38 = vld [vmem:[%s7718_s2 + $0x40] sm:$0xff]  ;;  %v334_v41 = vld [vmem:[%s7718_s2 + $0x48] sm:$0xff] }
  0x1c   : > { %577 = vst.msk [vmem:[#allocation2 + $0x8] sm:$0xff] %vm575_vm1, %v5622_v2  ;;  %v364_v3 = vld [vmem:[%s5744_s24 + $0x38] sm:$0xff]  ;;  %v363_v4 = vld [vmem:[%s5744_s24 + $0x30] sm:$0xff]  ;;  %v362_v5 = vld [vmem:[%s5744_s24 + $0x28] sm:$0xff] }
  0x1d   : > { %579 = vst.msk [vmem:[#allocation2 + $0x10] sm:$0x3] %vm578_vm2, %v5622_v2  ;;  %470 = vmatpush.msra.mxu0 %v364_v3  ;;  %v722_v6 = vld [vmem:[%s5749_s10 + $0x20] sm:$0xff]  ;;  %v723_v7 = vld [vmem:[%s5749_s10 + $0x28] sm:$0xff]  ;;  %v360_v9 = vld [vmem:[%s5744_s24 + $0x18] sm:$0xff] }
  0x1e   : > { %580 = vst.msk [vmem:[#allocation2 + $0x18] sm:$0xff] %vm575_vm1, %v5622_v2  ;;  %v361_v8 = vld [vmem:[%s5744_s24 + $0x20] sm:$0xff]  ;;  %v359_v10 = vld [vmem:[%s5744_s24 + $0x10] sm:$0xff]  ;;  %v358_v14 = vld [vmem:[%s5744_s24 + $0x8] sm:$0xff] }
  0x1f   : > { %581 = vst.msk [vmem:[#allocation2 + $0x20] sm:$0xff] %vm575_vm1, %v5622_v2  ;;  %471 = vmatpush.msra.mxu0 %v363_v4  ;;  %v357_v15 = vld [vmem:[%s5744_s24] sm:$0xff]  ;;  %v724_v21 = vld [vmem:[%s5749_s10 + $0x30] sm:$0xff]  ;;  %v725_v22 = vld [vmem:[%s5749_s10 + $0x38] sm:$0xff] }
  0x20   : > { %755 = vst.msk [vmem:[#allocation3 + $0x49] sm:$0xff] %vm575_vm1, %v722_v6  ;;  %v726_v23 = vld [vmem:[%s5749_s10 + $0x40] sm:$0xff]  ;;  %v727_v24 = vld [vmem:[%s5749_s10 + $0x48] sm:$0xff]  ;;  %v728_v26 = vld [vmem:[%s5749_s10 + $0x50] sm:$0xff] }
  0x21   : > { %756 = vst.msk [vmem:[#allocation3 + $0x51] sm:$0xff] %vm575_vm1, %v723_v7  ;;  %472 = vmatpush.msra.mxu0 %v362_v5  ;;  %v729_v27 = vld [vmem:[%s5749_s10 + $0x58] sm:$0xff]  ;;  %v730_v32 = vld [vmem:[%s5749_s10 + $0x60] sm:$0xff]  ;;  %v731_v33 = vld [vmem:[%s5749_s10 + $0x68] sm:$0xff] }
  0x22   : > { %582 = vst.msk [vmem:[#allocation2 + $0x28] sm:$0x3] %vm578_vm2, %v5622_v2  ;;  %v732_v39 = vld [vmem:[%s5749_s10 + $0x70] sm:$0xff]  ;;  %v733_v40 = vld [vmem:[%s5749_s10 + $0x78] sm:$0xff]  ;;  %v734_v46 = vld [vmem:[%s5749_s10 + $0x80] sm:$0xff] }
  0x23   : > { %583 = vst.msk [vmem:[#allocation2 + $0x30] sm:$0xff] %vm575_vm1, %v5622_v2  ;;  %473 = vmatpush.msra.mxu0 %v361_v8  ;;  %v335_v45 = vld [vmem:[%s7718_s2 + $0x50] sm:$0xff]  ;;  %v735_v47 = vld [vmem:[%s5749_s10 + $0x88] sm:$0xff]  ;;  %v336_v48 = vld [vmem:[%s7718_s2 + $0x58] sm:$0xff] }
  0x24   : > { %584 = vst.msk [vmem:[#allocation2 + $0x38] sm:$0xff] %vm575_vm1, %v5622_v2  ;;  %v337_v52 = vld [vmem:[%s7718_s2 + $0x60] sm:$0xff]  ;;  %v736_v53 = vld [vmem:[%s5749_s10 + $0x90] sm:$0xff]  ;;  %v737_v54 = vld [vmem:[%s5749_s10 + $0x98] sm:$0xff] }
  0x25   : > { %585 = vst.msk [vmem:[#allocation2 + $0x40] sm:$0x3] %vm578_vm2, %v5622_v2  ;;  %474 = vmatpush.msra.mxu0 %v360_v9  ;;  %v338_v55 = vld [vmem:[%s7718_s2 + $0x68] sm:$0xff]  ;;  %v339_v59 = vld [vmem:[%s7718_s2 + $0x70] sm:$0xff]  ;;  %v738_v60 = vld [vmem:[%s5749_s10 + $0xa0] sm:$0xff] }
  0x26   : > { %586 = vst.msk [vmem:[#allocation2 + $0x48] sm:$0xff] %vm575_vm1, %v5622_v2  ;;  %v739_v61 = vld [vmem:[%s5749_s10 + $0xa8] sm:$0xff]  ;;  %v340_v62 = vld [vmem:[%s7718_s2 + $0x78] sm:$0xff]  ;;  %v341_v3 = vld [vmem:[%s7718_s2 + $0x80] sm:$0xff] }
  0x27   : > { %v837_v11 = vld [vmem:[#allocation3 + $0x48] sm:$0xff]  ;;  %587 = vst.msk [vmem:[#allocation2 + $0x50] sm:$0xff] %vm575_vm1, %v5622_v2  ;;  %475 = vmatpush.msra.mxu0 %v359_v10  ;;  %v740_v4 = vld [vmem:[%s5749_s10 + $0xb0] sm:$0xff]  ;;  %v342_v6 = vld [vmem:[%s7718_s2 + $0x88] sm:$0xff] }
  0x28   : > { %v838_v12 = vld [vmem:[#allocation3 + $0x50] sm:$0xff]  ;;  %588 = vst.msk [vmem:[#allocation2 + $0x58] sm:$0x3] %vm578_vm2, %v5622_v2  ;;  %v741_v5 = vld [vmem:[%s5749_s10 + $0xb8] sm:$0xff] }
  0x29   : > { %v866_v13 = vpack.c.bf16 %v838_v12, %v837_v11  ;;  %589 = vst.msk [vmem:[#allocation2 + $0x60] sm:$0xff] %vm575_vm1, %v5622_v2  ;;  %476 = vmatpush.msra.mxu0 %v358_v14  ;;  %v343_v12 = vld [vmem:[%s7718_s2 + $0x90] sm:$0xff]  ;;  %v743_v14 = vld [vmem:[%s5749_s10 + $0xc8] sm:$0xff] }
  0x2a   : > { %590 = vst.msk [vmem:[#allocation2 + $0x68] sm:$0xff] %vm575_vm1, %v5622_v2 }
  0x2b   : > { %5147 = vmatmul.msk.bf16.vlgmr.msra.gmra.mxu1 %vm575_vm1, %v866_v13  ;;  %591 = vst.msk [vmem:[#allocation2 + $0x70] sm:$0x3] %vm578_vm2, %v5622_v2  ;;  %477 = vmatpush.msra.mxu0 %v357_v15  ;;  %v742_v13 = vld [vmem:[%s5749_s10 + $0xc0] sm:$0xff]  ;;  %v344_v15 = vld [vmem:[%s7718_s2 + $0x98] sm:$0xff] }
  0x2c   : > { %592 = vst.msk [vmem:[#allocation2 + $0x78] sm:$0xff] %vm575_vm1, %v5622_v2  ;;  %5112 = vmatmul.msk.f32.vlgmr.msra.gmra.mxu0 %vm365_vm3, %v325_v16 }
  0x2d   : > { %593 = vst.msk [vmem:[#allocation2 + $0x80] sm:$0xff] %vm575_vm1, %v5622_v2  ;;  %940 = vmatpush.bf16.msrb.mxu0 %v5729_v1 }
  0x2e   : > { %594 = vst.msk [vmem:[#allocation2 + $0x88] sm:$0x3] %vm578_vm2, %v5622_v2 }
  0x2f   : > { %595 = vst.msk [vmem:[#allocation2 + $0x90] sm:$0xff] %vm575_vm1, %v5622_v2 }
  0x30   : > { %596 = vst.msk [vmem:[#allocation2 + $0x98] sm:$0xff] %vm575_vm1, %v5622_v2 }
  0x31   : > { %597 = vst.msk [vmem:[#allocation2 + $0xa0] sm:$0x3] %vm578_vm2, %v5622_v2 }
  0x32   : > { %598 = vst.msk [vmem:[#allocation2 + $0xa8] sm:$0xff] %vm575_vm1, %v5622_v2 }
  0x33   : > { %599 = vst.msk [vmem:[#allocation2 + $0xb0] sm:$0xff] %vm575_vm1, %v5622_v2 }
  0x34   : > { %600 = vst.msk [vmem:[#allocation2 + $0xb8] sm:$0x3] %vm578_vm2, %v5622_v2  ;;  %5113 = vmatmul.msk.f32.gmra.mxu0 %vm365_vm3, %v326_v17 }
  0x35   : > { %601 = vst.msk [vmem:[#allocation2 + $0xc0] sm:$0xff] %vm575_vm1, %v5622_v2 }
  0x36   : > { %602 = vst.msk [vmem:[#allocation2 + $0xc8] sm:$0xff] %vm575_vm1, %v5622_v2 }
  0x37   : > { %603 = vst.msk [vmem:[#allocation2 + $0xd0] sm:$0x3] %vm578_vm2, %v5622_v2 }
  0x38   : > { %604 = vst.msk [vmem:[#allocation2 + $0xd8] sm:$0xff] %vm575_vm1, %v5622_v2 }
  0x39   : > { %605 = vst.msk [vmem:[#allocation2 + $0xe0] sm:$0xff] %vm575_vm1, %v5622_v2 }
  0x3a   : > { %606 = vst.msk [vmem:[#allocation2 + $0xe8] sm:$0x3] %vm578_vm2, %v5622_v2 }
  0x3b   : > { %607 = vst.msk [vmem:[#allocation2 + $0xf0] sm:$0xff] %vm575_vm1, %v5622_v2 }
  0x3c   : > { %608 = vst.msk [vmem:[#allocation2 + $0xf8] sm:$0xff] %vm575_vm1, %v5622_v2  ;;  %5114 = vmatmul.msk.f32.gmra.mxu0 %vm365_vm3, %v327_v18 }
  0x3d   : > { %609 = vst.msk [vmem:[#allocation2 + $0x100] sm:$0x3] %vm578_vm2, %v5622_v2 }
  0x3e   : > { %610 = vst.msk [vmem:[#allocation2 + $0x108] sm:$0xff] %vm575_vm1, %v5622_v2 }
  0x3f   : > { %611 = vst.msk [vmem:[#allocation2 + $0x110] sm:$0xff] %vm575_vm1, %v5622_v2 }
  0x40   : > { %612 = vst.msk [vmem:[#allocation2 + $0x118] sm:$0x3] %vm578_vm2, %v5622_v2 }
  0x41   : > { %613 = vst.msk [vmem:[#allocation2 + $0x120] sm:$0xff] %vm575_vm1, %v5622_v2 }
  0x42   : > { %614 = vst.msk [vmem:[#allocation2 + $0x128] sm:$0xff] %vm575_vm1, %v5622_v2 }
  0x43   : > { %615 = vst.msk [vmem:[#allocation2 + $0x130] sm:$0x3] %vm578_vm2, %v5622_v2 }
  0x44   : > { %616 = vst.msk [vmem:[#allocation2 + $0x138] sm:$0xff] %vm575_vm1, %v5622_v2  ;;  %5115 = vmatmul.msk.f32.gmra.mxu0 %vm365_vm3, %v328_v19 }
  0x45   : > { %617 = vst.msk [vmem:[#allocation2 + $0x140] sm:$0xff] %vm575_vm1, %v5622_v2 }
  0x46   : > { %618 = vst.msk [vmem:[#allocation2 + $0x148] sm:$0x3] %vm578_vm2, %v5622_v2 }
  0x47   : > { %619 = vst.msk [vmem:[#allocation2 + $0x150] sm:$0xff] %vm575_vm1, %v5622_v2 }
  0x48   : > { %620 = vst.msk [vmem:[#allocation2 + $0x158] sm:$0xff] %vm575_vm1, %v5622_v2 }
  0x49   : > { %621 = vst.msk [vmem:[#allocation2 + $0x160] sm:$0x3] %vm578_vm2, %v5622_v2 }
  0x4a   : > { %622 = vst.msk [vmem:[#allocation2 + $0x168] sm:$0xff] %vm575_vm1, %v5622_v2 }
  0x4b   : > { %623 = vst.msk [vmem:[#allocation2 + $0x170] sm:$0xff] %vm575_vm1, %v5622_v2 }
  0x4c   : > { %624 = vst.msk [vmem:[#allocation2 + $0x178] sm:$0x3] %vm578_vm2, %v5622_v2  ;;  %5116 = vmatmul.msk.f32.gmra.mxu0 %vm365_vm3, %v329_v20 }
  0x4d   : > { %625 = vst.msk [vmem:[#allocation2 + $0x180] sm:$0xff] %vm575_vm1, %v5622_v2 }
  0x4e   : > { %626 = vst.msk [vmem:[#allocation2 + $0x188] sm:$0xff] %vm575_vm1, %v5622_v2 }
  0x4f   : > { %627 = vst.msk [vmem:[#allocation2 + $0x190] sm:$0x3] %vm578_vm2, %v5622_v2 }
  0x50   : > { %628 = vst.msk [vmem:[#allocation2 + $0x198] sm:$0xff] %vm575_vm1, %v5622_v2 }
  0x51   : > { %629 = vst.msk [vmem:[#allocation2 + $0x1a0] sm:$0xff] %vm575_vm1, %v5622_v2 }
  0x52   : > { %630 = vst.msk [vmem:[#allocation2 + $0x1a8] sm:$0x3] %vm578_vm2, %v5622_v2 }
  0x53   : > { %631 = vst.msk [vmem:[#allocation3] sm:$0xff] %vm575_vm1, %v5622_v2 }
  0x54   : > { %632 = vst.msk [vmem:[#allocation3 + $0x8] sm:$0xff] %vm575_vm1, %v5622_v2  ;;  %5117 = vmatmul.msk.f32.gmra.mxu0 %vm365_vm3, %v330_v25  ;;  %v745_v25 = vld [vmem:[%s5749_s10 + $0xd8] sm:$0xff] }
  0x55   : > { %633 = vst.msk [vmem:[#allocation3 + $0x10] sm:$0x3] %vm578_vm2, %v5622_v2 }
  0x56   : > { %634 = vst.msk [vmem:[#allocation3 + $0x18] sm:$0xff] %vm575_vm1, %v5622_v2 }
  0x57   : > { %635 = vst.msk [vmem:[#allocation3 + $0x20] sm:$0xff] %vm575_vm1, %v5622_v2 }
  0x58   : > { %636 = vst.msk [vmem:[#allocation3 + $0x28] sm:$0x3] %vm578_vm2, %v5622_v2 }
  0x59   : > { %637 = vst.msk [vmem:[#allocation3 + $0x30] sm:$0xff] %vm575_vm1, %v5622_v2 }
  0x5a   : > { %638 = vst.msk [vmem:[#allocation3 + $0x38] sm:$0xff] %vm575_vm1, %v5622_v2 }
  0x5b   : > { %639 = vst.msk [vmem:[#allocation3 + $0x40] sm:$0x3] %vm578_vm2, %v5622_v2 }
  0x5c   : > { %643 = vst.msk [vmem:[#allocation3 + $0x60] sm:$0xff] %vm575_vm1, %v5622_v2  ;;  %5118 = vmatmul.msk.f32.gmra.mxu0 %vm365_vm3, %v331_v31 }
  0x5d   : > { %644 = vst.msk [vmem:[#allocation3 + $0x68] sm:$0xff] %vm575_vm1, %v5622_v2 }
  0x5e   : > { %645 = vst.msk [vmem:[#allocation3 + $0x70] sm:$0x3] %vm578_vm2, %v5622_v2 }
  0x5f   : > { %646 = vst.msk [vmem:[#allocation3 + $0x78] sm:$0xff] %vm575_vm1, %v5622_v2 }
  0x60   : > { %647 = vst.msk [vmem:[#allocation3 + $0x80] sm:$0xff] %vm575_vm1, %v5622_v2 }
  0x61   : > { %648 = vst.msk [vmem:[#allocation3 + $0x88] sm:$0x3] %vm578_vm2, %v5622_v2 }
  0x62   : > { %649 = vst.msk [vmem:[#allocation3 + $0x90] sm:$0xff] %vm575_vm1, %v5622_v2 }
  0x63   : > { %650 = vst.msk [vmem:[#allocation3 + $0x98] sm:$0xff] %vm575_vm1, %v5622_v2 }
  0x64   : > { %651 = vst.msk [vmem:[#allocation3 + $0xa0] sm:$0x3] %vm578_vm2, %v5622_v2  ;;  %5119 = vmatmul.msk.f32.gmra.mxu0 %vm365_vm3, %v332_v34  ;;  %v5176_v34 = vld [vmem:[%s7719_s3 + $0x2] sm:$0x3] }
  0x65   : > { %652 = vst.msk [vmem:[#allocation3 + $0xa8] sm:$0xff] %vm575_vm1, %v5622_v2 }
  0x66   : > { %653 = vst.msk [vmem:[#allocation3 + $0xb0] sm:$0xff] %vm575_vm1, %v5622_v2 }
  0x67   : > { %654 = vst.msk [vmem:[#allocation3 + $0xb8] sm:$0x3] %vm578_vm2, %v5622_v2 }
  0x68   : > { %655 = vst.msk [vmem:[#allocation3 + $0xc0] sm:$0xff] %vm575_vm1, %v5622_v2 }
  0x69   : > { %656 = vst.msk [vmem:[#allocation3 + $0xc8] sm:$0xff] %vm575_vm1, %v5622_v2 }
  0x6a   : > { %657 = vst.msk [vmem:[#allocation3 + $0xd0] sm:$0x3] %vm578_vm2, %v5622_v2 }
  0x6b   : > { %658 = vst.msk [vmem:[#allocation3 + $0xd8] sm:$0xff] %vm575_vm1, %v5622_v2 }
  0x6c   : > { %659 = vst.msk [vmem:[#allocation3 + $0xe0] sm:$0xff] %vm575_vm1, %v5622_v2  ;;  %5120 = vmatmul.msk.f32.gmra.mxu0 %vm365_vm3, %v333_v38 }
  0x6d   : > { %660 = vst.msk [vmem:[#allocation3 + $0xe8] sm:$0x3] %vm578_vm2, %v5622_v2 }
  0x6e   : > { %661 = vst.msk [vmem:[#allocation3 + $0xf0] sm:$0xff] %vm575_vm1, %v5622_v2 }
  0x6f   : > { %662 = vst.msk [vmem:[#allocation3 + $0xf8] sm:$0xff] %vm575_vm1, %v5622_v2 }
  0x70   : > { %663 = vst.msk [vmem:[#allocation3 + $0x100] sm:$0x3] %vm578_vm2, %v5622_v2 }
  0x71   : > { %664 = vst.msk [vmem:[#allocation3 + $0x108] sm:$0xff] %vm575_vm1, %v5622_v2 }
  0x72   : > { %665 = vst.msk [vmem:[#allocation3 + $0x110] sm:$0xff] %vm575_vm1, %v5622_v2 }
  0x73   : > { %666 = vst.msk [vmem:[#allocation3 + $0x118] sm:$0x3] %vm578_vm2, %v5622_v2 }
  0x74   : > { %667 = vst.msk [vmem:[#allocation3 + $0x120] sm:$0xff] %vm575_vm1, %v5622_v2  ;;  %5121 = vmatmul.msk.f32.gmra.mxu0 %vm365_vm3, %v334_v41 }
  0x75   : > { %668 = vst.msk [vmem:[#allocation3 + $0x128] sm:$0xff] %vm575_vm1, %v5622_v2 }
  0x76   : > { %669 = vst.msk [vmem:[#allocation3 + $0x130] sm:$0x3] %vm578_vm2, %v5622_v2 }
  0x77   : > { %670 = vst.msk [vmem:[#allocation3 + $0x138] sm:$0xff] %vm575_vm1, %v5622_v2 }
  0x78   : > { %671 = vst.msk [vmem:[#allocation3 + $0x140] sm:$0xff] %vm575_vm1, %v5622_v2 }
  0x79   : > { %672 = vst.msk [vmem:[#allocation3 + $0x148] sm:$0x3] %vm578_vm2, %v5622_v2 }
  0x7a   : > { %673 = vst.msk [vmem:[#allocation3 + $0x150] sm:$0xff] %vm575_vm1, %v5622_v2 }
  0x7b   : > { %674 = vst.msk [vmem:[#allocation3 + $0x158] sm:$0xff] %vm575_vm1, %v5622_v2 }
  0x7c   : > { %675 = vst.msk [vmem:[#allocation3 + $0x160] sm:$0x3] %vm578_vm2, %v5622_v2  ;;  %5122 = vmatmul.msk.f32.gmra.mxu0 %vm365_vm3, %v335_v45  ;;  %v5210_v45 = vld [vmem:[%s7719_s3 + $0x4] sm:$0x3] }
  0x7d   : > { %676 = vst.msk [vmem:[#allocation3 + $0x168] sm:$0xff] %vm575_vm1, %v5622_v2 }
  0x7e   : > { %677 = vst.msk [vmem:[#allocation3 + $0x170] sm:$0xff] %vm575_vm1, %v5622_v2 }
  0x7f   : > { %678 = vst.msk [vmem:[#allocation3 + $0x178] sm:$0x3] %vm578_vm2, %v5622_v2 }
  0x80   : > { %679 = vst.msk [vmem:[#allocation3 + $0x180] sm:$0xff] %vm575_vm1, %v5622_v2 }
  0x81   : > { %680 = vst.msk [vmem:[#allocation3 + $0x188] sm:$0xff] %vm575_vm1, %v5622_v2 }
  0x82   : > { %681 = vst.msk [vmem:[#allocation3 + $0x190] sm:$0x3] %vm578_vm2, %v5622_v2 }
  0x83   : > { %682 = vst.msk [vmem:[#allocation3 + $0x198] sm:$0xff] %vm575_vm1, %v5622_v2 }
  0x84   : > { %683 = vst.msk [vmem:[#allocation3 + $0x1a0] sm:$0xff] %vm575_vm1, %v5622_v2  ;;  %5123 = vmatmul.msk.f32.gmra.mxu0 %vm365_vm3, %v336_v48  ;;  %v1753_v48 = vsel %vm929_vm0, %v5210_v45, 0 }
  0x85   : > { %684 = vst.msk [vmem:[#allocation3 + $0x1a8] sm:$0x3] %vm578_vm2, %v5622_v2 }
  0x86   : > { %757 = vst.msk [vmem:[#allocation3 + $0x61] sm:$0xff] %vm575_vm1, %v724_v21 }
  0x87   : > { %758 = vst.msk [vmem:[#allocation3 + $0x69] sm:$0xff] %vm575_vm1, %v725_v22  ;;  %v345_v22 = vld [vmem:[%s7718_s2 + $0xa0] sm:$0xff] }
  0x88   : > { %759 = vst.msk [vmem:[#allocation3 + $0x79] sm:$0xff] %vm575_vm1, %v726_v23 }
  0x89   : > { %760 = vst.msk [vmem:[#allocation3 + $0x81] sm:$0xff] %vm575_vm1, %v727_v24  ;;  %v744_v24 = vld [vmem:[%s5749_s10 + $0xd0] sm:$0xff] }
  0x8a   : > { %761 = vst.msk [vmem:[#allocation3 + $0x91] sm:$0xff] %vm575_vm1, %v728_v26  ;;  %v346_v26 = vld [vmem:[%s7718_s2 + $0xa8] sm:$0xff] }
  0x8b   : > { %762 = vst.msk [vmem:[#allocation3 + $0x99] sm:$0xff] %vm575_vm1, %v729_v27 }
  0x8c   : > { %763 = vst.msk [vmem:[#allocation3 + $0xa9] sm:$0xff] %vm575_vm1, %v730_v32  ;;  %5124 = vmatmul.msk.f32.gmra.mxu0 %vm365_vm3, %v337_v52  ;;  %v746_v52 = vld [vmem:[%s5749_s10 + $0xe0] sm:$0xff] }
  0x8d   : > { %v839_v28 = vld [vmem:[#allocation3 + $0x60] sm:$0xff]  ;;  %764 = vst.msk [vmem:[#allocation3 + $0xb1] sm:$0xff] %vm575_vm1, %v731_v33  ;;  %v879_v33 = vld [vmem:[%s7719_s3] sm:$0x3] }
  0x8e   : > { %v840_v29 = vld [vmem:[#allocation3 + $0x68] sm:$0xff]  ;;  %765 = vst.msk [vmem:[#allocation3 + $0xc1] sm:$0xff] %vm575_vm1, %v732_v39 }
  0x8f   : > { %v867_v30 = vpack.c.bf16 %v840_v29, %v839_v28  ;;  %v841_v35 = vld [vmem:[#allocation3 + $0x78] sm:$0xff]  ;;  %766 = vst.msk [vmem:[#allocation3 + $0xc9] sm:$0xff] %vm575_vm1, %v733_v40 }
  0x90   : > { %v842_v36 = vld [vmem:[#allocation3 + $0x80] sm:$0xff]  ;;  %767 = vst.msk [vmem:[#allocation3 + $0xd9] sm:$0xff] %vm575_vm1, %v734_v46  ;;  %v5227_v46 = vld [vmem:[%s7720_s4 + $0x4] sm:$0x3] }
  0x91   : > { %5148 = vmatmul.msk.bf16.gmra.mxu1 %vm575_vm1, %v867_v30  ;;  %v868_v37 = vpack.c.bf16 %v842_v36, %v841_v35  ;;  %v843_v42 = vld [vmem:[#allocation3 + $0x90] sm:$0xff]  ;;  %768 = vst.msk [vmem:[#allocation3 + $0xe1] sm:$0xff] %vm575_vm1, %v735_v47  ;;  %v347_v35 = vld [vmem:[%s7718_s2 + $0xb0] sm:$0xff]  ;;  %v1071_v36 = vsel %vm929_vm0, %v879_v33, 0 }
  0x92   : > { %v844_v43 = vld [vmem:[#allocation3 + $0x98] sm:$0xff]  ;;  %769 = vst.msk [vmem:[#allocation3 + $0xf1] sm:$0xff] %vm575_vm1, %v736_v53  ;;  %5462 = vmatpush.bf16.msra.mxu2 %v1071_v36  ;;  %1080 = vmatpush.bf16.msra.mxu0 %v1071_v36  ;;  %v5193_v47 = vld [vmem:[%s7720_s4 + $0x2] sm:$0x3] }
  0x93   : > { %v869_v44 = vpack.c.bf16 %v844_v43, %v843_v42  ;;  %v845_v49 = vld [vmem:[#allocation3 + $0xa8] sm:$0xff]  ;;  %770 = vst.msk [vmem:[#allocation3 + $0xf9] sm:$0xff] %vm575_vm1, %v737_v54  ;;  %v747_v53 = vld [vmem:[%s5749_s10 + $0xe8] sm:$0xff] }
  0x94   : > { %v846_v50 = vld [vmem:[#allocation3 + $0xb0] sm:$0xff]  ;;  %5125 = vmatmul.msk.f32.gmra.mxu0 %vm365_vm3, %v338_v55  ;;  %771 = vst.msk [vmem:[#allocation3 + $0x109] sm:$0xff] %vm575_vm1, %v738_v60 }
  0x95   : > { %v870_v51 = vpack.c.bf16 %v846_v50, %v845_v49  ;;  %v847_v56 = vld [vmem:[#allocation3 + $0xc0] sm:$0xff]  ;;  %772 = vst.msk [vmem:[#allocation3 + $0x111] sm:$0xff] %vm575_vm1, %v739_v61  ;;  %v1927_v49 = vsel %vm929_vm0, %v5227_v46, 0  ;;  %v1483_v50 = vsel %vm929_vm0, %v5193_v47, 0  ;;  %v349_v60 = vld [vmem:[%s7718_s2 + $0xc0] sm:$0xff] }
  0x96   : > { %v848_v57 = vld [vmem:[#allocation3 + $0xc8] sm:$0xff]  ;;  %773 = vst.msk [vmem:[#allocation3 + $0x121] sm:$0xff] %vm575_vm1, %v740_v4  ;;  %1762 = vmatpush.bf16.msrb.mxu2 %v1753_v48  ;;  %1492 = vmatpush.bf16.msrb.mxu1 %v1483_v50  ;;  %v350_v4 = vld [vmem:[%s7718_s2 + $0xc8] sm:$0xff] }
  0x97   : > { %v871_v58 = vpack.c.bf16 %v848_v57, %v847_v56  ;;  %v849_v63 = vld [vmem:[#allocation3 + $0xd8] sm:$0xff]  ;;  %774 = vst.msk [vmem:[#allocation3 + $0x129] sm:$0xff] %vm575_vm1, %v741_v5  ;;  %v1210_v46 = vld [vmem:[#allocation3 + $0x1] sm:$0xff]  ;;  %v1211_v47 = vld [vmem:[#allocation3 + $0x9] sm:$0xff] }
  0x98   : > { %v850_v0 = vld [vmem:[#allocation3 + $0xe0] sm:$0xff]  ;;  %775 = vst.msk [vmem:[#allocation3 + $0x139] sm:$0xff] %vm575_vm1, %v742_v13  ;;  %v1242_v48 = vpack.c.bf16 %v1211_v47, %v1210_v46 }
  0x99   : > { %v872_v1 = vpack.c.bf16 %v850_v0, %v849_v63  ;;  %v851_v8 = vld [vmem:[#allocation3 + $0xf0] sm:$0xff]  ;;  %776 = vst.msk [vmem:[#allocation3 + $0x141] sm:$0xff] %vm575_vm1, %v743_v14 }
  0x9a   : > { %v852_v9 = vld [vmem:[#allocation3 + $0xf8] sm:$0xff]  ;;  %777 = vst.msk [vmem:[#allocation3 + $0x151] sm:$0xff] %vm575_vm1, %v744_v24 }
  0x9b   : > { %v873_v10 = vpack.c.bf16 %v852_v9, %v851_v8  ;;  %v853_v18 = vld [vmem:[#allocation3 + $0x108] sm:$0xff]  ;;  %778 = vst.msk [vmem:[#allocation3 + $0x159] sm:$0xff] %vm575_vm1, %v745_v25 }
  0x9c   : > { %5126 = vmatmul.msk.f32.gmra.mxu0 %vm365_vm3, %v339_v59  ;;  %v854_v19 = vld [vmem:[#allocation3 + $0x110] sm:$0xff]  ;;  %779 = vst.msk [vmem:[#allocation3 + $0x169] sm:$0xff] %vm575_vm1, %v746_v52 }
  0x9d   : > { %v874_v20 = vpack.c.bf16 %v854_v19, %v853_v18  ;;  %v855_v28 = vld [vmem:[#allocation3 + $0x120] sm:$0xff]  ;;  %780 = vst.msk [vmem:[#allocation3 + $0x171] sm:$0xff] %vm575_vm1, %v747_v53 }
  0x9e   : > { %v856_v29 = vld [vmem:[#allocation3 + $0x128] sm:$0xff] }
  0x9f   : > { %v875_v30 = vpack.c.bf16 %v856_v29, %v855_v28  ;;  %v857_v55 = vld [vmem:[#allocation3 + $0x138] sm:$0xff] }
  0xa0   : > { %v858_v56 = vld [vmem:[#allocation3 + $0x140] sm:$0xff] }
  0xa1   : > { %5149 = vmatmul.msk.bf16.gmra.mxu1 %vm575_vm1, %v868_v37  ;;  %v6138_v37 = vsel %vm929_vm0, %v5176_v34, 0  ;;  %v876_v57 = vpack.c.bf16 %v858_v56, %v857_v55 }
  0xa2   : > { %5463 = vmatpush.bf16.msra.mxu3 %v6138_v37 }
  0xa3   : > { %v861_v25 = vld [vmem:[#allocation3 + $0x168] sm:$0xff] }
  0xa4   : > { %5127 = vmatmul.msk.f32.gmra.mxu0 %vm365_vm3, %v340_v62 }
  0xa6   : > { %1936 = vmatpush.bf16.msrb.mxu3 %v1927_v49 }
  0xa8   : > { %v6102_v17 = vpop.f32.mrf.mxu1 }
  0xa9   : > { %v479_v2 = vpop.f32.mrf.mxu0 }
  0xaa   : > { %686 = vst.msk [vmem:[#allocation2 + $0x19] sm:$0xff] %vm575_vm1, %v479_v2 }
  0xac   : > { %5128 = vmatmul.msk.f32.gmra.mxu0 %vm365_vm3, %v341_v3 }
  0xb0   : > { %v6112_v23 = vpop.f32.mrf.mxu1 }
  0xb1   : > { %5150 = vmatmul.msk.bf16.gmra.mxu1 %vm575_vm1, %v869_v44  ;;  %v482_v7 = vpop.f32.mrf.mxu0 }
  0xb2   : > { %687 = vst.msk [vmem:[#allocation2 + $0x21] sm:$0xff] %vm575_vm1, %v482_v7  ;;  %v860_v7 = vld [vmem:[#allocation3 + $0x158] sm:$0xff] }
  0xb4   : > { %5129 = vmatmul.msk.f32.gmra.mxu0 %vm365_vm3, %v342_v6  ;;  %v859_v6 = vld [vmem:[#allocation3 + $0x150] sm:$0xff] }
  0xb5   : > { %v877_v8 = vpack.c.bf16 %v860_v7, %v859_v6  ;;  %v832_v6 = vld [vmem:[#allocation3 + $0x8] sm:$0xff] }
  0xb9   : > { %v485_v11 = vpop.f32.mrf.mxu0 }
  0xba   : > { %688 = vst.msk [vmem:[#allocation2 + $0x31] sm:$0xff] %vm575_vm1, %v485_v11  ;;  %v351_v11 = vld [vmem:[%s7718_s2 + $0xd0] sm:$0xff] }
  0xbc   : > { %5130 = vmatmul.msk.f32.gmra.mxu0 %vm365_vm3, %v343_v12 }
  0xc1   : > { %5151 = vmatmul.msk.bf16.gmra.mxu1 %vm575_vm1, %v870_v51  ;;  %v488_v16 = vpop.f32.mrf.mxu0  ;;  %v348_v51 = vld [vmem:[%s7718_s2 + $0xb8] sm:$0xff] }
  0xc2   : > { %689 = vst.msk [vmem:[#allocation2 + $0x39] sm:$0xff] %vm575_vm1, %v488_v16 }
  0xc4   : > { %5131 = vmatmul.msk.f32.gmra.mxu0 %vm365_vm3, %v344_v15 }
  0xc9   : > { %v491_v21 = vpop.f32.mrf.mxu0 }
  0xca   : > { %690 = vst.msk [vmem:[#allocation2 + $0x49] sm:$0xff] %vm575_vm1, %v491_v21  ;;  %v719_v21 = vld [vmem:[%s5749_s10 + $0x8] sm:$0xff] }
  0xcb   : > { %752 = vst.msk [vmem:[#allocation3 + $0x21] sm:$0xff] %vm575_vm1, %v719_v21 }
  0xcc   : > { %5132 = vmatmul.msk.f32.gmra.mxu0 %vm365_vm3, %v345_v22  ;;  %v352_v22 = vld [vmem:[%s7718_s2 + $0xd8] sm:$0xff] }
  0xd1   : > { %5152 = vmatmul.msk.bf16.gmra.mxu1 %vm575_vm1, %v871_v58  ;;  %v494_v27 = vpop.f32.mrf.mxu0  ;;  %v789_v38 = vld [vmem:[#allocation2 + $0x48] sm:$0xff] }
  0xd2   : > { %691 = vst.msk [vmem:[#allocation2 + $0x51] sm:$0xff] %vm575_vm1, %v494_v27  ;;  %v1168_v40 = vld [vmem:[#allocation2 + $0x49] sm:$0xff] }
  0xd4   : > { %5133 = vmatmul.msk.f32.gmra.mxu0 %vm365_vm3, %v346_v26  ;;  %v862_v26 = vld [vmem:[#allocation3 + $0x170] sm:$0xff] }
  0xd5   : > { %v878_v27 = vpack.c.bf16 %v862_v26, %v861_v25 }
  0xd9   : > { %v497_v32 = vpop.f32.mrf.mxu0  ;;  %v790_v39 = vld [vmem:[#allocation2 + $0x50] sm:$0xff] }
  0xda   : > { %692 = vst.msk [vmem:[#allocation2 + $0x61] sm:$0xff] %vm575_vm1, %v497_v32  ;;  %v1169_v41 = vld [vmem:[#allocation2 + $0x51] sm:$0xff]  ;;  %v6142_v42 = vpack.c.bf16 %v790_v39, %v789_v38 }
  0xdb   : > { %v1197_v43 = vpack.c.bf16 %v1169_v41, %v1168_v40  ;;  %v720_v40 = vld [vmem:[%s5749_s10 + $0x10] sm:$0xff]  ;;  %v721_v41 = vld [vmem:[%s5749_s10 + $0x18] sm:$0xff] }
  0xdc   : > { %5134 = vmatmul.msk.f32.gmra.mxu0 %vm365_vm3, %v347_v35  ;;  %5163 = vmatmul.msk.bf16.vlgmr.msra.gmra.mxu2 %vm575_vm1, %v6142_v42  ;;  %753 = vst.msk [vmem:[#allocation3 + $0x31] sm:$0xff] %vm575_vm1, %v720_v40 }
  0xdd   : > { %5180 = vmatmul.msk.bf16.vlgmr.msra.gmra.mxu3 %vm575_vm1, %v1197_v43  ;;  %v354_v43 = vld [vmem:[%s7718_s2 + $0xe8] sm:$0xff]  ;;  %754 = vst.msk [vmem:[#allocation3 + $0x39] sm:$0xff] %vm575_vm1, %v721_v41  ;;  %v1216_v41 = vld [vmem:[#allocation3 + $0x49] sm:$0xff] }
  0xe1   : > { %5153 = vmatmul.msk.bf16.gmra.mxu1 %vm575_vm1, %v872_v1  ;;  %v500_v54 = vpop.f32.mrf.mxu0  ;;  %v791_v61 = vld [vmem:[#allocation2 + $0x60] sm:$0xff] }
  0xe2   : > { %693 = vst.msk [vmem:[#allocation2 + $0x69] sm:$0xff] %vm575_vm1, %v500_v54  ;;  %v1170_v63 = vld [vmem:[#allocation2 + $0x61] sm:$0xff] }
  0xe4   : > { %5135 = vmatmul.msk.f32.gmra.mxu0 %vm365_vm3, %v348_v51  ;;  %v355_v51 = vld [vmem:[%s7718_s2 + $0xf0] sm:$0xff] }
  0xe5   : > { %v1215_v21 = vld [vmem:[#allocation3 + $0x39] sm:$0xff] }
  0xe9   : > { %v503_v59 = vpop.f32.mrf.mxu0  ;;  %v792_v62 = vld [vmem:[#allocation2 + $0x68] sm:$0xff] }
  0xea   : > { %694 = vst.msk [vmem:[#allocation2 + $0x79] sm:$0xff] %vm575_vm1, %v503_v59  ;;  %v1171_v0 = vld [vmem:[#allocation2 + $0x69] sm:$0xff]  ;;  %v6178_v1 = vpack.c.bf16 %v792_v62, %v791_v61 }
  0xeb   : > { %v1198_v2 = vpack.c.bf16 %v1171_v0, %v1170_v63  ;;  %v1213_v63 = vld [vmem:[#allocation3 + $0x21] sm:$0xff] }
  0xec   : > { %5136 = vmatmul.msk.f32.gmra.mxu0 %vm365_vm3, %v349_v60  ;;  %5164 = vmatmul.msk.bf16.gmra.mxu2 %vm575_vm1, %v6178_v1  ;;  %v356_v60 = vld [vmem:[%s7718_s2 + $0xf8] sm:$0xff] }
  0xed   : > { %5181 = vmatmul.msk.bf16.gmra.mxu3 %vm575_vm1, %v1198_v2 }
  0xf1   : > { %5154 = vmatmul.msk.bf16.gmra.mxu1 %vm575_vm1, %v873_v10  ;;  %v506_v5 = vpop.f32.mrf.mxu0  ;;  %v793_v12 = vld [vmem:[#allocation2 + $0x78] sm:$0xff] }
  0xf2   : > { %695 = vst.msk [vmem:[#allocation2 + $0x81] sm:$0xff] %vm575_vm1, %v506_v5  ;;  %v1172_v14 = vld [vmem:[#allocation2 + $0x79] sm:$0xff]  ;;  %v831_v5 = vld [vmem:[#allocation3] sm:$0xff] }
  0xf3   : > { %v863_v7 = vpack.c.bf16 %v832_v6, %v831_v5 }
  0xf4   : > { %5137 = vmatmul.msk.f32.gmra.mxu0 %vm365_vm3, %v350_v4 }
  0xf9   : > { %v509_v10 = vpop.f32.mrf.mxu0  ;;  %v794_v13 = vld [vmem:[#allocation2 + $0x80] sm:$0xff] }
  0xfa   : > { %696 = vst.msk [vmem:[#allocation2 + $0x91] sm:$0xff] %vm575_vm1, %v509_v10  ;;  %v1173_v15 = vld [vmem:[#allocation2 + $0x81] sm:$0xff]  ;;  %v6198_v16 = vpack.c.bf16 %v794_v13, %v793_v12 }
  0xfb   : > { %v1199_v18 = vpack.c.bf16 %v1173_v15, %v1172_v14 }
  0xfc   : > { %5138 = vmatmul.msk.f32.gmra.mxu0 %vm365_vm3, %v351_v11  ;;  %5165 = vmatmul.msk.bf16.gmra.mxu2 %vm575_vm1, %v6198_v16 }
  0xfd   : > { %5182 = vmatmul.msk.bf16.gmra.mxu3 %vm575_vm1, %v1199_v18 }
 0x101   : > { %5155 = vmatmul.msk.bf16.gmra.mxu1 %vm575_vm1, %v874_v20  ;;  %v718_v20 = vld [vmem:[%s5749_s10] sm:$0xff]  ;;  %v512_v24 = vpop.f32.mrf.mxu0  ;;  %v795_v32 = vld [vmem:[#allocation2 + $0x90] sm:$0xff] }
 0x102   : > { %751 = vst.msk [vmem:[#allocation3 + $0x19] sm:$0xff] %vm575_vm1, %v718_v20  ;;  %v1174_v34 = vld [vmem:[#allocation2 + $0x91] sm:$0xff]  ;;  %v1214_v20 = vld [vmem:[#allocation3 + $0x31] sm:$0xff] }
 0x103   : > { %697 = vst.msk [vmem:[#allocation2 + $0x99] sm:$0xff] %vm575_vm1, %v512_v24 }
 0x104   : > { %5139 = vmatmul.msk.f32.gmra.mxu0 %vm365_vm3, %v352_v22  ;;  %v1244_v22 = vpack.c.bf16 %v1215_v21, %v1214_v20 }
 0x109   : > { %v515_v29 = vpop.f32.mrf.mxu0  ;;  %v1212_v62 = vld [vmem:[#allocation3 + $0x19] sm:$0xff] }
 0x10a   : > { %698 = vst.msk [vmem:[#allocation2 + $0xa9] sm:$0xff] %vm575_vm1, %v515_v29  ;;  %v796_v33 = vld [vmem:[#allocation2 + $0x98] sm:$0xff]  ;;  %v1243_v0 = vpack.c.bf16 %v1213_v63, %v1212_v62  ;;  %v833_v26 = vld [vmem:[#allocation3 + $0x18] sm:$0xff] }
 0x10b   : > { %v1175_v35 = vld [vmem:[#allocation2 + $0x99] sm:$0xff]  ;;  %v6222_v36 = vpack.c.bf16 %v796_v33, %v795_v32  ;;  %v1218_v63 = vld [vmem:[#allocation3 + $0x61] sm:$0xff] }
 0x10c   : > { %v1200_v38 = vpack.c.bf16 %v1175_v35, %v1174_v34 }
 0x10d   : > { %5166 = vmatmul.msk.bf16.gmra.mxu2 %vm575_vm1, %v6222_v36 }
 0x10e   : > { %v6123_v31 = vpop.f32.mrf.mxu1  ;;  %5183 = vmatmul.msk.bf16.gmra.mxu3 %vm575_vm1, %v1200_v38 }
 0x111   : > { %5156 = vmatmul.msk.bf16.gmra.mxu1 %vm575_vm1, %v875_v30  ;;  %v353_v30 = vld [vmem:[%s7718_s2 + $0xe0] sm:$0xff]  ;;  %v518_v45 = vpop.f32.mrf.mxu0  ;;  %v797_v52 = vld [vmem:[#allocation2 + $0xa8] sm:$0xff] }
 0x112   : > { %5140 = vmatmul.msk.f32.gmra.mxu0 %vm365_vm3, %v353_v30  ;;  %699 = vst.msk [vmem:[#allocation2 + $0xb1] sm:$0xff] %vm575_vm1, %v518_v45  ;;  %v1176_v54 = vld [vmem:[#allocation2 + $0xa9] sm:$0xff] }
 0x116   : > { %v6144_v44 = vpop.f32.mrf.mxu1 }
 0x119   : > { %v521_v50 = vpop.f32.mrf.mxu0  ;;  %v798_v53 = vld [vmem:[#allocation2 + $0xb0] sm:$0xff] }
 0x11a   : > { %5141 = vmatmul.msk.f32.gmra.mxu0 %vm365_vm3, %v354_v43  ;;  %700 = vst.msk [vmem:[#allocation2 + $0xc1] sm:$0xff] %vm575_vm1, %v521_v50  ;;  %v1177_v55 = vld [vmem:[#allocation2 + $0xb1] sm:$0xff]  ;;  %v6246_v56 = vpack.c.bf16 %v798_v53, %v797_v52  ;;  %v1217_v43 = vld [vmem:[#allocation3 + $0x51] sm:$0xff] }
 0x11b   : > { %v1245_v45 = vpack.c.bf16 %v1217_v43, %v1216_v41  ;;  %v836_v50 = vld [vmem:[#allocation3 + $0x38] sm:$0xff] }
 0x11d   : > { %5167 = vmatmul.msk.bf16.gmra.mxu2 %vm575_vm1, %v6246_v56 }
 0x11e   : > { %v6170_v58 = vpop.f32.mrf.mxu1 }
 0x121   : > { %5157 = vmatmul.msk.bf16.gmra.mxu1 %vm575_vm1, %v876_v57  ;;  %v1201_v57 = vpack.c.bf16 %v1177_v55, %v1176_v54  ;;  %v524_v61 = vpop.f32.mrf.mxu0  ;;  %v1178_v11 = vld [vmem:[#allocation2 + $0xc1] sm:$0xff] }
 0x122   : > { %5142 = vmatmul.msk.f32.gmra.mxu0 %vm365_vm3, %v355_v51  ;;  %701 = vst.msk [vmem:[#allocation2 + $0xc9] sm:$0xff] %vm575_vm1, %v524_v61 }
 0x123   : > { %5184 = vmatmul.msk.bf16.gmra.mxu3 %vm575_vm1, %v1201_v57 }
 0x126   : > { %v6180_v3 = vpop.f32.mrf.mxu1 }
 0x129   : > { %v527_v4 = vpop.f32.mrf.mxu0  ;;  %v800_v10 = vld [vmem:[#allocation2 + $0xc8] sm:$0xff] }
 0x12a   : > { %5143 = vmatmul.msk.f32.gmra.mxu0 %vm365_vm3, %v356_v60  ;;  %702 = vst.msk [vmem:[#allocation2 + $0xd9] sm:$0xff] %vm575_vm1, %v527_v4  ;;  %v1179_v12 = vld [vmem:[#allocation2 + $0xc9] sm:$0xff] }
 0x12b   : > { %v1202_v14 = vpack.c.bf16 %v1179_v12, %v1178_v11 }
 0x12e   : > { %v6190_v9 = vpop.f32.mrf.mxu1 }
 0x131   : > { %5158 = vmatmul.msk.bf16.gmra.mxu1 %vm575_vm1, %v877_v8  ;;  %v799_v8 = vld [vmem:[#allocation2 + $0xc0] sm:$0xff]  ;;  %v530_v18 = vpop.f32.mrf.mxu0  ;;  %v801_v29 = vld [vmem:[#allocation2 + $0xd8] sm:$0xff] }
 0x132   : > { %5144 = vmatmul.msk.bf16.vlgmr.msrb.gmra.mxu0 %vm575_vm1, %v863_v7  ;;  %v6263_v13 = vpack.c.bf16 %v800_v10, %v799_v8  ;;  %703 = vst.msk [vmem:[#allocation2 + $0xe1] sm:$0xff] %vm575_vm1, %v530_v18  ;;  %v1180_v32 = vld [vmem:[#allocation2 + $0xd9] sm:$0xff]  ;;  %v784_v10 = vld [vmem:[#allocation2 + $0x8] sm:$0xff] }
 0x133   : > { %1318 = vmatpush.bf16.msrb.mxu0 %v6138_v37  ;;  %5185 = vmatmul.msk.bf16.gmra.mxu3 %vm575_vm1, %v1202_v14  ;;  %v834_v37 = vld [vmem:[#allocation3 + $0x20] sm:$0xff]  ;;  %v783_v8 = vld [vmem:[#allocation2] sm:$0xff] }
 0x134   : > { %5168 = vmatmul.msk.bf16.gmra.mxu2 %vm575_vm1, %v6263_v13  ;;  %v815_v12 = vpack.c.bf16 %v784_v10, %v783_v8 }
 0x136   : > { %v6200_v19 = vpop.f32.mrf.mxu1 }
 0x139   : > { %v533_v25 = vpop.f32.mrf.mxu0  ;;  %v802_v30 = vld [vmem:[#allocation2 + $0xe0] sm:$0xff] }
 0x13a   : > { %704 = vst.msk [vmem:[#allocation2 + $0xf1] sm:$0xff] %vm575_vm1, %v533_v25  ;;  %v1181_v33 = vld [vmem:[#allocation2 + $0xe1] sm:$0xff]  ;;  %v6280_v34 = vpack.c.bf16 %v802_v30, %v801_v29  ;;  %v1221_v29 = vld [vmem:[#allocation3 + $0x81] sm:$0xff] }
 0x13b   : > { %v1203_v35 = vpack.c.bf16 %v1181_v33, %v1180_v32 }
 0x13e   : > { %v6214_v28 = vpop.f32.mrf.mxu1 }
 0x141   : > { %5159 = vmatmul.msk.bf16.gmra.mxu1 %vm575_vm1, %v878_v27  ;;  %v6276_v27 = vpack.c.bf16 %v834_v37, %v833_v26  ;;  %v536_v40 = vpop.f32.mrf.mxu0  ;;  %v803_v52 = vld [vmem:[#allocation2 + $0xf0] sm:$0xff] }
 0x142   : > { %705 = vst.msk [vmem:[#allocation2 + $0xf9] sm:$0xff] %vm575_vm1, %v536_v40  ;;  %v1182_v54 = vld [vmem:[#allocation2 + $0xf1] sm:$0xff]  ;;  %v1220_v37 = vld [vmem:[#allocation3 + $0x79] sm:$0xff] }
 0x143   : > { %5145 = vmatmul.msk.bf16.gmra.mxu0 %vm575_vm1, %v6276_v27  ;;  %5186 = vmatmul.msk.bf16.gmra.mxu3 %vm575_vm1, %v1203_v35  ;;  %v1247_v35 = vpack.c.bf16 %v1221_v29, %v1220_v37 }
 0x144   : > { %5169 = vmatmul.msk.bf16.gmra.mxu2 %vm575_vm1, %v6280_v34 }
 0x146   : > { %v6224_v39 = vpop.f32.mrf.mxu1 }
 0x149   : > { %v539_v47 = vpop.f32.mrf.mxu0  ;;  %v804_v53 = vld [vmem:[#allocation2 + $0xf8] sm:$0xff] }
 0x14a   : > { %706 = vst.msk [vmem:[#allocation2 + $0x109] sm:$0xff] %vm575_vm1, %v539_v47  ;;  %v1183_v55 = vld [vmem:[#allocation2 + $0xf9] sm:$0xff]  ;;  %v6296_v57 = vpack.c.bf16 %v804_v53, %v803_v52 }
 0x14b   : > { %v1204_v60 = vpack.c.bf16 %v1183_v55, %v1182_v54 }
 0x14e   : > { %v6238_v49 = vpop.f32.mrf.mxu1 }
 0x151   : > { %5194 = vmatmul.msk.bf16.vlgmr.msrb.gmra.mxu1 %vm575_vm1, %v1242_v48  ;;  %v835_v48 = vld [vmem:[#allocation3 + $0x30] sm:$0xff]  ;;  %v542_v62 = vpop.f32.mrf.mxu0  ;;  %v805_v7 = vld [vmem:[#allocation2 + $0x108] sm:$0xff] }
 0x152   : > { %v6292_v51 = vpack.c.bf16 %v836_v50, %v835_v48  ;;  %707 = vst.msk [vmem:[#allocation2 + $0x111] sm:$0xff] %vm575_vm1, %v542_v62  ;;  %v1184_v18 = vld [vmem:[#allocation2 + $0x109] sm:$0xff]  ;;  %v785_v50 = vld [vmem:[#allocation2 + $0x18] sm:$0xff] }
 0x153   : > { %5187 = vmatmul.msk.bf16.gmra.mxu3 %vm575_vm1, %v1204_v60 }
 0x154   : > { %5146 = vmatmul.msk.bf16.gmra.mxu0 %vm575_vm1, %v6292_v51  ;;  %5170 = vmatmul.msk.bf16.gmra.mxu2 %vm575_vm1, %v6296_v57 }
 0x156   : > { %v6248_v59 = vpop.f32.mrf.mxu1 }
 0x159   : > { %v545_v6 = vpop.f32.mrf.mxu0  ;;  %v806_v11 = vld [vmem:[#allocation2 + $0x110] sm:$0xff] }
 0x15a   : > { %708 = vst.msk [vmem:[#allocation2 + $0x121] sm:$0xff] %vm575_vm1, %v545_v6  ;;  %v826_v14 = vpack.c.bf16 %v806_v11, %v805_v7  ;;  %v1185_v20 = vld [vmem:[#allocation2 + $0x111] sm:$0xff]  ;;  %v1222_v6 = vld [vmem:[#allocation3 + $0x91] sm:$0xff]  ;;  %v1223_v7 = vld [vmem:[#allocation3 + $0x99] sm:$0xff] }
 0x15b   : > { %v1205_v21 = vpack.c.bf16 %v1185_v20, %v1184_v18 }
 0x15e   : > { %v6258_v2 = vpop.f32.mrf.mxu1 }
 0x15f   : > { %v1097_v25 = vpop.f32.mrf.mxu2 }
 0x160   : > { %v1335_v26 = vpop.f32.mrf.mxu3  ;;  %v1098_v30 = vadd.f32 %v1097_v25, %v6102_v17 }
 0x161   : > { %5195 = vmatmul.msk.bf16.gmra.mxu1 %vm575_vm1, %v1243_v0  ;;  %v1219_v0 = vld [vmem:[#allocation3 + $0x69] sm:$0xff]  ;;  %v548_v32 = vpop.f32.mrf.mxu0  ;;  %v1186_v53 = vld [vmem:[#allocation2 + $0x121] sm:$0xff] }
 0x162   : > { %v1246_v4 = vpack.c.bf16 %v1219_v0, %v1218_v63  ;;  %709 = vst.msk [vmem:[#allocation2 + $0x129] sm:$0xff] %vm575_vm1, %v548_v32  ;;  %v6315_v33 = vadd.f32 %v1335_v26, %v1098_v30  ;;  %v807_v52 = vld [vmem:[#allocation2 + $0x120] sm:$0xff]  ;;  %v787_v32 = vld [vmem:[#allocation2 + $0x30] sm:$0xff] }
 0x163   : > { %5188 = vmatmul.msk.bf16.gmra.mxu3 %vm575_vm1, %v1205_v21  ;;  %v788_v21 = vld [vmem:[#allocation2 + $0x38] sm:$0xff] }
 0x164   : > { %5160 = vmatmul.msk.bf16.vlgmr.msra.gmra.mxu0 %vm575_vm1, %v815_v12  ;;  %5171 = vmatmul.msk.bf16.gmra.mxu2 %vm575_vm1, %v826_v14  ;;  %v1248_v12 = vpack.c.bf16 %v1223_v7, %v1222_v6  ;;  %v1162_v7 = vld [vmem:[#allocation2 + $0x1] sm:$0xff] }
 0x166   : > { %v6266_v15 = vpop.f32.mrf.mxu1 }
 0x167   : > { %v1099_v41 = vpop.f32.mrf.mxu2 }
 0x168   : > { %v1337_v43 = vpop.f32.mrf.mxu3  ;;  %v1100_v47 = vadd.f32 %v1099_v41, %v6112_v23 }
 0x169   : > { %v551_v48 = vpop.f32.mrf.mxu0  ;;  %v808_v17 = vld [vmem:[#allocation2 + $0x128] sm:$0xff] }
 0x16a   : > { %710 = vst.msk [vmem:[#allocation2 + $0x139] sm:$0xff] %vm575_vm1, %v551_v48  ;;  %v1187_v54 = vld [vmem:[#allocation2 + $0x129] sm:$0xff]  ;;  %v6322_v55 = vadd.f32 %v1337_v43, %v1100_v47  ;;  %v827_v62 = vpack.c.bf16 %v808_v17, %v807_v52  ;;  %v1225_v52 = vld [vmem:[#allocation3 + $0xb1] sm:$0xff] }
 0x16b   : > { %v1206_v63 = vpack.c.bf16 %v1187_v54, %v1186_v53 }
 0x16e   : > { %v6272_v24 = vpop.f32.mrf.mxu1 }
 0x16f   : > { %v1102_v23 = vpop.f32.mrf.mxu2 }
 0x170   : > { %v1103_v8 = vadd.f32 %v1102_v23, %v6123_v31 }
 0x171   : > { %5196 = vmatmul.msk.bf16.gmra.mxu1 %vm575_vm1, %v1244_v22  ;;  %v554_v10 = vpop.f32.mrf.mxu0  ;;  %v809_v25 = vld [vmem:[#allocation2 + $0x138] sm:$0xff] }
 0x172   : > { %711 = vst.msk [vmem:[#allocation2 + $0x141] sm:$0xff] %vm575_vm1, %v554_v10  ;;  %v1188_v30 = vld [vmem:[#allocation2 + $0x139] sm:$0xff] }
 0x173   : > { %5189 = vmatmul.msk.bf16.gmra.mxu3 %vm575_vm1, %v1206_v63 }
 0x174   : > { %5172 = vmatmul.msk.bf16.gmra.mxu2 %vm575_vm1, %v827_v62 }
 0x176   : > { %v6282_v38 = vpop.f32.mrf.mxu1 }
 0x177   : > { %v1104_v18 = vpop.f32.mrf.mxu2 }
 0x178   : > { %v1105_v26 = vadd.f32 %v1104_v18, %v6144_v44 }
 0x179   : > { %v557_v37 = vpop.f32.mrf.mxu0  ;;  %v810_v29 = vld [vmem:[#allocation2 + $0x140] sm:$0xff] }
 0x17a   : > { %v1189_v31 = vld [vmem:[#allocation2 + $0x141] sm:$0xff]  ;;  %712 = vst.msk [vmem:[#allocation2 + $0x151] sm:$0xff] %vm575_vm1, %v557_v37 }
 0x17b   : > { %v1207_v41 = vpack.c.bf16 %v1189_v31, %v1188_v30  ;;  %v1226_v31 = vld [vmem:[#allocation3 + $0xc1] sm:$0xff] }
 0x17e   : > { %v6288_v46 = vpop.f32.mrf.mxu1 }
 0x17f   : > { %v1107_v44 = vpop.f32.mrf.mxu2 }
 0x180   : > { %v1108_v17 = vadd.f32 %v1107_v44, %v6170_v58 }
 0x181   : > { %5197 = vmatmul.msk.bf16.gmra.mxu1 %vm575_vm1, %v1245_v45  ;;  %v786_v45 = vld [vmem:[#allocation2 + $0x20] sm:$0xff]  ;;  %v560_v53 = vpop.f32.mrf.mxu0  ;;  %v811_v6 = vld [vmem:[#allocation2 + $0x150] sm:$0xff] }
 0x182   : > { %v6324_v60 = vpack.c.bf16 %v786_v45, %v785_v50  ;;  %v6343_v45 = vpack.c.bf16 %v788_v21, %v787_v32  ;;  %v1224_v50 = vld [vmem:[#allocation3 + $0xa9] sm:$0xff]  ;;  %713 = vst.msk [vmem:[#allocation2 + $0x159] sm:$0xff] %vm575_vm1, %v560_v53 }
 0x183   : > { %5190 = vmatmul.msk.bf16.gmra.mxu3 %vm575_vm1, %v1207_v41  ;;  %v1249_v62 = vpack.c.bf16 %v1225_v52, %v1224_v50  ;;  %v1227_v32 = vld [vmem:[#allocation3 + $0xc9] sm:$0xff] }
 0x184   : > { %5161 = vmatmul.msk.bf16.gmra.mxu0 %vm575_vm1, %v6324_v60 }
 0x186   : > { %v6298_v61 = vpop.f32.mrf.mxu1 }
 0x187   : > { %v1109_v23 = vpop.f32.mrf.mxu2 }
 0x188   : > { %v1110_v10 = vadd.f32 %v1109_v23, %v6180_v3 }
 0x189   : > { %v812_v18 = vld [vmem:[#allocation2 + $0x158] sm:$0xff] }
 0x18a   : > { %v1191_v21 = vld [vmem:[#allocation2 + $0x159] sm:$0xff] }
 0x18e   : > { %v6304_v5 = vpop.f32.mrf.mxu1 }
 0x190   : > { %v1112_v3 = vpop.f32.mrf.mxu2 }
 0x191   : > { %5198 = vmatmul.msk.bf16.gmra.mxu1 %vm575_vm1, %v1246_v4  ;;  %v1340_v4 = vpop.f32.mrf.mxu3 }
 0x192   : > { %v6334_v11 = vadd.f32 %v1340_v4, %v1103_v8  ;;  %v1163_v8 = vld [vmem:[#allocation2 + $0x9] sm:$0xff] }
 0x193   : > { %v1194_v58 = vpack.c.bf16 %v1163_v8, %v1162_v7 }
 0x194   : > { %5162 = vmatmul.msk.bf16.gmra.mxu0 %vm575_vm1, %v6343_v45 }
 0x196   : > { %v6308_v22 = vpop.f32.mrf.mxu1 }
 0x198   : > { %v1114_v52 = vpop.f32.mrf.mxu2 }
 0x199   : > { %v1342_v20 = vpop.f32.mrf.mxu3  ;;  %v1115_v23 = vadd.f32 %v1114_v52, %v6200_v19  ;;  %v1167_v52 = vld [vmem:[#allocation2 + $0x39] sm:$0xff] }
 0x19a   : > { %v6341_v43 = vadd.f32 %v1342_v20, %v1105_v26  ;;  %v1190_v20 = vld [vmem:[#allocation2 + $0x151] sm:$0xff] }
 0x19b   : > { %v1208_v26 = vpack.c.bf16 %v1191_v21, %v1190_v20 }
 0x19d   : > { %5191 = vmatmul.msk.bf16.gmra.mxu3 %vm575_vm1, %v1208_v26  ;;  %v1229_v26 = vld [vmem:[#allocation3 + $0xe1] sm:$0xff] }
 0x19e   : > { %v6317_v40 = vpop.f32.mrf.mxu1 }
 0x1a0   : > { %v1117_v19 = vpop.f32.mrf.mxu2 }
 0x1a1   : > { %5199 = vmatmul.msk.bf16.gmra.mxu1 %vm575_vm1, %v1247_v35  ;;  %v828_v35 = vpack.c.bf16 %v810_v29, %v809_v25  ;;  %v1345_v48 = vpop.f32.mrf.mxu3  ;;  %v829_v25 = vpack.c.bf16 %v812_v18, %v811_v6 }
 0x1a2   : > { %v6353_v54 = vadd.f32 %v1345_v48, %v1108_v17  ;;  %v1250_v48 = vpack.c.bf16 %v1227_v32, %v1226_v31 }
 0x1a3   : > { %5173 = vmatmul.msk.bf16.gmra.mxu2 %vm575_vm1, %v828_v35  ;;  %v1113_v35 = vadd.f32 %v1112_v3, %v6190_v9  ;;  %v1118_v3 = vadd.f32 %v1117_v19, %v6214_v28  ;;  %v1607_v28 = vld [vmem:[#allocation2 + $0xa] sm:$0xff]  ;;  %v5261_v19 = vld [vmem:[%s7720_s4 + $0x6] sm:$0x3] }
 0x1a4   : > { %5177 = vmatmul.msk.bf16.vlgmr.msrb.gmra.mxu0 %vm575_vm1, %v1194_v58 }
 0x1a6   : > { %v6326_v0 = vpop.f32.mrf.mxu1 }
 0x1a9   : > { %v1347_v4 = vpop.f32.mrf.mxu3 }
 0x1aa   : > { %v6360_v37 = vadd.f32 %v1347_v4, %v1110_v10  ;;  %v1164_v10 = vld [vmem:[#allocation2 + $0x19] sm:$0xff] }
 0x1ae   : > { %v6336_v14 = vpop.f32.mrf.mxu1 }
 0x1b1   : > { %5200 = vmatmul.msk.bf16.gmra.mxu1 %vm575_vm1, %v1248_v12  ;;  %v563_v12 = vpop.f32.mrf.mxu0  ;;  %v1350_v30 = vpop.f32.mrf.mxu3 }
 0x1b2   : > { %714 = vst.msk [vmem:[#allocation2 + $0x169] sm:$0xff] %vm575_vm1, %v563_v12  ;;  %v6369_v44 = vadd.f32 %v1350_v30, %v1113_v35 }
 0x1b3   : > { %5174 = vmatmul.msk.bf16.gmra.mxu2 %vm575_vm1, %v829_v25  ;;  %v1228_v25 = vld [vmem:[#allocation3 + $0xd9] sm:$0xff] }
 0x1b4   : > { %v1251_v32 = vpack.c.bf16 %v1229_v26, %v1228_v25  ;;  %v2371_v26 = vsel %vm929_vm0, %v5261_v19, 0  ;;  %v1657_v19 = vld [vmem:[#allocation3 + $0x22] sm:$0xff] }
 0x1b5   : > { %2380 = vmatpush.bf16.msra.mxu1 %v2371_v26 }
 0x1b6   : > { %v6345_v47 = vpop.f32.mrf.mxu1 }
 0x1b9   : > { %v566_v41 = vpop.f32.mrf.mxu0  ;;  %v1352_v17 = vpop.f32.mrf.mxu3  ;;  %v813_v53 = vld [vmem:[#allocation2 + $0x168] sm:$0xff] }
 0x1ba   : > { %715 = vst.msk [vmem:[#allocation2 + $0x171] sm:$0xff] %vm575_vm1, %v566_v41  ;;  %v1192_v7 = vld [vmem:[#allocation2 + $0x169] sm:$0xff]  ;;  %v6376_v18 = vadd.f32 %v1352_v17, %v1115_v23  ;;  %v1119_v41 = vpop.f32.mrf.mxu2 }
 0x1bb   : > { %v1120_v17 = vadd.f32 %v1119_v41, %v6224_v39  ;;  %v1606_v23 = vld [vmem:[#allocation2 + $0x2] sm:$0xff] }
 0x1bc   : > { %v5278_v39 = vld [vmem:[%s7719_s3 + $0x8] sm:$0x3] }
 0x1bd   : > { %v1231_v41 = vld [vmem:[#allocation3 + $0xf9] sm:$0xff] }
 0x1be   : > { %v6355_v63 = vpop.f32.mrf.mxu1 }
 0x1c1   : > { %5201 = vmatmul.msk.bf16.gmra.mxu1 %vm575_vm1, %v1249_v62  ;;  %v1165_v62 = vld [vmem:[#allocation2 + $0x21] sm:$0xff]  ;;  %v569_v4 = vpop.f32.mrf.mxu0  ;;  %v814_v6 = vld [vmem:[#allocation2 + $0x170] sm:$0xff]  ;;  %v1355_v21 = vpop.f32.mrf.mxu3 }
 0x1c2   : > { %v1193_v9 = vld [vmem:[#allocation2 + $0x171] sm:$0xff]  ;;  %716 = vst.msk [vmem:[#allocation2 + $0x181] sm:$0xff] %vm575_vm1, %v569_v4  ;;  %v830_v8 = vpack.c.bf16 %v814_v6, %v813_v53  ;;  %v1195_v58 = vpack.c.bf16 %v1165_v62, %v1164_v10  ;;  %v6385_v31 = vadd.f32 %v1355_v21, %v1118_v3  ;;  %v2641_v21 = vsel %vm929_vm0, %v5278_v39, 0  ;;  %v1122_v3 = vpop.f32.mrf.mxu2 }
 0x1c3   : > { %v1209_v12 = vpack.c.bf16 %v1193_v9, %v1192_v7  ;;  %v1166_v62 = vld [vmem:[#allocation2 + $0x31] sm:$0xff]  ;;  %v1638_v9 = vpack.c.bf16 %v1607_v28, %v1606_v23  ;;  %2650 = vmatpush.bf16.msra.mxu2 %v2641_v21 }
 0x1c4   : > { %5175 = vmatmul.msk.bf16.gmra.mxu2 %vm575_vm1, %v830_v8  ;;  %5178 = vmatmul.msk.bf16.gmra.mxu0 %vm575_vm1, %v1195_v58  ;;  %v1654_v4 = vld [vmem:[#allocation3 + $0x2] sm:$0xff]  ;;  %v1196_v7 = vpack.c.bf16 %v1167_v52, %v1166_v62  ;;  %v1655_v8 = vld [vmem:[#allocation3 + $0xa] sm:$0xff]  ;;  %v5295_v58 = vld [vmem:[%s7720_s4 + $0x8] sm:$0x3] }
 0x1c5   : > { %5192 = vmatmul.msk.bf16.gmra.mxu3 %vm575_vm1, %v1209_v12  ;;  %v1686_v10 = vpack.c.bf16 %v1655_v8, %v1654_v4  ;;  %v2815_v25 = vsel %vm929_vm0, %v5295_v58, 0  ;;  %v1609_v8 = vld [vmem:[#allocation2 + $0x22] sm:$0xff]  ;;  %v1656_v58 = vld [vmem:[#allocation3 + $0x1a] sm:$0xff] }
 0x1c6   : > { %v6362_v29 = vpop.f32.mrf.mxu1  ;;  %2824 = vmatpush.bf16.msra.mxu3 %v2815_v25  ;;  %v1687_v26 = vpack.c.bf16 %v1657_v19, %v1656_v58 }
 0x1c9   : > { %v572_v30 = vpop.f32.mrf.mxu0 }
 0x1ca   : > { %717 = vst.msk [vmem:[#allocation2 + $0x189] sm:$0xff] %vm575_vm1, %v572_v30  ;;  %v1124_v28 = vpop.f32.mrf.mxu2 }
 0x1ce   : > { %v6371_v50 = vpop.f32.mrf.mxu1 }
 0x1d1   : > { %5202 = vmatmul.msk.bf16.gmra.mxu1 %vm575_vm1, %v1250_v48  ;;  %v1357_v48 = vpop.f32.mrf.mxu3  ;;  %v6391_v53 = vpop.f32.mrf.mxu0 }
 0x1d2   : > { %v6393_v6 = vadd.f32 %v1357_v48, %v1120_v17  ;;  %v1123_v48 = vadd.f32 %v1122_v3, %v6238_v49  ;;  %v1125_v49 = vadd.f32 %v1124_v28, %v6248_v59  ;;  %v1127_v59 = vpop.f32.mrf.mxu2 }
 0x1d4   : > { %5179 = vmatmul.msk.bf16.gmra.mxu0 %vm575_vm1, %v1196_v7  ;;  %5211 = vmatmul.msk.bf16.vlgmr.msrb.gmra.mxu2 %vm575_vm1, %v1638_v9  ;;  %v5244_v7 = vld [vmem:[%s7719_s3 + $0x6] sm:$0x3]  ;;  %v1608_v9 = vld [vmem:[#allocation2 + $0x1a] sm:$0xff] }
 0x1d5   : > { %5228 = vmatmul.msk.bf16.vlgmr.msrb.gmra.mxu3 %vm575_vm1, %v1686_v10  ;;  %v2197_v39 = vsel %vm929_vm0, %v5244_v7, 0  ;;  %v1639_v25 = vpack.c.bf16 %v1609_v8, %v1608_v9 }
 0x1d6   : > { %v6378_v20 = vpop.f32.mrf.mxu1  ;;  %2206 = vmatpush.bf16.msra.mxu0 %v2197_v39  ;;  %v1611_v39 = vld [vmem:[#allocation2 + $0x3a] sm:$0xff] }
 0x1d9   : > { %v1360_v30 = vpop.f32.mrf.mxu3  ;;  %v6413_v52 = vpop.f32.mrf.mxu0 }
 0x1da   : > { %v6415_v17 = vadd.f32 %v1360_v30, %v1123_v48  ;;  %v1128_v48 = vadd.f32 %v1127_v59, %v6258_v2  ;;  %v1658_v2 = vld [vmem:[#allocation3 + $0x32] sm:$0xff] }
 0x1de   : > { %v6387_v35 = vpop.f32.mrf.mxu1 }
 0x1e1   : > { %5203 = vmatmul.msk.bf16.gmra.mxu1 %vm575_vm1, %v1251_v32  ;;  %v1230_v32 = vld [vmem:[#allocation3 + $0xf1] sm:$0xff]  ;;  %v1362_v4 = vpop.f32.mrf.mxu3  ;;  %v6424_v10 = vpop.f32.mrf.mxu0 }
 0x1e2   : > { %v1252_v62 = vpack.c.bf16 %v1231_v41, %v1230_v32  ;;  %v6427_v21 = vadd.f32 %v1362_v4, %v1125_v49  ;;  %v1232_v32 = vld [vmem:[#allocation3 + $0x109] sm:$0xff]  ;;  %v1233_v41 = vld [vmem:[#allocation3 + $0x111] sm:$0xff] }
 0x1e3   : > { %v1253_v4 = vpack.c.bf16 %v1233_v41, %v1232_v32  ;;  %v1610_v49 = vld [vmem:[#allocation2 + $0x32] sm:$0xff] }
 0x1e4   : > { %5212 = vmatmul.msk.bf16.gmra.mxu2 %vm575_vm1, %v1639_v25  ;;  %5245 = vmatmul.msk.bf16.vlgmr.msra.gmra.mxu0 %vm575_vm1, %v6324_v60  ;;  %v1129_v60 = vpop.f32.mrf.mxu2  ;;  %v1659_v25 = vld [vmem:[#allocation3 + $0x3a] sm:$0xff]  ;;  %v1640_v59 = vpack.c.bf16 %v1611_v39, %v1610_v49 }
 0x1e5   : > { %5229 = vmatmul.msk.bf16.gmra.mxu3 %vm575_vm1, %v1687_v26  ;;  %v1130_v58 = vadd.f32 %v1129_v60, %v6266_v15 }
 0x1e6   : > { %v6395_v12 = vpop.f32.mrf.mxu1 }
 0x1e9   : > { %v1365_v30 = vpop.f32.mrf.mxu3 }
 0x1ea   : > { %v6438_v28 = vadd.f32 %v1365_v30, %v1128_v48  ;;  %v1688_v30 = vpack.c.bf16 %v1659_v25, %v1658_v2  ;;  %v1234_v48 = vld [vmem:[#allocation3 + $0x121] sm:$0xff] }
 0x1eb   : > { %v1612_v2 = vld [vmem:[#allocation2 + $0x4a] sm:$0xff]  ;;  %v1613_v25 = vld [vmem:[#allocation2 + $0x52] sm:$0xff] }
 0x1ec   : > { %v1132_v15 = vpop.f32.mrf.mxu2 }
 0x1ee   : > { %v6417_v23 = vpop.f32.mrf.mxu1 }
 0x1f1   : > { %5204 = vmatmul.msk.bf16.gmra.mxu1 %vm575_vm1, %v1252_v62  ;;  %v6436_v62 = vpop.f32.mrf.mxu0  ;;  %v1367_v8 = vpop.f32.mrf.mxu3 }
 0x1f2   : > { %v6447_v26 = vadd.f32 %v1367_v8, %v1130_v58 }
 0x1f4   : > { %5213 = vmatmul.msk.bf16.gmra.mxu2 %vm575_vm1, %v1640_v59  ;;  %5246 = vmatmul.msk.bf16.gmra.mxu0 %vm575_vm1, %v6343_v45 }
 0x1f5   : > { %5230 = vmatmul.msk.bf16.gmra.mxu3 %vm575_vm1, %v1688_v30 }
 0x1f6   : > { %v6429_v3 = vpop.f32.mrf.mxu1 }
 0x1f9   : > { %v6445_v19 = vpop.f32.mrf.mxu0  ;;  %v1370_v41 = vpop.f32.mrf.mxu3 }
 0x1fe   : > { %v1509_v7 = vpop.f32.mrf.mxu1 }
 0x1ff   : > { %v6441_v9 = vadd.f32 %v1509_v7, %v6315_v33  ;;  %v1133_v7 = vadd.f32 %v1132_v15, %v6272_v24  ;;  %v1661_v24 = vld [vmem:[#allocation3 + $0x52] sm:$0xff] }
 0x201   : > { %5205 = vmatmul.msk.bf16.gmra.mxu1 %vm575_vm1, %v1253_v4  ;;  %v1235_v4 = vld [vmem:[#allocation3 + $0x129] sm:$0xff]  ;;  %v6457_v60 = vpop.f32.mrf.mxu0  ;;  %v6459_v8 = vadd.f32 %v1370_v41, %v1133_v7  ;;  %v1372_v45 = vpop.f32.mrf.mxu3 }
 0x202   : > { %v1254_v49 = vpack.c.bf16 %v1235_v4, %v1234_v48  ;;  %v1641_v48 = vpack.c.bf16 %v1613_v25, %v1612_v2 }
 0x204   : > { %5214 = vmatmul.msk.bf16.gmra.mxu2 %vm575_vm1, %v1641_v48  ;;  %5247 = vmatmul.msk.bf16.gmra.mxu0 %vm575_vm1, %v6142_v42 }
 0x206   : > { %v1511_v32 = vpop.f32.mrf.mxu1 }
 0x207   : > { %v6453_v33 = vadd.f32 %v1511_v32, %v6322_v55  ;;  %v1134_v55 = vpop.f32.mrf.mxu2  ;;  %v1660_v32 = vld [vmem:[#allocation3 + $0x4a] sm:$0xff] }
 0x208   : > { %v1135_v59 = vadd.f32 %v1134_v55, %v6282_v38  ;;  %v1689_v4 = vpack.c.bf16 %v1661_v24, %v1660_v32  ;;  %v1614_v32 = vld [vmem:[#allocation2 + $0x62] sm:$0xff]  ;;  %v1615_v24 = vld [vmem:[#allocation2 + $0x6a] sm:$0xff] }
 0x209   : > { %v1082_v30 = vpop.f32.mrf.mxu0 }
 0x20a   : > { %v6466_v15 = vadd.f32 %v1372_v45, %v1135_v59  ;;  %v6469_v41 = vadd.f32 %v1082_v30, %v6391_v53  ;;  %5231 = vmatmul.msk.bf16.gmra.mxu3 %vm575_vm1, %v1689_v4  ;;  %v1375_v53 = vpop.f32.mrf.mxu3 }
 0x20e   : > { %v1514_v39 = vpop.f32.mrf.mxu1 }
 0x20f   : > { %v6462_v58 = vadd.f32 %v1514_v39, %v6334_v11  ;;  %v1137_v38 = vpop.f32.mrf.mxu2  ;;  %v1237_v39 = vld [vmem:[#allocation3 + $0x141] sm:$0xff] }
 0x210   : > { %v1138_v55 = vadd.f32 %v1137_v38, %v6288_v46  ;;  %v1663_v38 = vld [vmem:[#allocation3 + $0x6a] sm:$0xff] }
 0x211   : > { %5206 = vmatmul.msk.bf16.gmra.mxu1 %vm575_vm1, %v1254_v49  ;;  %v1236_v49 = vld [vmem:[#allocation3 + $0x139] sm:$0xff]  ;;  %v1084_v45 = vpop.f32.mrf.mxu0 }
 0x212   : > { %v6479_v2 = vadd.f32 %v1375_v53, %v1138_v55  ;;  %v6482_v25 = vadd.f32 %v1084_v45, %v6413_v52  ;;  %v1255_v59 = vpack.c.bf16 %v1237_v39, %v1236_v49  ;;  %v1377_v46 = vpop.f32.mrf.mxu3  ;;  %v1642_v49 = vpack.c.bf16 %v1615_v24, %v1614_v32  ;;  %v1238_v45 = vld [vmem:[#allocation3 + $0x151] sm:$0xff] }
 0x214   : > { %5215 = vmatmul.msk.bf16.gmra.mxu2 %vm575_vm1, %v1642_v49  ;;  %5248 = vmatmul.msk.bf16.gmra.mxu0 %vm575_vm1, %v6178_v1 }
 0x216   : > { %v1516_v11 = vpop.f32.mrf.mxu1 }
 0x217   : > { %v6475_v7 = vadd.f32 %v1516_v11, %v6341_v43  ;;  %v1139_v43 = vpop.f32.mrf.mxu2  ;;  %v1662_v11 = vld [vmem:[#allocation3 + $0x62] sm:$0xff] }
 0x218   : > { %v1140_v48 = vadd.f32 %v1139_v43, %v6298_v61  ;;  %v1690_v39 = vpack.c.bf16 %v1663_v38, %v1662_v11  ;;  %v1617_v11 = vld [vmem:[#allocation2 + $0x82] sm:$0xff] }
 0x219   : > { %v1087_v4 = vpop.f32.mrf.mxu0 }
 0x21a   : > { %v6489_v55 = vadd.f32 %v1377_v46, %v1140_v48  ;;  %v6492_v52 = vadd.f32 %v1087_v4, %v6424_v10  ;;  %5232 = vmatmul.msk.bf16.gmra.mxu3 %vm575_vm1, %v1690_v39  ;;  %v1380_v10 = vpop.f32.mrf.mxu3  ;;  %v1616_v4 = vld [vmem:[#allocation2 + $0x7a] sm:$0xff]  ;;  %v1664_v39 = vld [vmem:[#allocation3 + $0x7a] sm:$0xff] }
 0x21e   : > { %v1519_v30 = vpop.f32.mrf.mxu1 }
 0x21f   : > { %v6485_v42 = vadd.f32 %v1519_v30, %v6353_v54  ;;  %v1142_v61 = vpop.f32.mrf.mxu2 }
 0x220   : > { %v1143_v30 = vadd.f32 %v1142_v61, %v6304_v5 }
 0x221   : > { %5207 = vmatmul.msk.bf16.gmra.mxu1 %vm575_vm1, %v1255_v59  ;;  %v1239_v59 = vld [vmem:[#allocation3 + $0x159] sm:$0xff]  ;;  %v1089_v43 = vpop.f32.mrf.mxu0 }
 0x222   : > { %v6502_v32 = vadd.f32 %v1380_v10, %v1143_v30  ;;  %v6505_v24 = vadd.f32 %v1089_v43, %v6436_v62  ;;  %v1256_v48 = vpack.c.bf16 %v1239_v59, %v1238_v45  ;;  %v1382_v5 = vpop.f32.mrf.mxu3  ;;  %v1643_v45 = vpack.c.bf16 %v1617_v11, %v1616_v4  ;;  %v1240_v10 = vld [vmem:[#allocation3 + $0x169] sm:$0xff]  ;;  %v1241_v43 = vld [vmem:[#allocation3 + $0x171] sm:$0xff] }
 0x223   : > { %v1257_v11 = vpack.c.bf16 %v1241_v43, %v1240_v10 }
 0x224   : > { %5216 = vmatmul.msk.bf16.gmra.mxu2 %vm575_vm1, %v1643_v45  ;;  %5249 = vmatmul.msk.bf16.gmra.mxu0 %vm575_vm1, %v6198_v16  ;;  %v1666_v45 = vld [vmem:[#allocation3 + $0x92] sm:$0xff] }
 0x226   : > { %v1521_v54 = vpop.f32.mrf.mxu1 }
 0x227   : > { %v6498_v53 = vadd.f32 %v1521_v54, %v6360_v37  ;;  %v1144_v37 = vpop.f32.mrf.mxu2  ;;  %v1665_v54 = vld [vmem:[#allocation3 + $0x82] sm:$0xff] }
 0x228   : > { %v1145_v38 = vadd.f32 %v1144_v37, %v6308_v22  ;;  %v1691_v59 = vpack.c.bf16 %v1665_v54, %v1664_v39 }
 0x229   : > { %v1092_v49 = vpop.f32.mrf.mxu0 }
 0x22a   : > { %v6512_v61 = vadd.f32 %v1382_v5, %v1145_v38  ;;  %v6515_v62 = vadd.f32 %v1092_v49, %v6445_v19  ;;  %5233 = vmatmul.msk.bf16.gmra.mxu3 %vm575_vm1, %v1691_v59  ;;  %v1385_v19 = vpop.f32.mrf.mxu3  ;;  %v1618_v5 = vld [vmem:[#allocation2 + $0x92] sm:$0xff]  ;;  %v1619_v49 = vld [vmem:[#allocation2 + $0x9a] sm:$0xff]  ;;  %v1667_v59 = vld [vmem:[#allocation3 + $0x9a] sm:$0xff] }
 0x22b   : > { %v1692_v10 = vpack.c.bf16 %v1667_v59, %v1666_v45 }
 0x22e   : > { %v1524_v46 = vpop.f32.mrf.mxu1 }
 0x22f   : > { %v6508_v1 = vadd.f32 %v1524_v46, %v6369_v44  ;;  %v1147_v22 = vpop.f32.mrf.mxu2 }
 0x231   : > { %5208 = vmatmul.msk.bf16.gmra.mxu1 %vm575_vm1, %v1256_v48  ;;  %v1148_v48 = vadd.f32 %v1147_v22, %v6317_v40  ;;  %v1094_v46 = vpop.f32.mrf.mxu0  ;;  %v1644_v22 = vpack.c.bf16 %v1619_v49, %v1618_v5  ;;  %v1621_v5 = vld [vmem:[#allocation2 + $0xb2] sm:$0xff] }
 0x232   : > { %v6528_v4 = vadd.f32 %v1094_v46, %v6457_v60  ;;  %v1387_v40 = vpop.f32.mrf.mxu3 }
 0x233   : > { %v6525_v37 = vadd.f32 %v1385_v19, %v1148_v48 }
 0x234   : > { %5217 = vmatmul.msk.bf16.gmra.mxu2 %vm575_vm1, %v1644_v22  ;;  %5250 = vmatmul.msk.bf16.gmra.mxu0 %vm575_vm1, %v6222_v36 }
 0x236   : > { %v1526_v44 = vpop.f32.mrf.mxu1 }
 0x237   : > { %v6521_v30 = vadd.f32 %v1526_v44, %v6376_v18  ;;  %v1149_v18 = vpop.f32.mrf.mxu2 }
 0x238   : > { %v1150_v39 = vadd.f32 %v1149_v18, %v6326_v0 }
 0x239   : > { %v1320_v54 = vpop.f32.mrf.mxu0 }
 0x23a   : > { %v6535_v44 = vadd.f32 %v1387_v40, %v1150_v39  ;;  %v1400_v60 = vadd.f32 %v1320_v54, %v6469_v41  ;;  %5234 = vmatmul.msk.bf16.gmra.mxu3 %vm575_vm1, %v1692_v10  ;;  %v1390_v19 = vpop.f32.mrf.mxu3  ;;  %v1668_v40 = vld [vmem:[#allocation3 + $0xaa] sm:$0xff]  ;;  %v1669_v54 = vld [vmem:[#allocation3 + $0xb2] sm:$0xff] }
 0x23e   : > { %v1529_v38 = vpop.f32.mrf.mxu1 }
 0x23f   : > { %v6531_v16 = vadd.f32 %v1529_v38, %v6385_v31  ;;  %v1152_v0 = vpop.f32.mrf.mxu2 }
 0x240   : > { %v1153_v48 = vadd.f32 %v1152_v0, %v6336_v14 }
 0x241   : > { %5209 = vmatmul.msk.bf16.gmra.mxu1 %vm575_vm1, %v1257_v11  ;;  %v1322_v46 = vpop.f32.mrf.mxu0 }
 0x242   : > { %v6546_v11 = vadd.f32 %v1390_v19, %v1153_v48  ;;  %v1401_v41 = vadd.f32 %v1322_v46, %v6482_v25  ;;  %v1392_v39 = vpop.f32.mrf.mxu3 }
 0x244   : > { %5251 = vmatmul.msk.bf16.gmra.mxu0 %vm575_vm1, %v6246_v56 }
 0x246   : > { %v1531_v43 = vpop.f32.mrf.mxu1 }
 0x247   : > { %v6542_v31 = vadd.f32 %v1531_v43, %v6393_v6  ;;  %v1154_v36 = vpop.f32.mrf.mxu2  ;;  %v1620_v6 = vld [vmem:[#allocation2 + $0xaa] sm:$0xff] }
 0x248   : > { %v1155_v49 = vadd.f32 %v1154_v36, %v6345_v47  ;;  %v1645_v59 = vpack.c.bf16 %v1621_v5, %v1620_v6  ;;  %v1670_v5 = vld [vmem:[#allocation3 + $0xc2] sm:$0xff] }
 0x249   : > { %v1325_v14 = vpop.f32.mrf.mxu0 }
 0x24a   : > { %v6555_v45 = vadd.f32 %v1392_v39, %v1155_v49  ;;  %v6558_v25 = vadd.f32 %v1325_v14, %v6492_v52  ;;  %5218 = vmatmul.msk.bf16.gmra.mxu2 %vm575_vm1, %v1645_v59  ;;  %v1395_v43 = vpop.f32.mrf.mxu3  ;;  %v1671_v49 = vld [vmem:[#allocation3 + $0xca] sm:$0xff] }
 0x24b   : > { %v2102_v59 = vld [vmem:[#allocation3 + $0x48] sm:$0xff] }
 0x24e   : > { %v1534_v38 = vpop.f32.mrf.mxu1 }
 0x24f   : > { %v6550_v18 = vadd.f32 %v1534_v38, %v6415_v17  ;;  %v1693_v17 = vpack.c.bf16 %v1669_v54, %v1668_v40  ;;  %v1157_v47 = vpop.f32.mrf.mxu2  ;;  %v1623_v38 = vld [vmem:[#allocation2 + $0xca] sm:$0xff] }
 0x250   : > { %v1158_v10 = vadd.f32 %v1157_v47, %v6355_v63 }
 0x251   : > { %5262 = vmatmul.msk.bf16.vlgmr.msra.gmra.mxu1 %vm575_vm1, %v6276_v27  ;;  %5235 = vmatmul.msk.bf16.gmra.mxu3 %vm575_vm1, %v1693_v17  ;;  %v1327_v0 = vpop.f32.mrf.mxu0  ;;  %v2103_v17 = vld [vmem:[#allocation3 + $0x50] sm:$0xff] }
 0x252   : > { %v6568_v52 = vadd.f32 %v1395_v43, %v1158_v10  ;;  %v6571_v48 = vadd.f32 %v1327_v0, %v6505_v24  ;;  %v1397_v63 = vpop.f32.mrf.mxu3  ;;  %v2132_v0 = vpack.c.bf16 %v2103_v17, %v2102_v59 }
 0x254   : > { %5252 = vmatmul.msk.bf16.gmra.mxu0 %vm575_vm1, %v6263_v13 }
 0x256   : > { %v1536_v22 = vpop.f32.mrf.mxu1 }
 0x257   : > { %v6564_v27 = vadd.f32 %v1536_v22, %v6427_v21  ;;  %v1159_v56 = vpop.f32.mrf.mxu2  ;;  %v1622_v21 = vld [vmem:[#allocation2 + $0xc2] sm:$0xff] }
 0x258   : > { %v1160_v36 = vadd.f32 %v1159_v56, %v6362_v29  ;;  %v1646_v14 = vpack.c.bf16 %v1623_v38, %v1622_v21  ;;  %v1574_v29 = vadd.f32 %v6371_v50, %v1400_v60  ;;  %v1624_v60 = vld [vmem:[#allocation2 + $0xda] sm:$0xff]  ;;  %v1625_v56 = vld [vmem:[#allocation2 + $0xe2] sm:$0xff] }
 0x259   : > { %v1330_v6 = vpop.f32.mrf.mxu0 }
 0x25a   : > { %v6579_v39 = vadd.f32 %v1397_v63, %v1160_v36  ;;  %v6582_v24 = vadd.f32 %v1330_v6, %v6515_v62  ;;  %5219 = vmatmul.msk.bf16.gmra.mxu2 %vm575_vm1, %v1646_v14  ;;  %v1938_v22 = vpop.f32.mrf.mxu3  ;;  %v1672_v63 = vld [vmem:[#allocation3 + $0xda] sm:$0xff]  ;;  %v1673_v6 = vld [vmem:[#allocation3 + $0xe2] sm:$0xff] }
 0x25b   : > { %v1695_v14 = vpack.c.bf16 %v1673_v6, %v1672_v63 }
 0x25e   : > { %v1539_v19 = vpop.f32.mrf.mxu1 }
 0x25f   : > { %v6574_v46 = vadd.f32 %v1539_v19, %v6438_v28  ;;  %v1694_v28 = vpack.c.bf16 %v1671_v49, %v1670_v5  ;;  %v1764_v54 = vpop.f32.mrf.mxu2  ;;  %v1647_v49 = vpack.c.bf16 %v1625_v56, %v1624_v60  ;;  %v1674_v60 = vld [vmem:[#allocation3 + $0xf2] sm:$0xff]  ;;  %v1675_v56 = vld [vmem:[#allocation3 + $0xfa] sm:$0xff] }
 0x260   : > { %v1844_v62 = vadd.f32 %v1764_v54, %v1574_v29  ;;  %v2105_v29 = vld [vmem:[#allocation3 + $0x68] sm:$0xff]  ;;  %v1696_v63 = vpack.c.bf16 %v1675_v56, %v1674_v60  ;;  %v2108_v56 = vld [vmem:[#allocation3 + $0x90] sm:$0xff] }
 0x261   : > { %5263 = vmatmul.msk.bf16.gmra.mxu1 %vm575_vm1, %v6292_v51  ;;  %5236 = vmatmul.msk.bf16.gmra.mxu3 %vm575_vm1, %v1694_v28  ;;  %v1332_v47 = vpop.f32.mrf.mxu0 }
 0x262   : > { %v2018_v10 = vadd.f32 %v1938_v22, %v1844_v62  ;;  %v6593_v43 = vadd.f32 %v1332_v47, %v6528_v4  ;;  %v1940_v38 = vpop.f32.mrf.mxu3 }
 0x264   : > { %5253 = vmatmul.msk.bf16.gmra.mxu0 %vm575_vm1, %v6280_v34 }
 0x266   : > { %v1541_v40 = vpop.f32.mrf.mxu1 }
 0x267   : > { %v6588_v51 = vadd.f32 %v1541_v40, %v6447_v26  ;;  %v1575_v26 = vadd.f32 %v6378_v20, %v1401_v41  ;;  %v1766_v50 = vpop.f32.mrf.mxu2  ;;  %v2104_v40 = vld [vmem:[#allocation3 + $0x60] sm:$0xff] }
 0x268   : > { %v2133_v47 = vpack.c.bf16 %v2105_v29, %v2104_v40 }
 0x269   : > { %v1845_v21 = vadd.f32 %v1766_v50, %v1575_v26  ;;  %v2208_v36 = vpop.f32.mrf.mxu0 }
 0x26a   : > { %v6600_v4 = vadd.f32 %v2208_v36, %v2018_v10  ;;  %5220 = vmatmul.msk.bf16.gmra.mxu2 %vm575_vm1, %v1647_v49  ;;  %v1943_v59 = vpop.f32.mrf.mxu3  ;;  %v2107_v49 = vld [vmem:[#allocation3 + $0x80] sm:$0xff] }
 0x26b   : > { %v2019_v5 = vadd.f32 %v1940_v38, %v1845_v21 }
 0x26e   : > { %v1544_v19 = vpop.f32.mrf.mxu1 }
 0x26f   : > { %v6596_v13 = vadd.f32 %v1544_v19, %v6459_v8  ;;  %v1576_v8 = vadd.f32 %v6387_v35, %v6558_v25  ;;  %v1769_v41 = vpop.f32.mrf.mxu2  ;;  %v1626_v25 = vld [vmem:[#allocation2 + $0xf2] sm:$0xff] }
 0x271   : > { %5264 = vmatmul.msk.bf16.gmra.mxu1 %vm575_vm1, %v2132_v0  ;;  %5237 = vmatmul.msk.bf16.gmra.mxu3 %vm575_vm1, %v1695_v14  ;;  %v1846_v54 = vadd.f32 %v1769_v41, %v1576_v8  ;;  %v2210_v17 = vpop.f32.mrf.mxu0  ;;  %v1627_v0 = vld [vmem:[#allocation2 + $0xfa] sm:$0xff] }
 0x272   : > { %v6611_v22 = vadd.f32 %v2210_v17, %v2019_v5  ;;  %v1945_v26 = vpop.f32.mrf.mxu3  ;;  %v1648_v36 = vpack.c.bf16 %v1627_v0, %v1626_v25  ;;  %v2106_v5 = vld [vmem:[#allocation3 + $0x78] sm:$0xff]  ;;  %v1629_v17 = vld [vmem:[#allocation2 + $0x112] sm:$0xff] }
 0x273   : > { %v2020_v62 = vadd.f32 %v1943_v59, %v1846_v54  ;;  %v2134_v29 = vpack.c.bf16 %v2107_v49, %v2106_v5  ;;  %v1628_v59 = vld [vmem:[#allocation2 + $0x10a] sm:$0xff]  ;;  %v1677_v25 = vld [vmem:[#allocation3 + $0x112] sm:$0xff] }
 0x274   : > { %5254 = vmatmul.msk.bf16.gmra.mxu0 %vm575_vm1, %v6296_v57  ;;  %v2070_v0 = vld [vmem:[#allocation2 + $0x108] sm:$0xff] }
 0x276   : > { %v1546_v28 = vpop.f32.mrf.mxu1 }
 0x277   : > { %v6606_v20 = vadd.f32 %v1546_v28, %v6466_v15  ;;  %v1577_v15 = vadd.f32 %v6395_v12, %v6571_v48  ;;  %v1771_v35 = vpop.f32.mrf.mxu2  ;;  %v1578_v48 = vadd.f32 %v6417_v23, %v6582_v24  ;;  %v2071_v24 = vld [vmem:[#allocation2 + $0x110] sm:$0xff] }
 0x279   : > { %v1847_v19 = vadd.f32 %v1771_v35, %v1577_v15  ;;  %v2213_v50 = vpop.f32.mrf.mxu0  ;;  %v1649_v15 = vpack.c.bf16 %v1629_v17, %v1628_v59  ;;  %v1676_v35 = vld [vmem:[#allocation3 + $0x10a] sm:$0xff]  ;;  %v1678_v59 = vld [vmem:[#allocation3 + $0x122] sm:$0xff] }
 0x27a   : > { %v6619_v38 = vadd.f32 %v2213_v50, %v2020_v62  ;;  %5221 = vmatmul.msk.bf16.gmra.mxu2 %vm575_vm1, %v1648_v36  ;;  %v1948_v28 = vpop.f32.mrf.mxu3  ;;  %v2092_v50 = vpack.c.bf16 %v2071_v24, %v2070_v0  ;;  %v1679_v17 = vld [vmem:[#allocation3 + $0x12a] sm:$0xff] }
 0x27b   : > { %v2021_v21 = vadd.f32 %v1945_v26, %v1847_v19 }
 0x27e   : > { %v1549_v10 = vpop.f32.mrf.mxu1 }
 0x27f   : > { %v6614_v34 = vadd.f32 %v1549_v10, %v6479_v2  ;;  %v1774_v6 = vpop.f32.mrf.mxu2 }
 0x280   : > { %v1848_v14 = vadd.f32 %v1774_v6, %v1578_v48 }
 0x281   : > { %5265 = vmatmul.msk.bf16.gmra.mxu1 %vm575_vm1, %v2133_v47  ;;  %5238 = vmatmul.msk.bf16.gmra.mxu3 %vm575_vm1, %v1696_v63  ;;  %v2215_v8 = vpop.f32.mrf.mxu0 }
 0x282   : > { %v2022_v41 = vadd.f32 %v1948_v28, %v1848_v14  ;;  %v6630_v40 = vadd.f32 %v2215_v8, %v2021_v21  ;;  %v1950_v47 = vpop.f32.mrf.mxu3  ;;  %v2109_v21 = vld [vmem:[#allocation3 + $0x98] sm:$0xff] }
 0x283   : > { %v2135_v5 = vpack.c.bf16 %v2109_v21, %v2108_v56  ;;  %v1630_v28 = vld [vmem:[#allocation2 + $0x122] sm:$0xff] }
 0x284   : > { %5255 = vmatmul.msk.bf16.gmra.mxu0 %vm575_vm1, %v2092_v50 }
 0x286   : > { %v1551_v2 = vpop.f32.mrf.mxu1 }
 0x287   : > { %v6625_v12 = vadd.f32 %v1551_v2, %v6489_v55  ;;  %v1579_v55 = vadd.f32 %v6429_v3, %v6593_v43  ;;  %v1776_v23 = vpop.f32.mrf.mxu2 }
 0x289   : > { %v1849_v62 = vadd.f32 %v1776_v23, %v1579_v55  ;;  %v2218_v10 = vpop.f32.mrf.mxu0  ;;  %v2072_v23 = vld [vmem:[#allocation2 + $0x120] sm:$0xff] }
 0x28a   : > { %v6638_v26 = vadd.f32 %v2218_v10, %v2022_v41  ;;  %5222 = vmatmul.msk.bf16.gmra.mxu2 %vm575_vm1, %v1649_v15  ;;  %v2073_v41 = vld [vmem:[#allocation2 + $0x128] sm:$0xff] }
 0x28b   : > { %v2023_v19 = vadd.f32 %v1950_v47, %v1849_v62  ;;  %v1698_v47 = vpack.c.bf16 %v1679_v17, %v1678_v59  ;;  %v2112_v59 = vld [vmem:[#allocation3 + $0xc0] sm:$0xff]  ;;  %v2113_v17 = vld [vmem:[#allocation3 + $0xc8] sm:$0xff] }
 0x28d   : > { %v1953_v63 = vpop.f32.mrf.mxu3 }
 0x28e   : > { %v1554_v54 = vpop.f32.mrf.mxu1 }
 0x28f   : > { %v6633_v57 = vadd.f32 %v1554_v54, %v6502_v32  ;;  %v1697_v32 = vpack.c.bf16 %v1677_v25, %v1676_v35  ;;  %v1779_v43 = vpop.f32.mrf.mxu2  ;;  %v2110_v35 = vld [vmem:[#allocation3 + $0xa8] sm:$0xff]  ;;  %v2111_v25 = vld [vmem:[#allocation3 + $0xb0] sm:$0xff] }
 0x290   : > { %v1850_v36 = vadd.f32 %v1779_v43, %v6441_v9  ;;  %v2136_v43 = vpack.c.bf16 %v2111_v25, %v2110_v35 }
 0x291   : > { %5266 = vmatmul.msk.bf16.gmra.mxu1 %vm575_vm1, %v2134_v29  ;;  %5239 = vmatmul.msk.bf16.gmra.mxu3 %vm575_vm1, %v1697_v32  ;;  %v2220_v2 = vpop.f32.mrf.mxu0 }
 0x292   : > { %v2024_v48 = vadd.f32 %v1953_v63, %v1850_v36  ;;  %v6647_v6 = vadd.f32 %v2220_v2, %v2023_v19  ;;  %v1632_v36 = vld [vmem:[#allocation2 + $0x13a] sm:$0xff]  ;;  %v1680_v2 = vld [vmem:[#allocation3 + $0x13a] sm:$0xff] }
 0x295   : > { %v1955_v54 = vpop.f32.mrf.mxu3 }
 0x296   : > { %v1556_v60 = vpop.f32.mrf.mxu1 }
 0x297   : > { %v6643_v3 = vadd.f32 %v1556_v60, %v6512_v61  ;;  %v1631_v61 = vld [vmem:[#allocation2 + $0x12a] sm:$0xff]  ;;  %v1781_v8 = vpop.f32.mrf.mxu2 }
 0x298   : > { %v1851_v29 = vadd.f32 %v1781_v8, %v6453_v33  ;;  %v1650_v55 = vpack.c.bf16 %v1631_v61, %v1630_v28  ;;  %v2074_v8 = vld [vmem:[#allocation2 + $0x138] sm:$0xff] }
 0x299   : > { %v2223_v9 = vpop.f32.mrf.mxu0 }
 0x29a   : > { %v2025_v24 = vadd.f32 %v1955_v54, %v1851_v29  ;;  %v6654_v62 = vadd.f32 %v2223_v9, %v2024_v48  ;;  %5223 = vmatmul.msk.bf16.gmra.mxu2 %vm575_vm1, %v1650_v55  ;;  %v1681_v48 = vld [vmem:[#allocation3 + $0x142] sm:$0xff] }
 0x29b   : > { %v1699_v61 = vpack.c.bf16 %v1681_v48, %v1680_v2 }
 0x29d   : > { %v1958_v19 = vpop.f32.mrf.mxu3 }
 0x29e   : > { %v1559_v49 = vpop.f32.mrf.mxu1 }
 0x29f   : > { %v6650_v14 = vadd.f32 %v1559_v49, %v6525_v37  ;;  %v2093_v37 = vpack.c.bf16 %v2073_v41, %v2072_v23  ;;  %v1784_v33 = vpop.f32.mrf.mxu2 }
 0x2a0   : > { %v1852_v0 = vadd.f32 %v1784_v33, %v6462_v58  ;;  %v2137_v33 = vpack.c.bf16 %v2113_v17, %v2112_v59 }
 0x2a1   : > { %5267 = vmatmul.msk.bf16.gmra.mxu1 %vm575_vm1, %v2135_v5  ;;  %5256 = vmatmul.msk.bf16.gmra.mxu0 %vm575_vm1, %v2093_v37  ;;  %v2225_v32 = vpop.f32.mrf.mxu0  ;;  %v2075_v5 = vld [vmem:[#allocation2 + $0x140] sm:$0xff] }
 0x2a2   : > { %5240 = vmatmul.msk.bf16.gmra.mxu3 %vm575_vm1, %v1698_v47  ;;  %v2026_v50 = vadd.f32 %v1958_v19, %v1852_v0  ;;  %v6663_v60 = vadd.f32 %v2225_v32, %v2025_v24  ;;  %v1634_v0 = vld [vmem:[#allocation2 + $0x152] sm:$0xff]  ;;  %v1682_v32 = vld [vmem:[#allocation3 + $0x152] sm:$0xff] }
 0x2a5   : > { %v1960_v49 = vpop.f32.mrf.mxu3 }
 0x2a6   : > { %v1561_v10 = vpop.f32.mrf.mxu1 }
 0x2a7   : > { %v6659_v15 = vadd.f32 %v1561_v10, %v6535_v44  ;;  %v1633_v44 = vld [vmem:[#allocation2 + $0x142] sm:$0xff]  ;;  %v1786_v63 = vpop.f32.mrf.mxu2 }
 0x2a8   : > { %v1853_v58 = vadd.f32 %v1786_v63, %v6475_v7  ;;  %v1651_v54 = vpack.c.bf16 %v1633_v44, %v1632_v36  ;;  %v2076_v63 = vld [vmem:[#allocation2 + $0x150] sm:$0xff] }
 0x2a9   : > { %v2228_v28 = vpop.f32.mrf.mxu0 }
 0x2aa   : > { %v2027_v41 = vadd.f32 %v1960_v49, %v1853_v58  ;;  %v6670_v29 = vadd.f32 %v2228_v28, %v2026_v50  ;;  %5224 = vmatmul.msk.bf16.gmra.mxu2 %vm575_vm1, %v1651_v54  ;;  %v1683_v50 = vld [vmem:[#allocation3 + $0x15a] sm:$0xff] }
 0x2ab   : > { %v1700_v44 = vpack.c.bf16 %v1683_v50, %v1682_v32  ;;  %v2114_v28 = vld [vmem:[#allocation3 + $0xd8] sm:$0xff] }
 0x2ad   : > { %v1963_v24 = vpop.f32.mrf.mxu3 }
 0x2ae   : > { %v1564_v56 = vpop.f32.mrf.mxu1 }
 0x2af   : > { %v6666_v21 = vadd.f32 %v1564_v56, %v6546_v11  ;;  %v2094_v11 = vpack.c.bf16 %v2075_v5, %v2074_v8  ;;  %v1789_v7 = vpop.f32.mrf.mxu2 }
 0x2b0   : > { %v1854_v23 = vadd.f32 %v1789_v7, %v6485_v42 }
 0x2b1   : > { %5268 = vmatmul.msk.bf16.gmra.mxu1 %vm575_vm1, %v2136_v43  ;;  %5257 = vmatmul.msk.bf16.gmra.mxu0 %vm575_vm1, %v2094_v11  ;;  %v2230_v47 = vpop.f32.mrf.mxu0  ;;  %v2077_v43 = vld [vmem:[#allocation2 + $0x158] sm:$0xff] }
 0x2b2   : > { %5241 = vmatmul.msk.bf16.gmra.mxu3 %vm575_vm1, %v1699_v61  ;;  %v2028_v37 = vadd.f32 %v1963_v24, %v1854_v23  ;;  %v6679_v10 = vadd.f32 %v2230_v47, %v2027_v41  ;;  %v2115_v61 = vld [vmem:[#allocation3 + $0xe0] sm:$0xff]  ;;  %v1684_v47 = vld [vmem:[#allocation3 + $0x16a] sm:$0xff] }
 0x2b3   : > { %v2138_v7 = vpack.c.bf16 %v2115_v61, %v2114_v28  ;;  %v1636_v23 = vld [vmem:[#allocation2 + $0x16a] sm:$0xff] }
 0x2b5   : > { %v1965_v56 = vpop.f32.mrf.mxu3 }
 0x2b6   : > { %v1566_v9 = vpop.f32.mrf.mxu1 }
 0x2b7   : > { %v6675_v55 = vadd.f32 %v1566_v9, %v6555_v45  ;;  %v1635_v45 = vld [vmem:[#allocation2 + $0x15a] sm:$0xff]  ;;  %v1791_v19 = vpop.f32.mrf.mxu2 }
 0x2b8   : > { %v1855_v42 = vadd.f32 %v1791_v19, %v6498_v53  ;;  %v1652_v5 = vpack.c.bf16 %v1635_v45, %v1634_v0  ;;  %v2078_v19 = vld [vmem:[#allocation2 + $0x168] sm:$0xff] }
 0x2b9   : > { %v2233_v36 = vpop.f32.mrf.mxu0 }
 0x2ba   : > { %v2029_v2 = vadd.f32 %v1965_v56, %v1855_v42  ;;  %v6686_v48 = vadd.f32 %v2233_v36, %v2028_v37  ;;  %5225 = vmatmul.msk.bf16.gmra.mxu2 %vm575_vm1, %v1652_v5  ;;  %v1685_v37 = vld [vmem:[#allocation3 + $0x172] sm:$0xff] }
 0x2bb   : > { %v1701_v45 = vpack.c.bf16 %v1685_v37, %v1684_v47  ;;  %v2116_v36 = vld [vmem:[#allocation3 + $0xf0] sm:$0xff] }
 0x2bd   : > { %v1968_v41 = vpop.f32.mrf.mxu3 }
 0x2be   : > { %v1569_v35 = vpop.f32.mrf.mxu1 }
 0x2bf   : > { %v6682_v25 = vadd.f32 %v1569_v35, %v6568_v52  ;;  %v2095_v52 = vpack.c.bf16 %v2077_v43, %v2076_v63  ;;  %v1794_v53 = vpop.f32.mrf.mxu2 }
 0x2c0   : > { %v1856_v8 = vadd.f32 %v1794_v53, %v6508_v1 }
 0x2c1   : > { %5269 = vmatmul.msk.bf16.gmra.mxu1 %vm575_vm1, %v2137_v33  ;;  %5258 = vmatmul.msk.bf16.gmra.mxu0 %vm575_vm1, %v2095_v52  ;;  %v2235_v54 = vpop.f32.mrf.mxu0  ;;  %v2079_v33 = vld [vmem:[#allocation2 + $0x170] sm:$0xff] }
 0x2c2   : > { %5242 = vmatmul.msk.bf16.gmra.mxu3 %vm575_vm1, %v1700_v44  ;;  %v2030_v11 = vadd.f32 %v1968_v41, %v1856_v8  ;;  %v6695_v9 = vadd.f32 %v2235_v54, %v2029_v2  ;;  %v2117_v44 = vld [vmem:[#allocation3 + $0xf8] sm:$0xff]  ;;  %v2080_v41 = vld [vmem:[#allocation2 + $0x180] sm:$0xff] }
 0x2c3   : > { %v2139_v53 = vpack.c.bf16 %v2117_v44, %v2116_v36  ;;  %v2495_v8 = vld [vmem:[#allocation2 + $0x21] sm:$0xff] }
 0x2c4   : > { %v2081_v54 = vld [vmem:[#allocation2 + $0x188] sm:$0xff]  ;;  %v2119_v36 = vld [vmem:[#allocation3 + $0x110] sm:$0xff] }
 0x2c5   : > { %v1970_v35 = vpop.f32.mrf.mxu3 }
 0x2c6   : > { %v1571_v58 = vpop.f32.mrf.mxu1 }
 0x2c7   : > { %v6691_v49 = vadd.f32 %v1571_v58, %v6579_v39  ;;  %v1637_v39 = vld [vmem:[#allocation2 + $0x172] sm:$0xff]  ;;  %v1796_v24 = vpop.f32.mrf.mxu2 }
 0x2c8   : > { %v1857_v1 = vadd.f32 %v1796_v24, %v6521_v30  ;;  %v1653_v43 = vpack.c.bf16 %v1637_v39, %v1636_v23  ;;  %v2542_v39 = vld [vmem:[#allocation3 + $0x19] sm:$0xff]  ;;  %v2543_v24 = vld [vmem:[#allocation3 + $0x21] sm:$0xff] }
 0x2c9   : > { %v2238_v0 = vpop.f32.mrf.mxu0 }
 0x2ca   : > { %v2031_v32 = vadd.f32 %v1970_v35, %v1857_v1  ;;  %v6702_v50 = vadd.f32 %v2238_v0, %v2030_v11  ;;  %5226 = vmatmul.msk.bf16.gmra.mxu2 %vm575_vm1, %v1653_v43  ;;  %v5312_v0 = vld [vmem:[%s7719_s3 + $0xa] sm:$0x3] }
 0x2cb   : > { %v5329_v43 = vld [vmem:[%s7720_s4 + $0xa] sm:$0x3] }
 0x2ce   : > { %v2382_v59 = vpop.f32.mrf.mxu1 }
 0x2cf   : > { %v6698_v17 = vadd.f32 %v2382_v59, %v6600_v4  ;;  %v2096_v4 = vpack.c.bf16 %v2079_v33, %v2078_v19  ;;  %v1799_v30 = vpop.f32.mrf.mxu2  ;;  %v2097_v33 = vpack.c.bf16 %v2081_v54, %v2080_v41  ;;  %v2939_v41 = vld [vmem:[#allocation2 + $0x22] sm:$0xff] }
 0x2d0   : > { %v1858_v63 = vadd.f32 %v1799_v30, %v6531_v16  ;;  %v2494_v16 = vld [vmem:[#allocation2 + $0x19] sm:$0xff] }
 0x2d1   : > { %5270 = vmatmul.msk.bf16.gmra.mxu1 %vm575_vm1, %v2138_v7  ;;  %5259 = vmatmul.msk.bf16.gmra.mxu0 %vm575_vm1, %v2096_v4  ;;  %v2240_v5 = vpop.f32.mrf.mxu0  ;;  %v2526_v23 = vpack.c.bf16 %v2495_v8, %v2494_v16  ;;  %v2118_v30 = vld [vmem:[#allocation3 + $0x108] sm:$0xff] }
 0x2d2   : > { %5243 = vmatmul.msk.bf16.gmra.mxu3 %vm575_vm1, %v1701_v45  ;;  %v6711_v58 = vadd.f32 %v2240_v5, %v2031_v32  ;;  %v5363_v45 = vld [vmem:[%s7720_s4 + $0xc] sm:$0x3]  ;;  %v3085_v32 = vsel %vm929_vm0, %v5312_v0, 0  ;;  %v2120_v0 = vld [vmem:[#allocation3 + $0x120] sm:$0xff] }
 0x2d3   : > { %3094 = vmatpush.bf16.msrb.mxu0 %v3085_v32 }
 0x2d4   : > { %v1973_v2 = vpop.f32.mrf.mxu3 }
 0x2d5   : > { %v2032_v52 = vadd.f32 %v1973_v2, %v1858_v63 }
 0x2d6   : > { %v2384_v42 = vpop.f32.mrf.mxu1 }
 0x2d7   : > { %v6707_v56 = vadd.f32 %v2384_v42, %v6611_v22  ;;  %v1801_v22 = vpop.f32.mrf.mxu2  ;;  %v3259_v42 = vsel %vm929_vm0, %v5329_v43, 0 }
 0x2d8   : > { %v1859_v11 = vadd.f32 %v1801_v22, %v6542_v31  ;;  %v5346_v31 = vld [vmem:[%s7719_s3 + $0xc] sm:$0x3]  ;;  %3268 = vmatpush.bf16.msrb.mxu1 %v3259_v42  ;;  %v2938_v22 = vld [vmem:[#allocation2 + $0x1a] sm:$0xff] }
 0x2d9   : > { %v2243_v59 = vpop.f32.mrf.mxu0  ;;  %v3531_v19 = vsel %vm929_vm0, %v5346_v31, 0 }
 0x2da   : > { %v6718_v37 = vadd.f32 %v2243_v59, %v2032_v52  ;;  %5279 = vmatmul.msk.bf16.vlgmr.msra.gmra.mxu2 %vm575_vm1, %v2526_v23  ;;  %v2496_v59 = vld [vmem:[#allocation2 + $0x31] sm:$0xff]  ;;  %v2544_v23 = vld [vmem:[#allocation3 + $0x31] sm:$0xff] }
 0x2db   : > { %3540 = vmatpush.bf16.msrb.mxu2 %v3531_v19 }
 0x2dc   : > { %v1975_v7 = vpop.f32.mrf.mxu3 }
 0x2dd   : > { %v2033_v47 = vadd.f32 %v1975_v7, %v1859_v11  ;;  %v2497_v11 = vld [vmem:[#allocation2 + $0x39] sm:$0xff] }
 0x2de   : > { %v2387_v28 = vpop.f32.mrf.mxu1 }
 0x2df   : > { %v6714_v61 = vadd.f32 %v2387_v28, %v6619_v38  ;;  %v2574_v38 = vpack.c.bf16 %v2543_v24, %v2542_v39  ;;  %v1804_v4 = vpop.f32.mrf.mxu2  ;;  %v2545_v39 = vld [vmem:[#allocation3 + $0x39] sm:$0xff]  ;;  %v2970_v24 = vpack.c.bf16 %v2939_v41, %v2938_v22  ;;  %v2546_v22 = vld [vmem:[#allocation3 + $0x49] sm:$0xff]  ;;  %v2547_v41 = vld [vmem:[#allocation3 + $0x51] sm:$0xff] }
 0x2e0   : > { %v1860_v44 = vadd.f32 %v1804_v4, %v6550_v18 }
 0x2e1   : > { %5271 = vmatmul.msk.bf16.gmra.mxu1 %vm575_vm1, %v2139_v53  ;;  %5260 = vmatmul.msk.bf16.gmra.mxu0 %vm575_vm1, %v2097_v33  ;;  %v2245_v2 = vpop.f32.mrf.mxu0  ;;  %v2140_v53 = vpack.c.bf16 %v2119_v36, %v2118_v30 }
 0x2e2   : > { %5296 = vmatmul.msk.bf16.vlgmr.msra.gmra.mxu3 %vm575_vm1, %v2574_v38  ;;  %v6743_v52 = vadd.f32 %v2245_v2, %v2033_v47  ;;  %v2527_v38 = vpack.c.bf16 %v2497_v11, %v2496_v59  ;;  %v2499_v2 = vld [vmem:[#allocation2 + $0x51] sm:$0xff] }
 0x2e4   : > { %v1978_v63 = vpop.f32.mrf.mxu3 }
 0x2e5   : > { %v2034_v5 = vadd.f32 %v1978_v63, %v1860_v44  ;;  %v2940_v44 = vld [vmem:[#allocation2 + $0x32] sm:$0xff] }
 0x2e6   : > { %v2389_v1 = vpop.f32.mrf.mxu1 }
 0x2e7   : > { %v6723_v35 = vadd.f32 %v2389_v1, %v6630_v40  ;;  %v3705_v40 = vsel %vm929_vm0, %v5363_v45, 0  ;;  %v1806_v54 = vpop.f32.mrf.mxu2  ;;  %v2121_v45 = vld [vmem:[#allocation3 + $0x128] sm:$0xff] }
 0x2e8   : > { %3714 = vmatpush.bf16.msrb.mxu3 %v3705_v40  ;;  %v1861_v7 = vadd.f32 %v1806_v54, %v6564_v27  ;;  %v2141_v42 = vpack.c.bf16 %v2121_v45, %v2120_v0 }
 0x2e9   : > { %v2248_v16 = vpop.f32.mrf.mxu0 }
 0x2ea   : > { %v6750_v33 = vadd.f32 %v2248_v16, %v2034_v5  ;;  %5280 = vmatmul.msk.bf16.gmra.mxu2 %vm575_vm1, %v2527_v38 }
 0x2ec   : > { %v1980_v18 = vpop.f32.mrf.mxu3 }
 0x2ed   : > { %v2035_v47 = vadd.f32 %v1980_v18, %v1861_v7 }
 0x2ee   : > { %v2392_v28 = vpop.f32.mrf.mxu1 }
 0x2ef   : > { %v6746_v8 = vadd.f32 %v2392_v28, %v6638_v26  ;;  %v2575_v26 = vpack.c.bf16 %v2545_v39, %v2544_v23  ;;  %v1809_v27 = vpop.f32.mrf.mxu2  ;;  %v2498_v28 = vld [vmem:[#allocation2 + $0x49] sm:$0xff] }
 0x2f0   : > { %v1862_v19 = vadd.f32 %v1809_v27, %v6574_v46  ;;  %v2528_v18 = vpack.c.bf16 %v2499_v2, %v2498_v28  ;;  %v2122_v23 = vld [vmem:[#allocation3 + $0x138] sm:$0xff]  ;;  %v2123_v39 = vld [vmem:[#allocation3 + $0x140] sm:$0xff] }
 0x2f1   : > { %5272 = vmatmul.msk.bf16.gmra.mxu1 %vm575_vm1, %v2140_v53  ;;  %5313 = vmatmul.msk.bf16.vlgmr.msrb.gmra.mxu0 %vm575_vm1, %v2970_v24  ;;  %v2250_v40 = vpop.f32.mrf.mxu0  ;;  %v2142_v27 = vpack.c.bf16 %v2123_v39, %v2122_v23  ;;  %v748_v28 = vld [vmem:[%s5749_s10 + $0xf0] sm:$0xff] }
 0x2f2   : > { %5297 = vmatmul.msk.bf16.gmra.mxu3 %vm575_vm1, %v2575_v26  ;;  %v6759_v4 = vadd.f32 %v2250_v40, %v2035_v47  ;;  %v2501_v40 = vld [vmem:[#allocation2 + $0x69] sm:$0xff]  ;;  %781 = vst.msk [vmem:[#allocation3 + $0x181] sm:$0xff] %vm575_vm1, %v748_v28 }
 0x2f4   : > { %v1983_v32 = vpop.f32.mrf.mxu3 }
 0x2f5   : > { %v2036_v43 = vadd.f32 %v1983_v32, %v1862_v19  ;;  %v2942_v19 = vld [vmem:[#allocation2 + $0x4a] sm:$0xff] }
 0x2f6   : > { %v2394_v1 = vpop.f32.mrf.mxu1 }
 0x2f7   : > { %v6755_v31 = vadd.f32 %v2394_v1, %v6647_v6  ;;  %v2941_v6 = vld [vmem:[#allocation2 + $0x3a] sm:$0xff]  ;;  %v1811_v63 = vpop.f32.mrf.mxu2 }
 0x2f8   : > { %v1863_v5 = vadd.f32 %v1811_v63, %v6588_v51  ;;  %v2971_v54 = vpack.c.bf16 %v2941_v6, %v2940_v44  ;;  %v2548_v44 = vld [vmem:[#allocation3 + $0x61] sm:$0xff]  ;;  %v2549_v6 = vld [vmem:[#allocation3 + $0x69] sm:$0xff] }
 0x2f9   : > { %v2253_v46 = vpop.f32.mrf.mxu0 }
 0x2fa   : > { %v6766_v7 = vadd.f32 %v2253_v46, %v2036_v43  ;;  %5281 = vmatmul.msk.bf16.gmra.mxu2 %vm575_vm1, %v2528_v18 }
 0x2fc   : > { %v1985_v53 = vpop.f32.mrf.mxu3 }
 0x2fd   : > { %v2037_v11 = vadd.f32 %v1985_v53, %v1863_v5  ;;  %v2577_v53 = vpack.c.bf16 %v2549_v6, %v2548_v44 }
 0x2fe   : > { %v2397_v30 = vpop.f32.mrf.mxu1 }
 0x2ff   : > { %v6762_v36 = vadd.f32 %v2397_v30, %v6654_v62  ;;  %v2576_v62 = vpack.c.bf16 %v2547_v41, %v2546_v22  ;;  %v1814_v51 = vpop.f32.mrf.mxu2  ;;  %v2500_v30 = vld [vmem:[#allocation2 + $0x61] sm:$0xff]  ;;  %v749_v22 = vld [vmem:[%s5749_s10 + $0xf8] sm:$0xff] }
 0x300   : > { %v1864_v24 = vadd.f32 %v1814_v51, %v6596_v13  ;;  %782 = vst.msk [vmem:[#allocation3 + $0x189] sm:$0xff] %vm575_vm1, %v749_v22 }
 0x301   : > { %5273 = vmatmul.msk.bf16.gmra.mxu1 %vm575_vm1, %v2141_v42  ;;  %5314 = vmatmul.msk.bf16.gmra.mxu0 %vm575_vm1, %v2971_v54  ;;  %v2255_v38 = vpop.f32.mrf.mxu0  ;;  %v2124_v54 = vld [vmem:[#allocation3 + $0x150] sm:$0xff] }
 0x302   : > { %5298 = vmatmul.msk.bf16.gmra.mxu3 %vm575_vm1, %v2576_v62  ;;  %v6775_v1 = vadd.f32 %v2255_v38, %v2037_v11  ;;  %v2125_v11 = vld [vmem:[#allocation3 + $0x158] sm:$0xff] }
 0x303   : > { %v2143_v39 = vpack.c.bf16 %v2125_v11, %v2124_v54  ;;  %v2945_v38 = vld [vmem:[#allocation2 + $0x6a] sm:$0xff] }
 0x304   : > { %v1988_v47 = vpop.f32.mrf.mxu3 }
 0x305   : > { %v2038_v26 = vadd.f32 %v1988_v47, %v1864_v24  ;;  %v2944_v47 = vld [vmem:[#allocation2 + $0x62] sm:$0xff] }
 0x306   : > { %v2399_v16 = vpop.f32.mrf.mxu1 }
 0x307   : > { %v6771_v59 = vadd.f32 %v2399_v16, %v6663_v60  ;;  %v2943_v60 = vld [vmem:[#allocation2 + $0x52] sm:$0xff]  ;;  %v1816_v32 = vpop.f32.mrf.mxu2 }
 0x308   : > { %v1865_v13 = vadd.f32 %v1816_v32, %v6606_v20  ;;  %v2972_v63 = vpack.c.bf16 %v2943_v60, %v2942_v19  ;;  %v2502_v60 = vld [vmem:[#allocation2 + $0x79] sm:$0xff]  ;;  %v2550_v32 = vld [vmem:[#allocation3 + $0x79] sm:$0xff] }
 0x309   : > { %v2258_v42 = vpop.f32.mrf.mxu0 }
 0x30a   : > { %v6782_v5 = vadd.f32 %v2258_v42, %v2038_v26 }
 0x30c   : > { %v1990_v43 = vpop.f32.mrf.mxu3 }
 0x30d   : > { %v2039_v2 = vadd.f32 %v1990_v43, %v1865_v13  ;;  %v2973_v13 = vpack.c.bf16 %v2945_v38, %v2944_v47  ;;  %v2552_v47 = vld [vmem:[#allocation3 + $0x91] sm:$0xff]  ;;  %v2553_v38 = vld [vmem:[#allocation3 + $0x99] sm:$0xff] }
 0x30e   : > { %v2402_v0 = vpop.f32.mrf.mxu1 }
 0x30f   : > { %v6778_v45 = vadd.f32 %v2402_v0, %v6670_v29  ;;  %v2529_v29 = vpack.c.bf16 %v2501_v40, %v2500_v30  ;;  %v1819_v41 = vpop.f32.mrf.mxu2  ;;  %v2551_v40 = vld [vmem:[#allocation3 + $0x81] sm:$0xff] }
 0x310   : > { %v1866_v18 = vadd.f32 %v1819_v41, %v6614_v34 }
 0x311   : > { %5274 = vmatmul.msk.bf16.gmra.mxu1 %vm575_vm1, %v2142_v27  ;;  %5282 = vmatmul.msk.bf16.gmra.mxu2 %vm575_vm1, %v2529_v29  ;;  %v2260_v16 = vpop.f32.mrf.mxu0  ;;  %v2503_v27 = vld [vmem:[#allocation2 + $0x81] sm:$0xff] }
 0x312   : > { %5315 = vmatmul.msk.bf16.gmra.mxu0 %vm575_vm1, %v2972_v63  ;;  %5299 = vmatmul.msk.bf16.gmra.mxu3 %vm575_vm1, %v2577_v53  ;;  %v6795_v23 = vadd.f32 %v2260_v16, %v2039_v2  ;;  %v2530_v30 = vpack.c.bf16 %v2503_v27, %v2502_v60  ;;  %v2126_v63 = vld [vmem:[#allocation3 + $0x168] sm:$0xff]  ;;  %v2127_v2 = vld [vmem:[#allocation3 + $0x170] sm:$0xff] }
 0x313   : > { %v2144_v41 = vpack.c.bf16 %v2127_v2, %v2126_v63  ;;  %v2505_v16 = vld [vmem:[#allocation2 + $0x99] sm:$0xff] }
 0x314   : > { %v1993_v62 = vpop.f32.mrf.mxu3 }
 0x315   : > { %v2040_v51 = vadd.f32 %v1993_v62, %v1866_v18  ;;  %v2946_v18 = vld [vmem:[#allocation2 + $0x7a] sm:$0xff] }
 0x316   : > { %v2404_v46 = vpop.f32.mrf.mxu1 }
 0x317   : > { %v6789_v20 = vadd.f32 %v2404_v46, %v6679_v10  ;;  %v1821_v26 = vpop.f32.mrf.mxu2 }
 0x318   : > { %v1867_v0 = vadd.f32 %v1821_v26, %v6625_v12 }
 0x31c   : > { %v1995_v19 = vpop.f32.mrf.mxu3 }
 0x31d   : > { %v2041_v43 = vadd.f32 %v1995_v19, %v1867_v0 }
 0x31e   : > { %v2407_v24 = vpop.f32.mrf.mxu1  ;;  %v2263_v34 = vpop.f32.mrf.mxu0 }
 0x31f   : > { %v6798_v10 = vadd.f32 %v2407_v24, %v6686_v48  ;;  %v6802_v42 = vadd.f32 %v2263_v34, %v2040_v51  ;;  %v2578_v48 = vpack.c.bf16 %v2551_v40, %v2550_v32  ;;  %v1824_v12 = vpop.f32.mrf.mxu2  ;;  %v2504_v24 = vld [vmem:[#allocation2 + $0x91] sm:$0xff] }
 0x320   : > { %v1868_v29 = vadd.f32 %v1824_v12, %v6633_v57  ;;  %v2531_v19 = vpack.c.bf16 %v2505_v16, %v2504_v24  ;;  %v2128_v32 = vld [vmem:[#allocation3 + $0x180] sm:$0xff]  ;;  %v2129_v40 = vld [vmem:[#allocation3 + $0x188] sm:$0xff] }
 0x321   : > { %5275 = vmatmul.msk.bf16.gmra.mxu1 %vm575_vm1, %v2143_v39  ;;  %5283 = vmatmul.msk.bf16.gmra.mxu2 %vm575_vm1, %v2530_v30  ;;  %v2145_v12 = vpack.c.bf16 %v2129_v40, %v2128_v32 }
 0x322   : > { %5316 = vmatmul.msk.bf16.gmra.mxu0 %vm575_vm1, %v2973_v13  ;;  %5300 = vmatmul.msk.bf16.gmra.mxu3 %vm575_vm1, %v2578_v48 }
 0x325   : > { %v1998_v53 = vpop.f32.mrf.mxu3 }
 0x326   : > { %v2409_v44 = vpop.f32.mrf.mxu1  ;;  %v2265_v46 = vpop.f32.mrf.mxu0  ;;  %v2042_v28 = vadd.f32 %v1998_v53, %v1868_v29  ;;  %v2948_v29 = vld [vmem:[#allocation2 + $0x92] sm:$0xff] }
 0x327   : > { %v6807_v6 = vadd.f32 %v2409_v44, %v6695_v9  ;;  %v6811_v22 = vadd.f32 %v2265_v46, %v2041_v43  ;;  %v2947_v9 = vld [vmem:[#allocation2 + $0x82] sm:$0xff]  ;;  %v1826_v62 = vpop.f32.mrf.mxu2  ;;  %v2507_v46 = vld [vmem:[#allocation2 + $0xb1] sm:$0xff] }
 0x328   : > { %v1869_v51 = vadd.f32 %v1826_v62, %v6643_v3  ;;  %v2974_v26 = vpack.c.bf16 %v2947_v9, %v2946_v18  ;;  %v2554_v18 = vld [vmem:[#allocation3 + $0xa9] sm:$0xff]  ;;  %v2555_v9 = vld [vmem:[#allocation3 + $0xb1] sm:$0xff] }
 0x32d   : > { %v2000_v39 = vpop.f32.mrf.mxu3 }
 0x32e   : > { %v2412_v54 = vpop.f32.mrf.mxu1  ;;  %v2268_v57 = vpop.f32.mrf.mxu0  ;;  %v2043_v27 = vadd.f32 %v2000_v39, %v1869_v51 }
 0x32f   : > { %v6814_v11 = vadd.f32 %v2412_v54, %v6702_v50  ;;  %v6818_v0 = vadd.f32 %v2268_v57, %v2042_v28  ;;  %v2579_v50 = vpack.c.bf16 %v2553_v38, %v2552_v47  ;;  %v1829_v3 = vpop.f32.mrf.mxu2  ;;  %v2506_v54 = vld [vmem:[#allocation2 + $0xa9] sm:$0xff]  ;;  %v2987_v38 = vld [vmem:[#allocation3 + $0x22] sm:$0xff] }
 0x330   : > { %v1870_v13 = vadd.f32 %v1829_v3, %v6650_v14  ;;  %v2532_v39 = vpack.c.bf16 %v2507_v46, %v2506_v54  ;;  %v2986_v47 = vld [vmem:[#allocation3 + $0x1a] sm:$0xff] }
 0x331   : > { %5276 = vmatmul.msk.bf16.gmra.mxu1 %vm575_vm1, %v2144_v41  ;;  %5284 = vmatmul.msk.bf16.gmra.mxu2 %vm575_vm1, %v2531_v19  ;;  %v3018_v3 = vpack.c.bf16 %v2987_v38, %v2986_v47 }
 0x332   : > { %5317 = vmatmul.msk.bf16.gmra.mxu0 %vm575_vm1, %v2974_v26  ;;  %5301 = vmatmul.msk.bf16.gmra.mxu3 %vm575_vm1, %v2579_v50 }
 0x335   : > { %v2003_v43 = vpop.f32.mrf.mxu3 }
 0x336   : > { %v2414_v34 = vpop.f32.mrf.mxu1  ;;  %v2270_v30 = vpop.f32.mrf.mxu0  ;;  %v2044_v48 = vadd.f32 %v2003_v43, %v1870_v13  ;;  %v2950_v13 = vld [vmem:[#allocation2 + $0xaa] sm:$0xff] }
 0x337   : > { %v6823_v60 = vadd.f32 %v2414_v34, %v6711_v58  ;;  %v6827_v44 = vadd.f32 %v2270_v30, %v2043_v27  ;;  %v2949_v58 = vld [vmem:[#allocation2 + $0x9a] sm:$0xff]  ;;  %v1831_v53 = vpop.f32.mrf.mxu2  ;;  %v2509_v30 = vld [vmem:[#allocation2 + $0xc9] sm:$0xff] }
 0x338   : > { %v1871_v28 = vadd.f32 %v1831_v53, %v6659_v15  ;;  %v2975_v62 = vpack.c.bf16 %v2949_v58, %v2948_v29  ;;  %v2556_v29 = vld [vmem:[#allocation3 + $0xc1] sm:$0xff]  ;;  %v2557_v58 = vld [vmem:[#allocation3 + $0xc9] sm:$0xff] }
 0x33d   : > { %v2005_v41 = vpop.f32.mrf.mxu3 }
 0x33e   : > { %v2417_v63 = vpop.f32.mrf.mxu1  ;;  %v2273_v14 = vpop.f32.mrf.mxu0  ;;  %v2045_v16 = vadd.f32 %v2005_v41, %v1871_v28 }
 0x33f   : > { %v6830_v2 = vadd.f32 %v2417_v63, %v6718_v37  ;;  %v6834_v51 = vadd.f32 %v2273_v14, %v2044_v48  ;;  %v2580_v37 = vpack.c.bf16 %v2555_v9, %v2554_v18  ;;  %v1834_v15 = vpop.f32.mrf.mxu2  ;;  %v2508_v63 = vld [vmem:[#allocation2 + $0xc1] sm:$0xff]  ;;  %v2989_v9 = vld [vmem:[#allocation3 + $0x3a] sm:$0xff] }
 0x340   : > { %v1872_v26 = vadd.f32 %v1834_v15, %v6666_v21  ;;  %v2533_v41 = vpack.c.bf16 %v2509_v30, %v2508_v63  ;;  %v2988_v18 = vld [vmem:[#allocation3 + $0x32] sm:$0xff] }
 0x341   : > { %5277 = vmatmul.msk.bf16.gmra.mxu1 %vm575_vm1, %v2145_v12  ;;  %5285 = vmatmul.msk.bf16.gmra.mxu2 %vm575_vm1, %v2532_v39  ;;  %v3019_v15 = vpack.c.bf16 %v2989_v9, %v2988_v18 }
 0x342   : > { %5318 = vmatmul.msk.bf16.gmra.mxu0 %vm575_vm1, %v2975_v62  ;;  %5302 = vmatmul.msk.bf16.gmra.mxu3 %vm575_vm1, %v2580_v37 }
 0x345   : > { %v2008_v27 = vpop.f32.mrf.mxu3 }
 0x346   : > { %v2419_v57 = vpop.f32.mrf.mxu1  ;;  %v2275_v19 = vpop.f32.mrf.mxu0  ;;  %v2046_v50 = vadd.f32 %v2008_v27, %v1872_v26  ;;  %v2952_v26 = vld [vmem:[#allocation2 + $0xc2] sm:$0xff] }
 0x347   : > { %v6839_v24 = vadd.f32 %v2419_v57, %v6743_v52  ;;  %v6843_v34 = vadd.f32 %v2275_v19, %v2045_v16  ;;  %v2951_v52 = vld [vmem:[#allocation2 + $0xb2] sm:$0xff]  ;;  %v1836_v43 = vpop.f32.mrf.mxu2  ;;  %v2511_v19 = vld [vmem:[#allocation2 + $0xe1] sm:$0xff] }
 0x348   : > { %v1873_v48 = vadd.f32 %v1836_v43, %v6675_v55  ;;  %v2976_v53 = vpack.c.bf16 %v2951_v52, %v2950_v13  ;;  %v2558_v13 = vld [vmem:[#allocation3 + $0xd9] sm:$0xff]  ;;  %v2559_v52 = vld [vmem:[#allocation3 + $0xe1] sm:$0xff] }
 0x34d   : > { %v2010_v12 = vpop.f32.mrf.mxu3 }
 0x34e   : > { %v2422_v32 = vpop.f32.mrf.mxu1  ;;  %v2278_v21 = vpop.f32.mrf.mxu0  ;;  %v2047_v46 = vadd.f32 %v2010_v12, %v1873_v48 }
 0x34f   : > { %v6846_v40 = vadd.f32 %v2422_v32, %v6750_v33  ;;  %v6850_v28 = vadd.f32 %v2278_v21, %v2046_v50  ;;  %v2581_v33 = vpack.c.bf16 %v2557_v58, %v2556_v29  ;;  %v1839_v55 = vpop.f32.mrf.mxu2  ;;  %v2510_v32 = vld [vmem:[#allocation2 + $0xd9] sm:$0xff]  ;;  %v2991_v58 = vld [vmem:[#allocation3 + $0x52] sm:$0xff] }
 0x350   : > { %v1874_v62 = vadd.f32 %v1839_v55, %v6682_v25  ;;  %v2534_v12 = vpack.c.bf16 %v2511_v19, %v2510_v32  ;;  %v2990_v29 = vld [vmem:[#allocation3 + $0x4a] sm:$0xff] }
 0x351   : > { %5330 = vmatmul.msk.bf16.vlgmr.msrb.gmra.mxu1 %vm575_vm1, %v3018_v3  ;;  %5286 = vmatmul.msk.bf16.gmra.mxu2 %vm575_vm1, %v2533_v41  ;;  %v3020_v55 = vpack.c.bf16 %v2991_v58, %v2990_v29 }
 0x352   : > { %5319 = vmatmul.msk.bf16.gmra.mxu0 %vm575_vm1, %v2976_v53  ;;  %5303 = vmatmul.msk.bf16.gmra.mxu3 %vm575_vm1, %v2581_v33 }
 0x355   : > { %v2013_v16 = vpop.f32.mrf.mxu3 }
 0x356   : > { %v2424_v14 = vpop.f32.mrf.mxu1  ;;  %v2280_v39 = vpop.f32.mrf.mxu0  ;;  %v2048_v37 = vadd.f32 %v2013_v16, %v1874_v62  ;;  %v2954_v62 = vld [vmem:[#allocation2 + $0xda] sm:$0xff] }
 0x357   : > { %v6855_v54 = vadd.f32 %v2424_v14, %v6759_v4  ;;  %v6859_v57 = vadd.f32 %v2280_v39, %v2047_v46  ;;  %v2953_v4 = vld [vmem:[#allocation2 + $0xca] sm:$0xff]  ;;  %v1841_v27 = vpop.f32.mrf.mxu2  ;;  %v2513_v39 = vld [vmem:[#allocation2 + $0xf9] sm:$0xff] }
 0x358   : > { %v1875_v50 = vadd.f32 %v1841_v27, %v6691_v49  ;;  %v2977_v43 = vpack.c.bf16 %v2953_v4, %v2952_v26  ;;  %v2560_v26 = vld [vmem:[#allocation3 + $0xf1] sm:$0xff]  ;;  %v2561_v4 = vld [vmem:[#allocation3 + $0xf9] sm:$0xff] }
 0x35d   : > { %v2015_v3 = vpop.f32.mrf.mxu3 }
 0x35e   : > { %v2427_v47 = vpop.f32.mrf.mxu1  ;;  %v2283_v25 = vpop.f32.mrf.mxu0  ;;  %v2049_v30 = vadd.f32 %v2015_v3, %v1875_v50 }
 0x35f   : > { %v6862_v38 = vadd.f32 %v2427_v47, %v6766_v7  ;;  %v6866_v48 = vadd.f32 %v2283_v25, %v2048_v37  ;;  %v2582_v7 = vpack.c.bf16 %v2559_v52, %v2558_v13  ;;  %v2652_v49 = vpop.f32.mrf.mxu2  ;;  %v2512_v47 = vld [vmem:[#allocation2 + $0xf1] sm:$0xff]  ;;  %v2993_v52 = vld [vmem:[#allocation3 + $0x6a] sm:$0xff] }
 0x360   : > { %v2732_v53 = vadd.f32 %v2652_v49, %v6698_v17  ;;  %v2535_v3 = vpack.c.bf16 %v2513_v39, %v2512_v47  ;;  %v2992_v13 = vld [vmem:[#allocation3 + $0x62] sm:$0xff] }
 0x361   : > { %5331 = vmatmul.msk.bf16.gmra.mxu1 %vm575_vm1, %v3019_v15  ;;  %5287 = vmatmul.msk.bf16.gmra.mxu2 %vm575_vm1, %v2534_v12  ;;  %v3021_v49 = vpack.c.bf16 %v2993_v52, %v2992_v13 }
 0x362   : > { %5320 = vmatmul.msk.bf16.gmra.mxu0 %vm575_vm1, %v2977_v43  ;;  %5304 = vmatmul.msk.bf16.gmra.mxu3 %vm575_vm1, %v2582_v7 }
 0x365   : > { %v2826_v46 = vpop.f32.mrf.mxu3 }
 0x366   : > { %v2429_v21 = vpop.f32.mrf.mxu1  ;;  %v2285_v41 = vpop.f32.mrf.mxu0  ;;  %v2906_v33 = vadd.f32 %v2826_v46, %v2732_v53  ;;  %v2956_v53 = vld [vmem:[#allocation2 + $0xf2] sm:$0xff] }
 0x367   : > { %v6871_v63 = vadd.f32 %v2429_v21, %v6775_v1  ;;  %v6875_v14 = vadd.f32 %v2285_v41, %v2049_v30  ;;  %v2955_v1 = vld [vmem:[#allocation2 + $0xe2] sm:$0xff]  ;;  %v2654_v16 = vpop.f32.mrf.mxu2  ;;  %v2515_v41 = vld [vmem:[#allocation2 + $0x111] sm:$0xff] }
 0x368   : > { %v2733_v37 = vadd.f32 %v2654_v16, %v6707_v56  ;;  %v2978_v27 = vpack.c.bf16 %v2955_v1, %v2954_v62  ;;  %v2562_v62 = vld [vmem:[#allocation3 + $0x109] sm:$0xff]  ;;  %v2563_v1 = vld [vmem:[#allocation3 + $0x111] sm:$0xff] }
 0x36d   : > { %v2828_v15 = vpop.f32.mrf.mxu3 }
 0x36e   : > { %v2432_v18 = vpop.f32.mrf.mxu1  ;;  %v3096_v17 = vpop.f32.mrf.mxu0  ;;  %v2907_v19 = vadd.f32 %v2828_v15, %v2733_v37 }
 0x36f   : > { %v6878_v9 = vadd.f32 %v2432_v18, %v6782_v5  ;;  %v6882_v50 = vadd.f32 %v3096_v17, %v2906_v33  ;;  %v2583_v5 = vpack.c.bf16 %v2561_v4, %v2560_v26  ;;  %v2657_v56 = vpop.f32.mrf.mxu2  ;;  %v2514_v18 = vld [vmem:[#allocation2 + $0x109] sm:$0xff]  ;;  %v2995_v4 = vld [vmem:[#allocation3 + $0x82] sm:$0xff] }
 0x370   : > { %v2734_v43 = vadd.f32 %v2657_v56, %v6714_v61  ;;  %v2536_v15 = vpack.c.bf16 %v2515_v41, %v2514_v18  ;;  %v2994_v26 = vld [vmem:[#allocation3 + $0x7a] sm:$0xff] }
 0x371   : > { %5332 = vmatmul.msk.bf16.gmra.mxu1 %vm575_vm1, %v3020_v55  ;;  %5288 = vmatmul.msk.bf16.gmra.mxu2 %vm575_vm1, %v2535_v3  ;;  %v3022_v56 = vpack.c.bf16 %v2995_v4, %v2994_v26 }
 0x372   : > { %5321 = vmatmul.msk.bf16.gmra.mxu0 %vm575_vm1, %v2978_v27  ;;  %5305 = vmatmul.msk.bf16.gmra.mxu3 %vm575_vm1, %v2583_v5 }
 0x375   : > { %v2831_v30 = vpop.f32.mrf.mxu3 }
 0x376   : > { %v2434_v25 = vpop.f32.mrf.mxu1  ;;  %v3098_v12 = vpop.f32.mrf.mxu0  ;;  %v2908_v7 = vadd.f32 %v2831_v30, %v2734_v43  ;;  %v2958_v43 = vld [vmem:[#allocation2 + $0x10a] sm:$0xff] }
 0x377   : > { %v6887_v32 = vadd.f32 %v2434_v25, %v6795_v23  ;;  %v6891_v21 = vadd.f32 %v3098_v12, %v2907_v19  ;;  %v2957_v23 = vld [vmem:[#allocation2 + $0xfa] sm:$0xff]  ;;  %v2659_v46 = vpop.f32.mrf.mxu2  ;;  %v2517_v12 = vld [vmem:[#allocation2 + $0x129] sm:$0xff] }
 0x378   : > { %v2735_v33 = vadd.f32 %v2659_v46, %v6723_v35  ;;  %v2979_v16 = vpack.c.bf16 %v2957_v23, %v2956_v53  ;;  %v2564_v53 = vld [vmem:[#allocation3 + $0x121] sm:$0xff]  ;;  %v2565_v23 = vld [vmem:[#allocation3 + $0x129] sm:$0xff] }
 0x37d   : > { %v2833_v55 = vpop.f32.mrf.mxu3 }
 0x37e   : > { %v2437_v29 = vpop.f32.mrf.mxu1  ;;  %v3101_v61 = vpop.f32.mrf.mxu0  ;;  %v2909_v39 = vadd.f32 %v2833_v55, %v2735_v33 }
 0x37f   : > { %v6894_v58 = vadd.f32 %v2437_v29, %v6802_v42  ;;  %v6898_v37 = vadd.f32 %v3101_v61, %v2908_v7  ;;  %v2584_v42 = vpack.c.bf16 %v2563_v1, %v2562_v62  ;;  %v2662_v35 = vpop.f32.mrf.mxu2  ;;  %v2516_v29 = vld [vmem:[#allocation2 + $0x121] sm:$0xff]  ;;  %v2997_v1 = vld [vmem:[#allocation3 + $0x9a] sm:$0xff] }
 0x380   : > { %v2736_v27 = vadd.f32 %v2662_v35, %v6746_v8  ;;  %v2537_v55 = vpack.c.bf16 %v2517_v12, %v2516_v29  ;;  %v2996_v62 = vld [vmem:[#allocation3 + $0x92] sm:$0xff] }
 0x381   : > { %5333 = vmatmul.msk.bf16.gmra.mxu1 %vm575_vm1, %v3021_v49  ;;  %5289 = vmatmul.msk.bf16.gmra.mxu2 %vm575_vm1, %v2536_v15  ;;  %v3023_v35 = vpack.c.bf16 %v2997_v1, %v2996_v62 }
 0x382   : > { %5322 = vmatmul.msk.bf16.gmra.mxu0 %vm575_vm1, %v2979_v16  ;;  %5306 = vmatmul.msk.bf16.gmra.mxu3 %vm575_vm1, %v2584_v42 }
 0x385   : > { %v2836_v19 = vpop.f32.mrf.mxu3 }
 0x386   : > { %v2439_v17 = vpop.f32.mrf.mxu1  ;;  %v3103_v3 = vpop.f32.mrf.mxu0  ;;  %v2910_v5 = vadd.f32 %v2836_v19, %v2736_v27  ;;  %v2960_v27 = vld [vmem:[#allocation2 + $0x122] sm:$0xff] }
 0x387   : > { %v6903_v47 = vadd.f32 %v2439_v17, %v6811_v22  ;;  %v6907_v25 = vadd.f32 %v3103_v3, %v2909_v39  ;;  %v2959_v22 = vld [vmem:[#allocation2 + $0x112] sm:$0xff]  ;;  %v2664_v30 = vpop.f32.mrf.mxu2  ;;  %v2519_v3 = vld [vmem:[#allocation2 + $0x141] sm:$0xff] }
 0x388   : > { %v2737_v7 = vadd.f32 %v2664_v30, %v6755_v31  ;;  %v2980_v46 = vpack.c.bf16 %v2959_v22, %v2958_v43  ;;  %v2566_v43 = vld [vmem:[#allocation3 + $0x139] sm:$0xff]  ;;  %v2567_v22 = vld [vmem:[#allocation3 + $0x141] sm:$0xff] }
 0x38d   : > { %v2838_v49 = vpop.f32.mrf.mxu3 }
 0x38e   : > { %v2442_v13 = vpop.f32.mrf.mxu1  ;;  %v2911_v41 = vadd.f32 %v2838_v49, %v2737_v7 }
 0x38f   : > { %v6910_v52 = vadd.f32 %v2442_v13, %v6818_v0  ;;  %v3106_v8 = vpop.f32.mrf.mxu0  ;;  %v2585_v0 = vpack.c.bf16 %v2565_v23, %v2564_v53  ;;  %v2518_v13 = vld [vmem:[#allocation2 + $0x139] sm:$0xff]  ;;  %v2999_v23 = vld [vmem:[#allocation3 + $0xb2] sm:$0xff] }
 0x390   : > { %v6914_v33 = vadd.f32 %v3106_v8, %v2910_v5  ;;  %v2538_v49 = vpack.c.bf16 %v2519_v3, %v2518_v13  ;;  %v2998_v53 = vld [vmem:[#allocation3 + $0xaa] sm:$0xff] }
 0x391   : > { %5334 = vmatmul.msk.bf16.gmra.mxu1 %vm575_vm1, %v3022_v56  ;;  %5290 = vmatmul.msk.bf16.gmra.mxu2 %vm575_vm1, %v2537_v55 }
 0x392   : > { %5323 = vmatmul.msk.bf16.gmra.mxu0 %vm575_vm1, %v2980_v46  ;;  %5307 = vmatmul.msk.bf16.gmra.mxu3 %vm575_vm1, %v2585_v0 }
 0x394   : > { %v2667_v31 = vpop.f32.mrf.mxu2 }
 0x395   : > { %v2738_v16 = vadd.f32 %v2667_v31, %v6762_v36  ;;  %v2841_v39 = vpop.f32.mrf.mxu3  ;;  %v3024_v31 = vpack.c.bf16 %v2999_v23, %v2998_v53 }
 0x396   : > { %v2444_v61 = vpop.f32.mrf.mxu1 }
 0x397   : > { %v6919_v18 = vadd.f32 %v2444_v61, %v6827_v44  ;;  %v3108_v15 = vpop.f32.mrf.mxu0  ;;  %v2912_v42 = vadd.f32 %v2841_v39, %v2738_v16  ;;  %v2961_v44 = vld [vmem:[#allocation2 + $0x12a] sm:$0xff]  ;;  %v2962_v16 = vld [vmem:[#allocation2 + $0x13a] sm:$0xff] }
 0x398   : > { %v6923_v17 = vadd.f32 %v3108_v15, %v2911_v41  ;;  %v2981_v30 = vpack.c.bf16 %v2961_v44, %v2960_v27  ;;  %v2521_v15 = vld [vmem:[#allocation2 + $0x159] sm:$0xff]  ;;  %v2520_v44 = vld [vmem:[#allocation2 + $0x151] sm:$0xff] }
 0x39c   : > { %v2669_v19 = vpop.f32.mrf.mxu2 }
 0x39d   : > { %v2739_v5 = vadd.f32 %v2669_v19, %v6771_v59  ;;  %v2843_v56 = vpop.f32.mrf.mxu3 }
 0x39e   : > { %v2447_v26 = vpop.f32.mrf.mxu1 }
 0x39f   : > { %v6926_v4 = vadd.f32 %v2447_v26, %v6834_v51  ;;  %v3111_v36 = vpop.f32.mrf.mxu0  ;;  %v2913_v12 = vadd.f32 %v2843_v56, %v2739_v5  ;;  %v2586_v51 = vpack.c.bf16 %v2567_v22, %v2566_v43  ;;  %v2539_v56 = vpack.c.bf16 %v2521_v15, %v2520_v44  ;;  %v3000_v43 = vld [vmem:[#allocation3 + $0xc2] sm:$0xff]  ;;  %v3001_v22 = vld [vmem:[#allocation3 + $0xca] sm:$0xff] }
 0x3a0   : > { %v6930_v7 = vadd.f32 %v3111_v36, %v2912_v42  ;;  %v2568_v42 = vld [vmem:[#allocation3 + $0x151] sm:$0xff]  ;;  %v3003_v44 = vld [vmem:[#allocation3 + $0xe2] sm:$0xff] }
 0x3a1   : > { %5335 = vmatmul.msk.bf16.gmra.mxu1 %vm575_vm1, %v3023_v35  ;;  %5291 = vmatmul.msk.bf16.gmra.mxu2 %vm575_vm1, %v2538_v49  ;;  %v2569_v35 = vld [vmem:[#allocation3 + $0x159] sm:$0xff] }
 0x3a2   : > { %5324 = vmatmul.msk.bf16.gmra.mxu0 %vm575_vm1, %v2981_v30  ;;  %5308 = vmatmul.msk.bf16.gmra.mxu3 %vm575_vm1, %v2586_v51  ;;  %v2587_v19 = vpack.c.bf16 %v2569_v35, %v2568_v42 }
 0x3a4   : > { %v2672_v59 = vpop.f32.mrf.mxu2 }
 0x3a5   : > { %v2740_v46 = vadd.f32 %v2672_v59, %v6778_v45  ;;  %v2846_v41 = vpop.f32.mrf.mxu3  ;;  %v3025_v59 = vpack.c.bf16 %v3001_v22, %v3000_v43 }
 0x3a6   : > { %v2449_v8 = vpop.f32.mrf.mxu1 }
 0x3a7   : > { %v6935_v29 = vadd.f32 %v2449_v8, %v6843_v34  ;;  %v3113_v55 = vpop.f32.mrf.mxu0  ;;  %v2914_v0 = vadd.f32 %v2846_v41, %v2740_v46  ;;  %v2963_v34 = vld [vmem:[#allocation2 + $0x142] sm:$0xff]  ;;  %v2964_v46 = vld [vmem:[#allocation2 + $0x152] sm:$0xff] }
 0x3a8   : > { %v6939_v61 = vadd.f32 %v3113_v55, %v2913_v12  ;;  %v2523_v55 = vld [vmem:[#allocation2 + $0x171] sm:$0xff] }
 0x3ac   : > { %v2674_v39 = vpop.f32.mrf.mxu2 }
 0x3ad   : > { %v2741_v45 = vadd.f32 %v2674_v39, %v6789_v20  ;;  %v2848_v26 = vpop.f32.mrf.mxu3 }
 0x3ae   : > { %v2452_v62 = vpop.f32.mrf.mxu1 }
 0x3af   : > { %v6942_v1 = vadd.f32 %v2452_v62, %v6850_v28  ;;  %v3116_v27 = vpop.f32.mrf.mxu0  ;;  %v2915_v3 = vadd.f32 %v2848_v26, %v2741_v45  ;;  %v2982_v28 = vpack.c.bf16 %v2963_v34, %v2962_v16  ;;  %v2522_v34 = vld [vmem:[#allocation2 + $0x169] sm:$0xff] }
 0x3b0   : > { %v6946_v5 = vadd.f32 %v3116_v27, %v2914_v0  ;;  %v2570_v0 = vld [vmem:[#allocation3 + $0x169] sm:$0xff]  ;;  %v2540_v35 = vpack.c.bf16 %v2523_v55, %v2522_v34  ;;  %v3002_v27 = vld [vmem:[#allocation3 + $0xda] sm:$0xff] }
 0x3b1   : > { %5336 = vmatmul.msk.bf16.gmra.mxu1 %vm575_vm1, %v3024_v31  ;;  %5292 = vmatmul.msk.bf16.gmra.mxu2 %vm575_vm1, %v2539_v56  ;;  %v2571_v31 = vld [vmem:[#allocation3 + $0x171] sm:$0xff]  ;;  %v3005_v34 = vld [vmem:[#allocation3 + $0xfa] sm:$0xff] }
 0x3b2   : > { %5325 = vmatmul.msk.bf16.gmra.mxu0 %vm575_vm1, %v2982_v28  ;;  %5309 = vmatmul.msk.bf16.gmra.mxu3 %vm575_vm1, %v2587_v19  ;;  %v2588_v39 = vpack.c.bf16 %v2571_v31, %v2570_v0 }
 0x3b4   : > { %v2677_v20 = vpop.f32.mrf.mxu2 }
 0x3b5   : > { %v2742_v30 = vadd.f32 %v2677_v20, %v6798_v10  ;;  %v2851_v12 = vpop.f32.mrf.mxu3  ;;  %v3026_v20 = vpack.c.bf16 %v3003_v44, %v3002_v27 }
 0x3b6   : > { %v2454_v36 = vpop.f32.mrf.mxu1 }
 0x3b7   : > { %v6951_v13 = vadd.f32 %v2454_v36, %v6859_v57  ;;  %v3118_v49 = vpop.f32.mrf.mxu0  ;;  %v2916_v51 = vadd.f32 %v2851_v12, %v2742_v30  ;;  %v2965_v57 = vld [vmem:[#allocation2 + $0x15a] sm:$0xff]  ;;  %v2967_v12 = vld [vmem:[#allocation2 + $0x172] sm:$0xff] }
 0x3b8   : > { %v6955_v8 = vadd.f32 %v3118_v49, %v2915_v3  ;;  %v2524_v30 = vld [vmem:[#allocation2 + $0x181] sm:$0xff] }
 0x3bc   : > { %v2679_v41 = vpop.f32.mrf.mxu2 }
 0x3bd   : > { %v2743_v10 = vadd.f32 %v2679_v41, %v6807_v6  ;;  %v2853_v62 = vpop.f32.mrf.mxu3 }
 0x3be   : > { %v2457_v53 = vpop.f32.mrf.mxu1 }
 0x3bf   : > { %v6958_v23 = vadd.f32 %v2457_v53, %v6866_v48  ;;  %v3121_v16 = vpop.f32.mrf.mxu0  ;;  %v2917_v15 = vadd.f32 %v2853_v62, %v2743_v10  ;;  %v2983_v48 = vpack.c.bf16 %v2965_v57, %v2964_v46  ;;  %v2573_v53 = vld [vmem:[#allocation3 + $0x189] sm:$0xff] }
 0x3c0   : > { %v6962_v42 = vadd.f32 %v3121_v16, %v2916_v51  ;;  %v2525_v51 = vld [vmem:[#allocation2 + $0x189] sm:$0xff] }
 0x3c1   : > { %5337 = vmatmul.msk.bf16.gmra.mxu1 %vm575_vm1, %v3025_v59  ;;  %5293 = vmatmul.msk.bf16.gmra.mxu2 %vm575_vm1, %v2540_v35  ;;  %v2572_v59 = vld [vmem:[#allocation3 + $0x181] sm:$0xff]  ;;  %v2541_v31 = vpack.c.bf16 %v2525_v51, %v2524_v30 }
 0x3c2   : > { %5326 = vmatmul.msk.bf16.gmra.mxu0 %vm575_vm1, %v2983_v48  ;;  %5310 = vmatmul.msk.bf16.gmra.mxu3 %vm575_vm1, %v2588_v39  ;;  %v2589_v41 = vpack.c.bf16 %v2573_v53, %v2572_v59 }
 0x3c4   : > { %v2682_v6 = vpop.f32.mrf.mxu2 }
 0x3c5   : > { %v2744_v19 = vadd.f32 %v2682_v6, %v6814_v11  ;;  %v2856_v3 = vpop.f32.mrf.mxu3 }
 0x3c6   : > { %v2459_v45 = vpop.f32.mrf.mxu1 }
 0x3c7   : > { %v6967_v26 = vadd.f32 %v2459_v45, %v6875_v14  ;;  %v3123_v56 = vpop.f32.mrf.mxu0  ;;  %v2918_v28 = vadd.f32 %v2856_v3, %v2744_v19  ;;  %v2966_v14 = vld [vmem:[#allocation2 + $0x16a] sm:$0xff]  ;;  %v3384_v19 = vld [vmem:[#allocation2 + $0x38] sm:$0xff]  ;;  %v2968_v3 = vld [vmem:[#allocation2 + $0x182] sm:$0xff] }
 0x3c8   : > { %v6971_v36 = vadd.f32 %v3123_v56, %v2917_v15  ;;  %v2969_v56 = vld [vmem:[#allocation2 + $0x18a] sm:$0xff] }
 0x3c9   : > { %v2985_v59 = vpack.c.bf16 %v2969_v56, %v2968_v3  ;;  %v3386_v56 = vld [vmem:[#allocation2 + $0x50] sm:$0xff] }
 0x3cc   : > { %v2684_v49 = vpop.f32.mrf.mxu2 }
 0x3cd   : > { %v2745_v11 = vadd.f32 %v2684_v49, %v6823_v60  ;;  %v2858_v46 = vpop.f32.mrf.mxu3  ;;  %v3004_v60 = vld [vmem:[#allocation3 + $0xf2] sm:$0xff] }
 0x3ce   : > { %v3270_v43 = vpop.f32.mrf.mxu1  ;;  %v3027_v6 = vpack.c.bf16 %v3005_v34, %v3004_v60  ;;  %v3007_v60 = vld [vmem:[#allocation3 + $0x112] sm:$0xff] }
 0x3cf   : > { %v6974_v22 = vadd.f32 %v3270_v43, %v6882_v50  ;;  %v3126_v57 = vpop.f32.mrf.mxu0  ;;  %v2919_v55 = vadd.f32 %v2858_v46, %v2745_v11  ;;  %v2984_v50 = vpack.c.bf16 %v2967_v12, %v2966_v14  ;;  %v3432_v14 = vld [vmem:[#allocation3 + $0x30] sm:$0xff]  ;;  %v3433_v12 = vld [vmem:[#allocation3 + $0x38] sm:$0xff] }
 0x3d0   : > { %v6978_v0 = vadd.f32 %v3126_v57, %v2918_v28  ;;  %v5380_v46 = vld [vmem:[%s7719_s3 + $0xe] sm:$0x3]  ;;  %v5431_v57 = vld [vmem:[%s7720_s4 + $0x10] sm:$0x3] }
 0x3d1   : > { %5338 = vmatmul.msk.bf16.gmra.mxu1 %vm575_vm1, %v3026_v20  ;;  %5294 = vmatmul.msk.bf16.gmra.mxu2 %vm575_vm1, %v2541_v31  ;;  %v5397_v31 = vld [vmem:[%s7720_s4 + $0xe] sm:$0x3] }
 0x3d2   : > { %5327 = vmatmul.msk.bf16.gmra.mxu0 %vm575_vm1, %v2984_v50  ;;  %5311 = vmatmul.msk.bf16.gmra.mxu3 %vm575_vm1, %v2589_v41 }
 0x3d4   : > { %v2687_v16 = vpop.f32.mrf.mxu2 }
 0x3d5   : > { %v2746_v39 = vadd.f32 %v2687_v16, %v6830_v2  ;;  %v2861_v15 = vpop.f32.mrf.mxu3  ;;  %v3383_v2 = vld [vmem:[#allocation2 + $0x30] sm:$0xff]  ;;  %v3006_v16 = vld [vmem:[#allocation3 + $0x10a] sm:$0xff] }
 0x3d6   : > { %v3272_v10 = vpop.f32.mrf.mxu1  ;;  %v3415_v30 = vpack.c.bf16 %v3384_v19, %v3383_v2 }
 0x3d7   : > { %v6983_v62 = vadd.f32 %v3272_v10, %v6891_v21  ;;  %v3128_v35 = vpop.f32.mrf.mxu0  ;;  %v2920_v48 = vadd.f32 %v2861_v15, %v2746_v39  ;;  %v4149_v10 = vsel %vm929_vm0, %v5397_v31, 0 }
 0x3d8   : > { %v6987_v45 = vadd.f32 %v3128_v35, %v2919_v55  ;;  %v3975_v55 = vsel %vm929_vm0, %v5380_v46, 0  ;;  %4158 = vmatpush.bf16.msra.mxu1 %v4149_v10  ;;  %v3008_v46 = vld [vmem:[#allocation3 + $0x122] sm:$0xff] }
 0x3d9   : > { %3984 = vmatpush.bf16.msra.mxu0 %v3975_v55 }
 0x3dc   : > { %v2689_v21 = vpop.f32.mrf.mxu2 }
 0x3dd   : > { %v2747_v28 = vadd.f32 %v2689_v21, %v6839_v24  ;;  %v2863_v20 = vpop.f32.mrf.mxu3  ;;  %v5414_v24 = vld [vmem:[%s7719_s3 + $0x10] sm:$0x3]  ;;  %v3829_v21 = vld [vmem:[#allocation2 + $0x39] sm:$0xff] }
 0x3de   : > { %v3275_v27 = vpop.f32.mrf.mxu1  ;;  %v4419_v41 = vsel %vm929_vm0, %v5414_v24, 0 }
 0x3df   : > { %v6990_v44 = vadd.f32 %v3275_v27, %v6898_v37  ;;  %v3131_v43 = vpop.f32.mrf.mxu0  ;;  %v2921_v49 = vadd.f32 %v2863_v20, %v2747_v28  ;;  %v3464_v37 = vpack.c.bf16 %v3433_v12, %v3432_v14  ;;  %4428 = vmatpush.bf16.msra.mxu2 %v4419_v41  ;;  %v3435_v14 = vld [vmem:[#allocation3 + $0x50] sm:$0xff] }
 0x3e0   : > { %v6994_v51 = vadd.f32 %v3131_v43, %v2920_v48  ;;  %v3385_v43 = vld [vmem:[#allocation2 + $0x48] sm:$0xff] }
 0x3e1   : > { %5339 = vmatmul.msk.bf16.gmra.mxu1 %vm575_vm1, %v3027_v6  ;;  %5347 = vmatmul.msk.bf16.vlgmr.msrb.gmra.mxu2 %vm575_vm1, %v3415_v30  ;;  %v3028_v6 = vpack.c.bf16 %v3007_v60, %v3006_v16  ;;  %v3434_v30 = vld [vmem:[#allocation3 + $0x48] sm:$0xff] }
 0x3e2   : > { %5328 = vmatmul.msk.bf16.gmra.mxu0 %vm575_vm1, %v2985_v59  ;;  %5364 = vmatmul.msk.bf16.vlgmr.msrb.gmra.mxu3 %vm575_vm1, %v3464_v37  ;;  %v3416_v37 = vpack.c.bf16 %v3386_v56, %v3385_v43 }
 0x3e4   : > { %v2692_v50 = vpop.f32.mrf.mxu2 }
 0x3e5   : > { %v2748_v34 = vadd.f32 %v2692_v50, %v6846_v40  ;;  %v2866_v39 = vpop.f32.mrf.mxu3  ;;  %v3828_v40 = vld [vmem:[#allocation2 + $0x31] sm:$0xff] }
 0x3e6   : > { %v3277_v53 = vpop.f32.mrf.mxu1  ;;  %v3860_v12 = vpack.c.bf16 %v3829_v21, %v3828_v40  ;;  %v3436_v21 = vld [vmem:[#allocation3 + $0x60] sm:$0xff] }
 0x3e7   : > { %v6999_v11 = vadd.f32 %v3277_v53, %v6907_v25  ;;  %v4593_v25 = vsel %vm929_vm0, %v5431_v57, 0  ;;  %v3133_v15 = vpop.f32.mrf.mxu0  ;;  %v2922_v35 = vadd.f32 %v2866_v39, %v2748_v34  ;;  %v3009_v57 = vld [vmem:[#allocation3 + $0x12a] sm:$0xff]  ;;  %v3831_v34 = vld [vmem:[#allocation2 + $0x51] sm:$0xff]  ;;  %v3388_v39 = vld [vmem:[#allocation2 + $0x68] sm:$0xff] }
 0x3e8   : > { %4602 = vmatpush.bf16.msra.mxu3 %v4593_v25  ;;  %v7019_v48 = vadd.f32 %v3133_v15, %v2921_v49  ;;  %v3029_v10 = vpack.c.bf16 %v3009_v57, %v3008_v46 }
 0x3ec   : > { %v2694_v3 = vpop.f32.mrf.mxu2 }
 0x3ed   : > { %v2749_v28 = vadd.f32 %v2694_v3, %v6855_v54  ;;  %v2868_v20 = vpop.f32.mrf.mxu3  ;;  %v3437_v3 = vld [vmem:[#allocation3 + $0x68] sm:$0xff] }
 0x3ee   : > { %v3280_v27 = vpop.f32.mrf.mxu1 }
 0x3ef   : > { %v7022_v19 = vadd.f32 %v3280_v27, %v6914_v33  ;;  %v3136_v2 = vpop.f32.mrf.mxu0  ;;  %v2923_v49 = vadd.f32 %v2868_v20, %v2749_v28  ;;  %v3465_v33 = vpack.c.bf16 %v3435_v14, %v3434_v30  ;;  %v3387_v27 = vld [vmem:[#allocation2 + $0x60] sm:$0xff]  ;;  %v3010_v30 = vld [vmem:[#allocation3 + $0x13a] sm:$0xff]  ;;  %v3011_v14 = vld [vmem:[#allocation3 + $0x142] sm:$0xff] }
 0x3f0   : > { %v7026_v59 = vadd.f32 %v3136_v2, %v2922_v35  ;;  %v3417_v40 = vpack.c.bf16 %v3388_v39, %v3387_v27 }
 0x3f1   : > { %5340 = vmatmul.msk.bf16.gmra.mxu1 %vm575_vm1, %v3028_v6  ;;  %5348 = vmatmul.msk.bf16.gmra.mxu2 %vm575_vm1, %v3416_v37  ;;  %v3830_v6 = vld [vmem:[#allocation2 + $0x49] sm:$0xff] }
 0x3f2   : > { %5381 = vmatmul.msk.bf16.vlgmr.msra.gmra.mxu0 %vm575_vm1, %v3860_v12  ;;  %5365 = vmatmul.msk.bf16.gmra.mxu3 %vm575_vm1, %v3465_v33  ;;  %v3861_v56 = vpack.c.bf16 %v3831_v34, %v3830_v6  ;;  %v3438_v34 = vld [vmem:[#allocation3 + $0x78] sm:$0xff] }
 0x3f4   : > { %v2697_v54 = vpop.f32.mrf.mxu2 }
 0x3f5   : > { %v2750_v41 = vadd.f32 %v2697_v54, %v6862_v38  ;;  %v2871_v55 = vpop.f32.mrf.mxu3  ;;  %v3030_v54 = vpack.c.bf16 %v3011_v14, %v3010_v30 }
 0x3f6   : > { %v3282_v53 = vpop.f32.mrf.mxu1 }
 0x3f7   : > { %v7031_v24 = vadd.f32 %v3282_v53, %v6923_v17  ;;  %v3138_v25 = vpop.f32.mrf.mxu0  ;;  %v2924_v31 = vadd.f32 %v2871_v55, %v2750_v41  ;;  %v3833_v41 = vld [vmem:[#allocation2 + $0x69] sm:$0xff]  ;;  %v3390_v55 = vld [vmem:[#allocation2 + $0x80] sm:$0xff] }
 0x3f8   : > { %v7035_v50 = vadd.f32 %v3138_v25, %v2923_v49 }
 0x3fc   : > { %v2699_v17 = vpop.f32.mrf.mxu2 }
 0x3fd   : > { %v2751_v15 = vadd.f32 %v2699_v17, %v6871_v63  ;;  %v2873_v35 = vpop.f32.mrf.mxu3  ;;  %v3439_v17 = vld [vmem:[#allocation3 + $0x80] sm:$0xff] }
 0x3fe   : > { %v3285_v16 = vpop.f32.mrf.mxu1 }
 0x3ff   : > { %v7038_v60 = vadd.f32 %v3285_v16, %v6930_v7  ;;  %v3141_v38 = vpop.f32.mrf.mxu0  ;;  %v2925_v28 = vadd.f32 %v2873_v35, %v2751_v15  ;;  %v3466_v7 = vpack.c.bf16 %v3437_v3, %v3436_v21  ;;  %v3389_v16 = vld [vmem:[#allocation2 + $0x78] sm:$0xff]  ;;  %v3012_v21 = vld [vmem:[#allocation3 + $0x152] sm:$0xff]  ;;  %v3013_v3 = vld [vmem:[#allocation3 + $0x15a] sm:$0xff] }
 0x400   : > { %v7042_v20 = vadd.f32 %v3141_v38, %v2924_v31  ;;  %v3418_v6 = vpack.c.bf16 %v3390_v55, %v3389_v16 }
 0x401   : > { %5341 = vmatmul.msk.bf16.gmra.mxu1 %vm575_vm1, %v3029_v10  ;;  %5349 = vmatmul.msk.bf16.gmra.mxu2 %vm575_vm1, %v3417_v40  ;;  %v3832_v10 = vld [vmem:[#allocation2 + $0x61] sm:$0xff] }
 0x402   : > { %5382 = vmatmul.msk.bf16.gmra.mxu0 %vm575_vm1, %v3861_v56  ;;  %5366 = vmatmul.msk.bf16.gmra.mxu3 %vm575_vm1, %v3466_v7  ;;  %v3862_v39 = vpack.c.bf16 %v3833_v41, %v3832_v10  ;;  %v3440_v41 = vld [vmem:[#allocation3 + $0x90] sm:$0xff] }
 0x404   : > { %v2702_v63 = vpop.f32.mrf.mxu2 }
 0x405   : > { %v2752_v12 = vadd.f32 %v2702_v63, %v6878_v9  ;;  %v2876_v49 = vpop.f32.mrf.mxu3  ;;  %v3031_v63 = vpack.c.bf16 %v3013_v3, %v3012_v21 }
 0x406   : > { %v3287_v2 = vpop.f32.mrf.mxu1 }
 0x407   : > { %v7047_v43 = vadd.f32 %v3287_v2, %v6939_v61  ;;  %v3143_v37 = vpop.f32.mrf.mxu0  ;;  %v2926_v33 = vadd.f32 %v2876_v49, %v2752_v12  ;;  %v3835_v12 = vld [vmem:[#allocation2 + $0x81] sm:$0xff]  ;;  %v3392_v49 = vld [vmem:[#allocation2 + $0x98] sm:$0xff] }
 0x408   : > { %v7051_v53 = vadd.f32 %v3143_v37, %v2925_v28 }
 0x40c   : > { %v2704_v61 = vpop.f32.mrf.mxu2 }
 0x40d   : > { %v2753_v25 = vadd.f32 %v2704_v61, %v6887_v32  ;;  %v2878_v31 = vpop.f32.mrf.mxu3  ;;  %v3441_v61 = vld [vmem:[#allocation3 + $0x98] sm:$0xff] }
 0x40e   : > { %v3290_v46 = vpop.f32.mrf.mxu1 }
 0x40f   : > { %v7054_v57 = vadd.f32 %v3290_v46, %v6946_v5  ;;  %v3146_v9 = vpop.f32.mrf.mxu0  ;;  %v2927_v15 = vadd.f32 %v2878_v31, %v2753_v25  ;;  %v3467_v5 = vpack.c.bf16 %v3439_v17, %v3438_v34  ;;  %v3391_v46 = vld [vmem:[#allocation2 + $0x90] sm:$0xff]  ;;  %v3014_v34 = vld [vmem:[#allocation3 + $0x16a] sm:$0xff]  ;;  %v3015_v17 = vld [vmem:[#allocation3 + $0x172] sm:$0xff] }
 0x410   : > { %v7058_v35 = vadd.f32 %v3146_v9, %v2926_v33  ;;  %v3419_v10 = vpack.c.bf16 %v3392_v49, %v3391_v46 }
 0x411   : > { %5342 = vmatmul.msk.bf16.gmra.mxu1 %vm575_vm1, %v3030_v54  ;;  %5350 = vmatmul.msk.bf16.gmra.mxu2 %vm575_vm1, %v3418_v6  ;;  %v3834_v54 = vld [vmem:[#allocation2 + $0x79] sm:$0xff] }
 0x412   : > { %5383 = vmatmul.msk.bf16.gmra.mxu0 %vm575_vm1, %v3862_v39  ;;  %5367 = vmatmul.msk.bf16.gmra.mxu3 %vm575_vm1, %v3467_v5  ;;  %v3863_v55 = vpack.c.bf16 %v3835_v12, %v3834_v54  ;;  %v3442_v12 = vld [vmem:[#allocation3 + $0xa8] sm:$0xff] }
 0x414   : > { %v2707_v32 = vpop.f32.mrf.mxu2 }
 0x415   : > { %v2754_v56 = vadd.f32 %v2707_v32, %v6894_v58  ;;  %v2881_v28 = vpop.f32.mrf.mxu3  ;;  %v3032_v32 = vpack.c.bf16 %v3015_v17, %v3014_v34 }
 0x416   : > { %v3292_v38 = vpop.f32.mrf.mxu1 }
 0x417   : > { %v7063_v27 = vadd.f32 %v3292_v38, %v6955_v8  ;;  %v3148_v40 = vpop.f32.mrf.mxu0  ;;  %v2928_v7 = vadd.f32 %v2881_v28, %v2754_v56  ;;  %v3837_v56 = vld [vmem:[#allocation2 + $0x99] sm:$0xff]  ;;  %v3394_v28 = vld [vmem:[#allocation2 + $0xb0] sm:$0xff] }
 0x418   : > { %v7067_v2 = vadd.f32 %v3148_v40, %v2927_v15 }
 0x41c   : > { %v2709_v8 = vpop.f32.mrf.mxu2 }
 0x41d   : > { %v2755_v37 = vadd.f32 %v2709_v8, %v6903_v47  ;;  %v2883_v33 = vpop.f32.mrf.mxu3  ;;  %v3443_v8 = vld [vmem:[#allocation3 + $0xb0] sm:$0xff] }
 0x41e   : > { %v3295_v30 = vpop.f32.mrf.mxu1 }
 0x41f   : > { %v7070_v14 = vadd.f32 %v3295_v30, %v6962_v42  ;;  %v3151_v58 = vpop.f32.mrf.mxu0  ;;  %v2929_v25 = vadd.f32 %v2883_v33, %v2755_v37  ;;  %v3468_v42 = vpack.c.bf16 %v3441_v61, %v3440_v41  ;;  %v3393_v30 = vld [vmem:[#allocation2 + $0xa8] sm:$0xff]  ;;  %v3016_v41 = vld [vmem:[#allocation3 + $0x182] sm:$0xff]  ;;  %v3017_v61 = vld [vmem:[#allocation3 + $0x18a] sm:$0xff] }
 0x420   : > { %v7074_v31 = vadd.f32 %v3151_v58, %v2928_v7  ;;  %v3420_v54 = vpack.c.bf16 %v3394_v28, %v3393_v30 }
 0x421   : > { %5343 = vmatmul.msk.bf16.gmra.mxu1 %vm575_vm1, %v3031_v63  ;;  %5351 = vmatmul.msk.bf16.gmra.mxu2 %vm575_vm1, %v3419_v10  ;;  %v3836_v63 = vld [vmem:[#allocation2 + $0x91] sm:$0xff] }
 0x422   : > { %5384 = vmatmul.msk.bf16.gmra.mxu0 %vm575_vm1, %v3863_v55  ;;  %5368 = vmatmul.msk.bf16.gmra.mxu3 %vm575_vm1, %v3468_v42  ;;  %v3864_v49 = vpack.c.bf16 %v3837_v56, %v3836_v63  ;;  %v3444_v56 = vld [vmem:[#allocation3 + $0xc0] sm:$0xff] }
 0x424   : > { %v2712_v47 = vpop.f32.mrf.mxu2 }
 0x425   : > { %v2756_v39 = vadd.f32 %v2712_v47, %v6910_v52  ;;  %v2886_v15 = vpop.f32.mrf.mxu3  ;;  %v3033_v47 = vpack.c.bf16 %v3017_v61, %v3016_v41 }
 0x426   : > { %v3297_v9 = vpop.f32.mrf.mxu1 }
 0x427   : > { %v7079_v16 = vadd.f32 %v3297_v9, %v6971_v36  ;;  %v3153_v6 = vpop.f32.mrf.mxu0  ;;  %v2930_v5 = vadd.f32 %v2886_v15, %v2756_v39  ;;  %v3839_v39 = vld [vmem:[#allocation2 + $0xb1] sm:$0xff]  ;;  %v3396_v15 = vld [vmem:[#allocation2 + $0xc8] sm:$0xff] }
 0x428   : > { %v7083_v38 = vadd.f32 %v3153_v6, %v2929_v25 }
 0x42c   : > { %v2714_v36 = vpop.f32.mrf.mxu2 }
 0x42d   : > { %v2757_v40 = vadd.f32 %v2714_v36, %v6919_v18  ;;  %v2888_v7 = vpop.f32.mrf.mxu3  ;;  %v3445_v36 = vld [vmem:[#allocation3 + $0xc8] sm:$0xff] }
 0x42e   : > { %v3300_v21 = vpop.f32.mrf.mxu1 }
 0x42f   : > { %v7086_v3 = vadd.f32 %v3300_v21, %v6978_v0  ;;  %v3156_v52 = vpop.f32.mrf.mxu0  ;;  %v2931_v37 = vadd.f32 %v2888_v7, %v2757_v40  ;;  %v3469_v0 = vpack.c.bf16 %v3443_v8, %v3442_v12  ;;  %v3395_v21 = vld [vmem:[#allocation2 + $0xc0] sm:$0xff]  ;;  %v3877_v8 = vld [vmem:[#allocation3 + $0x39] sm:$0xff] }
 0x430   : > { %v7090_v33 = vadd.f32 %v3156_v52, %v2930_v5  ;;  %v3421_v63 = vpack.c.bf16 %v3396_v15, %v3395_v21  ;;  %v3876_v12 = vld [vmem:[#allocation3 + $0x31] sm:$0xff] }
 0x431   : > { %5344 = vmatmul.msk.bf16.gmra.mxu1 %vm575_vm1, %v3032_v32  ;;  %5352 = vmatmul.msk.bf16.gmra.mxu2 %vm575_vm1, %v3420_v54  ;;  %v3838_v32 = vld [vmem:[#allocation2 + $0xa9] sm:$0xff] }
 0x432   : > { %5385 = vmatmul.msk.bf16.gmra.mxu0 %vm575_vm1, %v3864_v49  ;;  %5369 = vmatmul.msk.bf16.gmra.mxu3 %vm575_vm1, %v3469_v0  ;;  %v3865_v28 = vpack.c.bf16 %v3839_v39, %v3838_v32  ;;  %v3446_v39 = vld [vmem:[#allocation3 + $0xd8] sm:$0xff] }
 0x434   : > { %v2717_v18 = vpop.f32.mrf.mxu2 }
 0x435   : > { %v2758_v55 = vadd.f32 %v2717_v18, %v6926_v4  ;;  %v2891_v25 = vpop.f32.mrf.mxu3  ;;  %v3908_v18 = vpack.c.bf16 %v3877_v8, %v3876_v12 }
 0x436   : > { %v3302_v58 = vpop.f32.mrf.mxu1 }
 0x437   : > { %v7095_v46 = vadd.f32 %v3302_v58, %v6987_v45  ;;  %v3158_v10 = vpop.f32.mrf.mxu0  ;;  %v2932_v42 = vadd.f32 %v2891_v25, %v2758_v55  ;;  %v3841_v55 = vld [vmem:[#allocation2 + $0xc9] sm:$0xff]  ;;  %v3398_v25 = vld [vmem:[#allocation2 + $0xe0] sm:$0xff] }
 0x438   : > { %v7099_v9 = vadd.f32 %v3158_v10, %v2931_v37 }
 0x43c   : > { %v2719_v45 = vpop.f32.mrf.mxu2 }
 0x43d   : > { %v2759_v6 = vadd.f32 %v2719_v45, %v6935_v29  ;;  %v2893_v5 = vpop.f32.mrf.mxu3  ;;  %v3447_v45 = vld [vmem:[#allocation3 + $0xe0] sm:$0xff] }
 0x43e   : > { %v3305_v34 = vpop.f32.mrf.mxu1 }
 0x43f   : > { %v7102_v17 = vadd.f32 %v3305_v34, %v6994_v51  ;;  %v3161_v4 = vpop.f32.mrf.mxu0  ;;  %v2933_v40 = vadd.f32 %v2893_v5, %v2759_v6  ;;  %v3470_v51 = vpack.c.bf16 %v3445_v36, %v3444_v56  ;;  %v3397_v34 = vld [vmem:[#allocation2 + $0xd8] sm:$0xff]  ;;  %v3879_v36 = vld [vmem:[#allocation3 + $0x51] sm:$0xff] }
 0x440   : > { %v7106_v7 = vadd.f32 %v3161_v4, %v2932_v42  ;;  %v3422_v32 = vpack.c.bf16 %v3398_v25, %v3397_v34  ;;  %v3878_v56 = vld [vmem:[#allocation3 + $0x49] sm:$0xff] }
 0x441   : > { %5345 = vmatmul.msk.bf16.gmra.mxu1 %vm575_vm1, %v3033_v47  ;;  %5353 = vmatmul.msk.bf16.gmra.mxu2 %vm575_vm1, %v3421_v63  ;;  %v3840_v47 = vld [vmem:[#allocation2 + $0xc1] sm:$0xff] }
 0x442   : > { %5386 = vmatmul.msk.bf16.gmra.mxu0 %vm575_vm1, %v3865_v28  ;;  %5370 = vmatmul.msk.bf16.gmra.mxu3 %vm575_vm1, %v3470_v51  ;;  %v3866_v15 = vpack.c.bf16 %v3841_v55, %v3840_v47  ;;  %v3448_v55 = vld [vmem:[#allocation3 + $0xf0] sm:$0xff] }
 0x444   : > { %v2722_v29 = vpop.f32.mrf.mxu2 }
 0x445   : > { %v2760_v49 = vadd.f32 %v2722_v29, %v6942_v1  ;;  %v2896_v37 = vpop.f32.mrf.mxu3  ;;  %v3909_v29 = vpack.c.bf16 %v3879_v36, %v3878_v56 }
 0x446   : > { %v3307_v52 = vpop.f32.mrf.mxu1 }
 0x447   : > { %v7111_v30 = vadd.f32 %v3307_v52, %v7019_v48  ;;  %v3163_v54 = vpop.f32.mrf.mxu0  ;;  %v2934_v0 = vadd.f32 %v2896_v37, %v2760_v49  ;;  %v3843_v49 = vld [vmem:[#allocation2 + $0xe1] sm:$0xff]  ;;  %v3400_v37 = vld [vmem:[#allocation2 + $0xf8] sm:$0xff] }
 0x448   : > { %v7115_v58 = vadd.f32 %v3163_v54, %v2933_v40 }
 0x44c   : > { %v2724_v48 = vpop.f32.mrf.mxu2 }
 0x44d   : > { %v2761_v10 = vadd.f32 %v2724_v48, %v6951_v13  ;;  %v2898_v42 = vpop.f32.mrf.mxu3  ;;  %v3449_v48 = vld [vmem:[#allocation3 + $0xf8] sm:$0xff] }
 0x44e   : > { %v3310_v41 = vpop.f32.mrf.mxu1 }
 0x44f   : > { %v7118_v61 = vadd.f32 %v3310_v41, %v7026_v59  ;;  %v3166_v1 = vpop.f32.mrf.mxu0  ;;  %v2935_v6 = vadd.f32 %v2898_v42, %v2761_v10  ;;  %v3471_v59 = vpack.c.bf16 %v3447_v45, %v3446_v39  ;;  %v3399_v41 = vld [vmem:[#allocation2 + $0xf0] sm:$0xff]  ;;  %v3881_v45 = vld [vmem:[#allocation3 + $0x69] sm:$0xff] }
 0x450   : > { %v7122_v5 = vadd.f32 %v3166_v1, %v2934_v0  ;;  %v3423_v47 = vpack.c.bf16 %v3400_v37, %v3399_v41  ;;  %v3880_v39 = vld [vmem:[#allocation3 + $0x61] sm:$0xff] }
 0x451   : > { %5398 = vmatmul.msk.bf16.vlgmr.msra.gmra.mxu1 %vm575_vm1, %v3908_v18  ;;  %5354 = vmatmul.msk.bf16.gmra.mxu2 %vm575_vm1, %v3422_v32  ;;  %v3842_v18 = vld [vmem:[#allocation2 + $0xd9] sm:$0xff] }
 0x452   : > { %5387 = vmatmul.msk.bf16.gmra.mxu0 %vm575_vm1, %v3866_v15  ;;  %5371 = vmatmul.msk.bf16.gmra.mxu3 %vm575_vm1, %v3471_v59  ;;  %v3867_v25 = vpack.c.bf16 %v3843_v49, %v3842_v18  ;;  %v3450_v49 = vld [vmem:[#allocation3 + $0x108] sm:$0xff] }
 0x454   : > { %v2727_v13 = vpop.f32.mrf.mxu2 }
 0x455   : > { %v2762_v28 = vadd.f32 %v2727_v13, %v6958_v23  ;;  %v2901_v40 = vpop.f32.mrf.mxu3  ;;  %v3910_v13 = vpack.c.bf16 %v3881_v45, %v3880_v39 }
 0x456   : > { %v3312_v4 = vpop.f32.mrf.mxu1 }
 0x457   : > { %v7127_v21 = vadd.f32 %v3312_v4, %v7035_v50  ;;  %v3168_v63 = vpop.f32.mrf.mxu0  ;;  %v2936_v51 = vadd.f32 %v2901_v40, %v2762_v28  ;;  %v3845_v28 = vld [vmem:[#allocation2 + $0xf9] sm:$0xff]  ;;  %v3402_v40 = vld [vmem:[#allocation2 + $0x110] sm:$0xff] }
 0x458   : > { %v7131_v52 = vadd.f32 %v3168_v63, %v2935_v6 }
 0x45c   : > { %v2729_v50 = vpop.f32.mrf.mxu2 }
 0x45d   : > { %v2763_v54 = vadd.f32 %v2729_v50, %v6967_v26  ;;  %v2903_v0 = vpop.f32.mrf.mxu3  ;;  %v3451_v50 = vld [vmem:[#allocation3 + $0x110] sm:$0xff] }
 0x45e   : > { %v3315_v12 = vpop.f32.mrf.mxu1 }
 0x45f   : > { %v7134_v8 = vadd.f32 %v3315_v12, %v7042_v20  ;;  %v3171_v23 = vpop.f32.mrf.mxu0  ;;  %v2937_v10 = vadd.f32 %v2903_v0, %v2763_v54  ;;  %v3472_v20 = vpack.c.bf16 %v3449_v48, %v3448_v55  ;;  %v3401_v12 = vld [vmem:[#allocation2 + $0x108] sm:$0xff]  ;;  %v3883_v48 = vld [vmem:[#allocation3 + $0x81] sm:$0xff] }
 0x460   : > { %v7138_v42 = vadd.f32 %v3171_v23, %v2936_v51  ;;  %v3424_v18 = vpack.c.bf16 %v3402_v40, %v3401_v12  ;;  %v3882_v55 = vld [vmem:[#allocation3 + $0x79] sm:$0xff] }
 0x461   : > { %5399 = vmatmul.msk.bf16.gmra.mxu1 %vm575_vm1, %v3909_v29  ;;  %5355 = vmatmul.msk.bf16.gmra.mxu2 %vm575_vm1, %v3423_v47  ;;  %v3844_v29 = vld [vmem:[#allocation2 + $0xf1] sm:$0xff] }
 0x462   : > { %5388 = vmatmul.msk.bf16.gmra.mxu0 %vm575_vm1, %v3867_v25  ;;  %5372 = vmatmul.msk.bf16.gmra.mxu3 %vm575_vm1, %v3472_v20  ;;  %v3868_v37 = vpack.c.bf16 %v3845_v28, %v3844_v29  ;;  %v3452_v28 = vld [vmem:[#allocation3 + $0x120] sm:$0xff] }
 0x464   : > { %v3542_v26 = vpop.f32.mrf.mxu2 }
 0x465   : > { %v3622_v15 = vadd.f32 %v3542_v26, %v6974_v22  ;;  %v3716_v6 = vpop.f32.mrf.mxu3  ;;  %v3911_v26 = vpack.c.bf16 %v3883_v48, %v3882_v55 }
 0x466   : > { %v3317_v1 = vpop.f32.mrf.mxu1 }
 0x467   : > { %v7143_v34 = vadd.f32 %v3317_v1, %v7051_v53  ;;  %v3173_v32 = vpop.f32.mrf.mxu0  ;;  %v3796_v59 = vadd.f32 %v3716_v6, %v3622_v15  ;;  %v3847_v15 = vld [vmem:[#allocation2 + $0x111] sm:$0xff]  ;;  %v3404_v6 = vld [vmem:[#allocation2 + $0x128] sm:$0xff] }
 0x468   : > { %v7147_v4 = vadd.f32 %v3173_v32, %v2937_v10 }
 0x46c   : > { %v3544_v53 = vpop.f32.mrf.mxu2 }
 0x46d   : > { %v3623_v63 = vadd.f32 %v3544_v53, %v6983_v62  ;;  %v3718_v51 = vpop.f32.mrf.mxu3  ;;  %v3453_v53 = vld [vmem:[#allocation3 + $0x128] sm:$0xff] }
 0x46e   : > { %v3320_v56 = vpop.f32.mrf.mxu1 }
 0x46f   : > { %v7150_v36 = vadd.f32 %v3320_v56, %v7058_v35  ;;  %v3986_v22 = vpop.f32.mrf.mxu0  ;;  %v3797_v54 = vadd.f32 %v3718_v51, %v3623_v63  ;;  %v3473_v35 = vpack.c.bf16 %v3451_v50, %v3450_v49  ;;  %v3403_v56 = vld [vmem:[#allocation2 + $0x120] sm:$0xff]  ;;  %v3885_v50 = vld [vmem:[#allocation3 + $0x99] sm:$0xff] }
 0x470   : > { %v7154_v0 = vadd.f32 %v3986_v22, %v3796_v59  ;;  %v3425_v29 = vpack.c.bf16 %v3404_v6, %v3403_v56  ;;  %v3884_v49 = vld [vmem:[#allocation3 + $0x91] sm:$0xff] }
 0x471   : > { %5400 = vmatmul.msk.bf16.gmra.mxu1 %vm575_vm1, %v3910_v13  ;;  %5356 = vmatmul.msk.bf16.gmra.mxu2 %vm575_vm1, %v3424_v18  ;;  %v3846_v13 = vld [vmem:[#allocation2 + $0x109] sm:$0xff] }
 0x472   : > { %5389 = vmatmul.msk.bf16.gmra.mxu0 %vm575_vm1, %v3868_v37  ;;  %5373 = vmatmul.msk.bf16.gmra.mxu3 %vm575_vm1, %v3473_v35  ;;  %v3869_v40 = vpack.c.bf16 %v3847_v15, %v3846_v13  ;;  %v3454_v15 = vld [vmem:[#allocation3 + $0x138] sm:$0xff] }
 0x474   : > { %v3547_v62 = vpop.f32.mrf.mxu2 }
 0x475   : > { %v3624_v25 = vadd.f32 %v3547_v62, %v6990_v44  ;;  %v3721_v10 = vpop.f32.mrf.mxu3  ;;  %v3912_v62 = vpack.c.bf16 %v3885_v50, %v3884_v49 }
 0x476   : > { %v3322_v23 = vpop.f32.mrf.mxu1 }
 0x477   : > { %v7159_v41 = vadd.f32 %v3322_v23, %v7067_v2  ;;  %v3988_v47 = vpop.f32.mrf.mxu0  ;;  %v3798_v20 = vadd.f32 %v3721_v10, %v3624_v25  ;;  %v3849_v25 = vld [vmem:[#allocation2 + $0x129] sm:$0xff]  ;;  %v3406_v10 = vld [vmem:[#allocation2 + $0x140] sm:$0xff] }
 0x478   : > { %v7163_v1 = vadd.f32 %v3988_v47, %v3797_v54 }
 0x47c   : > { %v3549_v2 = vpop.f32.mrf.mxu2 }
 0x47d   : > { %v3625_v32 = vadd.f32 %v3549_v2, %v6999_v11  ;;  %v3723_v59 = vpop.f32.mrf.mxu3  ;;  %v3455_v2 = vld [vmem:[#allocation3 + $0x140] sm:$0xff] }
 0x47e   : > { %v3325_v39 = vpop.f32.mrf.mxu1 }
 0x47f   : > { %v7166_v45 = vadd.f32 %v3325_v39, %v7074_v31  ;;  %v3991_v44 = vpop.f32.mrf.mxu0  ;;  %v3799_v63 = vadd.f32 %v3723_v59, %v3625_v32  ;;  %v3474_v31 = vpack.c.bf16 %v3453_v53, %v3452_v28  ;;  %v3405_v39 = vld [vmem:[#allocation2 + $0x138] sm:$0xff]  ;;  %v3887_v53 = vld [vmem:[#allocation3 + $0xb1] sm:$0xff] }
 0x480   : > { %v7170_v51 = vadd.f32 %v3991_v44, %v3798_v20  ;;  %v3426_v13 = vpack.c.bf16 %v3406_v10, %v3405_v39  ;;  %v3886_v28 = vld [vmem:[#allocation3 + $0xa9] sm:$0xff] }
 0x481   : > { %5401 = vmatmul.msk.bf16.gmra.mxu1 %vm575_vm1, %v3911_v26  ;;  %5357 = vmatmul.msk.bf16.gmra.mxu2 %vm575_vm1, %v3425_v29  ;;  %v3848_v26 = vld [vmem:[#allocation2 + $0x121] sm:$0xff] }
 0x482   : > { %5390 = vmatmul.msk.bf16.gmra.mxu0 %vm575_vm1, %v3869_v40  ;;  %5374 = vmatmul.msk.bf16.gmra.mxu3 %vm575_vm1, %v3474_v31  ;;  %v3870_v6 = vpack.c.bf16 %v3849_v25, %v3848_v26  ;;  %v3456_v25 = vld [vmem:[#allocation3 + $0x150] sm:$0xff] }
 0x484   : > { %v3552_v11 = vpop.f32.mrf.mxu2 }
 0x485   : > { %v3626_v37 = vadd.f32 %v3552_v11, %v7022_v19  ;;  %v3726_v54 = vpop.f32.mrf.mxu3  ;;  %v3913_v11 = vpack.c.bf16 %v3887_v53, %v3886_v28 }
 0x486   : > { %v3327_v22 = vpop.f32.mrf.mxu1 }
 0x487   : > { %v7175_v12 = vadd.f32 %v3327_v22, %v7083_v38  ;;  %v3993_v18 = vpop.f32.mrf.mxu0  ;;  %v3800_v35 = vadd.f32 %v3726_v54, %v3626_v37  ;;  %v3851_v37 = vld [vmem:[#allocation2 + $0x141] sm:$0xff]  ;;  %v3408_v54 = vld [vmem:[#allocation2 + $0x158] sm:$0xff] }
 0x488   : > { %v7179_v23 = vadd.f32 %v3993_v18, %v3799_v63 }
 0x48c   : > { %v3554_v38 = vpop.f32.mrf.mxu2 }
 0x48d   : > { %v3627_v47 = vadd.f32 %v3554_v38, %v7031_v24  ;;  %v3728_v20 = vpop.f32.mrf.mxu3  ;;  %v3457_v38 = vld [vmem:[#allocation3 + $0x158] sm:$0xff] }
 0x48e   : > { %v3330_v55 = vpop.f32.mrf.mxu1 }
 0x48f   : > { %v7182_v48 = vadd.f32 %v3330_v55, %v7090_v33  ;;  %v3996_v19 = vpop.f32.mrf.mxu0  ;;  %v3801_v32 = vadd.f32 %v3728_v20, %v3627_v47  ;;  %v3475_v33 = vpack.c.bf16 %v3455_v2, %v3454_v15  ;;  %v3407_v55 = vld [vmem:[#allocation2 + $0x150] sm:$0xff]  ;;  %v3889_v2 = vld [vmem:[#allocation3 + $0xc9] sm:$0xff] }
 0x490   : > { %v7186_v59 = vadd.f32 %v3996_v19, %v3800_v35  ;;  %v3427_v26 = vpack.c.bf16 %v3408_v54, %v3407_v55  ;;  %v3888_v15 = vld [vmem:[#allocation3 + $0xc1] sm:$0xff] }
 0x491   : > { %5402 = vmatmul.msk.bf16.gmra.mxu1 %vm575_vm1, %v3912_v62  ;;  %5358 = vmatmul.msk.bf16.gmra.mxu2 %vm575_vm1, %v3426_v13  ;;  %v3850_v62 = vld [vmem:[#allocation2 + $0x139] sm:$0xff]  ;;  %v3891_v55 = vld [vmem:[#allocation3 + $0xe1] sm:$0xff] }
 0x492   : > { %5391 = vmatmul.msk.bf16.gmra.mxu0 %vm575_vm1, %v3870_v6  ;;  %5375 = vmatmul.msk.bf16.gmra.mxu3 %vm575_vm1, %v3475_v33  ;;  %v3871_v10 = vpack.c.bf16 %v3851_v37, %v3850_v62 }
 0x494   : > { %v3557_v24 = vpop.f32.mrf.mxu2 }
 0x495   : > { %v3628_v40 = vadd.f32 %v3557_v24, %v7038_v60  ;;  %v3731_v63 = vpop.f32.mrf.mxu3  ;;  %v3914_v24 = vpack.c.bf16 %v3889_v2, %v3888_v15  ;;  %v3412_v15 = vld [vmem:[#allocation2 + $0x188] sm:$0xff]  ;;  %v3460_v2 = vld [vmem:[#allocation3 + $0x180] sm:$0xff] }
 0x496   : > { %v3332_v44 = vpop.f32.mrf.mxu1 }
 0x497   : > { %v7191_v56 = vadd.f32 %v3332_v44, %v7099_v9  ;;  %v3998_v29 = vpop.f32.mrf.mxu0  ;;  %v3802_v31 = vadd.f32 %v3731_v63, %v3628_v40  ;;  %v3410_v63 = vld [vmem:[#allocation2 + $0x170] sm:$0xff] }
 0x498   : > { %v7195_v22 = vadd.f32 %v3998_v29, %v3801_v32  ;;  %v3458_v29 = vld [vmem:[#allocation3 + $0x168] sm:$0xff] }
 0x49c   : > { %v3559_v9 = vpop.f32.mrf.mxu2 }
 0x49d   : > { %v3629_v18 = vadd.f32 %v3559_v9, %v7047_v43  ;;  %v3733_v35 = vpop.f32.mrf.mxu3  ;;  %v3852_v9 = vld [vmem:[#allocation2 + $0x151] sm:$0xff] }
 0x49e   : > { %v3335_v49 = vpop.f32.mrf.mxu1 }
 0x49f   : > { %v7198_v50 = vadd.f32 %v3335_v49, %v7106_v7  ;;  %v4001_v60 = vpop.f32.mrf.mxu0  ;;  %v3803_v47 = vadd.f32 %v3733_v35, %v3629_v18  ;;  %v3476_v7 = vpack.c.bf16 %v3457_v38, %v3456_v25  ;;  %v3409_v49 = vld [vmem:[#allocation2 + $0x168] sm:$0xff] }
 0x4a0   : > { %v7202_v20 = vadd.f32 %v4001_v60, %v3802_v31  ;;  %v3459_v31 = vld [vmem:[#allocation3 + $0x170] sm:$0xff]  ;;  %v3428_v18 = vpack.c.bf16 %v3410_v63, %v3409_v49 }
 0x4a1   : > { %5403 = vmatmul.msk.bf16.gmra.mxu1 %vm575_vm1, %v3913_v11  ;;  %5359 = vmatmul.msk.bf16.gmra.mxu2 %vm575_vm1, %v3427_v26  ;;  %v3477_v37 = vpack.c.bf16 %v3459_v31, %v3458_v29  ;;  %v3892_v31 = vld [vmem:[#allocation3 + $0xf1] sm:$0xff] }
 0x4a2   : > { %5392 = vmatmul.msk.bf16.gmra.mxu0 %vm575_vm1, %v3871_v10  ;;  %5376 = vmatmul.msk.bf16.gmra.mxu3 %vm575_vm1, %v3476_v7 }
 0x4a4   : > { %v3562_v43 = vpop.f32.mrf.mxu2 }
 0x4a5   : > { %v3630_v6 = vadd.f32 %v3562_v43, %v7054_v57  ;;  %v3736_v32 = vpop.f32.mrf.mxu3  ;;  %v3855_v43 = vld [vmem:[#allocation2 + $0x171] sm:$0xff] }
 0x4a6   : > { %v3337_v19 = vpop.f32.mrf.mxu1 }
 0x4a7   : > { %v7207_v39 = vadd.f32 %v3337_v19, %v7115_v58  ;;  %v4003_v13 = vpop.f32.mrf.mxu0  ;;  %v7211_v33 = vadd.f32 %v3736_v32, %v3630_v6  ;;  %v3853_v58 = vld [vmem:[#allocation2 + $0x159] sm:$0xff] }
 0x4a8   : > { %v7213_v44 = vadd.f32 %v4003_v13, %v3803_v47  ;;  %v3872_v35 = vpack.c.bf16 %v3853_v58, %v3852_v9  ;;  %v3411_v19 = vld [vmem:[#allocation2 + $0x180] sm:$0xff]  ;;  %v3461_v6 = vld [vmem:[#allocation3 + $0x188] sm:$0xff] }
 0x4a9   : > { %v3429_v58 = vpack.c.bf16 %v3412_v15, %v3411_v19 }
 0x4ac   : > { %v3564_v40 = vpop.f32.mrf.mxu2 }
 0x4ad   : > { %v3631_v57 = vadd.f32 %v3564_v40, %v7063_v27  ;;  %v3738_v11 = vpop.f32.mrf.mxu3  ;;  %v3890_v27 = vld [vmem:[#allocation3 + $0xd9] sm:$0xff] }
 0x4ae   : > { %v3340_v28 = vpop.f32.mrf.mxu1  ;;  %v3915_v47 = vpack.c.bf16 %v3891_v55, %v3890_v27  ;;  %v3414_v27 = vld [vmem:[#allocation2 + $0x1a0] sm:$0xff]  ;;  %v3462_v55 = vld [vmem:[#allocation3 + $0x198] sm:$0xff] }
 0x4af   : > { %v7216_v53 = vadd.f32 %v3340_v28, %v7122_v5  ;;  %v7220_v54 = vadd.f32 %v3738_v11, %v3631_v57 }
 0x4b1   : > { %5404 = vmatmul.msk.bf16.gmra.mxu1 %vm575_vm1, %v3914_v24  ;;  %5360 = vmatmul.msk.bf16.gmra.mxu2 %vm575_vm1, %v3428_v18  ;;  %v3854_v24 = vld [vmem:[#allocation2 + $0x169] sm:$0xff] }
 0x4b2   : > { %5393 = vmatmul.msk.bf16.gmra.mxu0 %vm575_vm1, %v3872_v35  ;;  %5377 = vmatmul.msk.bf16.gmra.mxu3 %vm575_vm1, %v3477_v37  ;;  %v3873_v40 = vpack.c.bf16 %v3855_v43, %v3854_v24  ;;  %v3856_v35 = vld [vmem:[#allocation2 + $0x181] sm:$0xff] }
 0x4b4   : > { %v3567_v60 = vpop.f32.mrf.mxu2 }
 0x4b5   : > { %v3632_v25 = vadd.f32 %v3567_v60, %v7070_v14  ;;  %v3741_v38 = vpop.f32.mrf.mxu3  ;;  %v3478_v14 = vpack.c.bf16 %v3461_v6, %v3460_v2  ;;  %v3413_v60 = vld [vmem:[#allocation2 + $0x198] sm:$0xff] }
 0x4b6   : > { %v3342_v62 = vpop.f32.mrf.mxu1  ;;  %v3894_v2 = vld [vmem:[#allocation3 + $0x109] sm:$0xff] }
 0x4b7   : > { %v7225_v5 = vadd.f32 %v3342_v62, %v7131_v52  ;;  %v7229_v10 = vadd.f32 %v3741_v38, %v3632_v25  ;;  %v3857_v62 = vld [vmem:[#allocation2 + $0x189] sm:$0xff] }
 0x4b8   : > { %v3874_v43 = vpack.c.bf16 %v3857_v62, %v3856_v35 }
 0x4bc   : > { %v3569_v52 = vpop.f32.mrf.mxu2 }
 0x4bd   : > { %v3633_v32 = vadd.f32 %v3569_v52, %v7079_v16  ;;  %v3743_v13 = vpop.f32.mrf.mxu3  ;;  %v3893_v16 = vld [vmem:[#allocation3 + $0xf9] sm:$0xff] }
 0x4be   : > { %v3345_v26 = vpop.f32.mrf.mxu1  ;;  %v3916_v37 = vpack.c.bf16 %v3893_v16, %v3892_v31  ;;  %v4273_v31 = vld [vmem:[#allocation2 + $0x3a] sm:$0xff] }
 0x4bf   : > { %v7232_v7 = vadd.f32 %v3345_v26, %v7138_v42  ;;  %v7236_v28 = vadd.f32 %v3743_v13, %v3633_v32 }
 0x4c1   : > { %5405 = vmatmul.msk.bf16.gmra.mxu1 %vm575_vm1, %v3915_v47  ;;  %5361 = vmatmul.msk.bf16.gmra.mxu2 %vm575_vm1, %v3429_v58  ;;  %v3463_v47 = vld [vmem:[#allocation3 + $0x1a0] sm:$0xff] }
 0x4c2   : > { %5394 = vmatmul.msk.bf16.gmra.mxu0 %vm575_vm1, %v3873_v40  ;;  %5378 = vmatmul.msk.bf16.gmra.mxu3 %vm575_vm1, %v3478_v14  ;;  %v3479_v26 = vpack.c.bf16 %v3463_v47, %v3462_v55  ;;  %v4272_v40 = vld [vmem:[#allocation2 + $0x32] sm:$0xff] }
 0x4c3   : > { %v4304_v35 = vpack.c.bf16 %v4273_v31, %v4272_v40 }
 0x4c4   : > { %v3572_v29 = vpop.f32.mrf.mxu2 }
 0x4c5   : > { %v3634_v57 = vadd.f32 %v3572_v29, %v7086_v3  ;;  %v3746_v11 = vpop.f32.mrf.mxu3  ;;  %v3430_v3 = vpack.c.bf16 %v3414_v27, %v3413_v60  ;;  %v3859_v29 = vld [vmem:[#allocation2 + $0x1a1] sm:$0xff]  ;;  %v3897_v27 = vld [vmem:[#allocation3 + $0x129] sm:$0xff] }
 0x4c6   : > { %v3347_v63 = vpop.f32.mrf.mxu1 }
 0x4c7   : > { %v7241_v42 = vadd.f32 %v3347_v63, %v7147_v4  ;;  %v7245_v49 = vadd.f32 %v3746_v11, %v3634_v57  ;;  %v3858_v63 = vld [vmem:[#allocation2 + $0x199] sm:$0xff] }
 0x4c8   : > { %v3875_v11 = vpack.c.bf16 %v3859_v29, %v3858_v63  ;;  %v3899_v63 = vld [vmem:[#allocation3 + $0x141] sm:$0xff] }
 0x4cc   : > { %v3574_v4 = vpop.f32.mrf.mxu2 }
 0x4cd   : > { %v3635_v25 = vadd.f32 %v3574_v4, %v7095_v46  ;;  %v3748_v38 = vpop.f32.mrf.mxu3  ;;  %v3895_v46 = vld [vmem:[#allocation3 + $0x111] sm:$0xff] }
 0x4ce   : > { %v4160_v9 = vpop.f32.mrf.mxu1  ;;  %v3917_v14 = vpack.c.bf16 %v3895_v46, %v3894_v2  ;;  %v4322_v46 = vld [vmem:[#allocation3 + $0x4a] sm:$0xff] }
 0x4cf   : > { %v7248_v18 = vadd.f32 %v4160_v9, %v7154_v0  ;;  %v7252_v19 = vadd.f32 %v3748_v38, %v3635_v25 }
 0x4d1   : > { %5406 = vmatmul.msk.bf16.gmra.mxu1 %vm575_vm1, %v3916_v37  ;;  %5362 = vmatmul.msk.bf16.gmra.mxu2 %vm575_vm1, %v3430_v3  ;;  %v4321_v37 = vld [vmem:[#allocation3 + $0x3a] sm:$0xff] }
 0x4d2   : > { %5395 = vmatmul.msk.bf16.gmra.mxu0 %vm575_vm1, %v3874_v43  ;;  %5379 = vmatmul.msk.bf16.gmra.mxu3 %vm575_vm1, %v3479_v26 }
 0x4d4   : > { %v3577_v15 = vpop.f32.mrf.mxu2 }
 0x4d5   : > { %v3636_v6 = vadd.f32 %v3577_v15, %v7102_v17  ;;  %v3751_v32 = vpop.f32.mrf.mxu3  ;;  %v4320_v17 = vld [vmem:[#allocation3 + $0x32] sm:$0xff] }
 0x4d6   : > { %v4162_v52 = vpop.f32.mrf.mxu1  ;;  %v4352_v62 = vpack.c.bf16 %v4321_v37, %v4320_v17  ;;  %v4277_v37 = vld [vmem:[#allocation2 + $0x6a] sm:$0xff] }
 0x4d7   : > { %v7257_v0 = vadd.f32 %v4162_v52, %v7163_v1  ;;  %v7261_v13 = vadd.f32 %v3751_v32, %v3636_v6  ;;  %v4275_v52 = vld [vmem:[#allocation2 + $0x52] sm:$0xff]  ;;  %v4323_v6 = vld [vmem:[#allocation3 + $0x52] sm:$0xff] }
 0x4dc   : > { %v3579_v1 = vpop.f32.mrf.mxu2 }
 0x4dd   : > { %v3637_v16 = vadd.f32 %v3579_v1, %v7111_v30  ;;  %v3753_v57 = vpop.f32.mrf.mxu3  ;;  %v3896_v30 = vld [vmem:[#allocation3 + $0x121] sm:$0xff]  ;;  %v3898_v1 = vld [vmem:[#allocation3 + $0x139] sm:$0xff] }
 0x4de   : > { %v4165_v24 = vpop.f32.mrf.mxu1  ;;  %v3918_v3 = vpack.c.bf16 %v3897_v27, %v3896_v30 }
 0x4df   : > { %v7264_v58 = vadd.f32 %v4165_v24, %v7170_v51  ;;  %v7268_v9 = vadd.f32 %v3753_v57, %v3637_v16  ;;  %v3919_v16 = vpack.c.bf16 %v3899_v63, %v3898_v1  ;;  %v3902_v63 = vld [vmem:[#allocation3 + $0x169] sm:$0xff] }
 0x4e1   : > { %5407 = vmatmul.msk.bf16.gmra.mxu1 %vm575_vm1, %v3917_v14  ;;  %5415 = vmatmul.msk.bf16.vlgmr.msra.gmra.mxu2 %vm575_vm1, %v4304_v35  ;;  %v4353_v14 = vpack.c.bf16 %v4323_v6, %v4322_v46  ;;  %v4279_v46 = vld [vmem:[#allocation2 + $0x82] sm:$0xff] }
 0x4e2   : > { %5396 = vmatmul.msk.bf16.gmra.mxu0 %vm575_vm1, %v3875_v11  ;;  %5432 = vmatmul.msk.bf16.vlgmr.msra.gmra.mxu3 %vm575_vm1, %v4352_v62 }
 0x4e4   : > { %v3582_v60 = vpop.f32.mrf.mxu2 }
 0x4e5   : > { %v3638_v55 = vadd.f32 %v3582_v60, %v7118_v61  ;;  %v3756_v25 = vpop.f32.mrf.mxu3  ;;  %v4325_v60 = vld [vmem:[#allocation3 + $0x6a] sm:$0xff] }
 0x4e6   : > { %v4167_v4 = vpop.f32.mrf.mxu1 }
 0x4e7   : > { %v7273_v51 = vadd.f32 %v4167_v4, %v7179_v23  ;;  %v7277_v38 = vadd.f32 %v3756_v25, %v3638_v55  ;;  %v4274_v23 = vld [vmem:[#allocation2 + $0x4a] sm:$0xff]  ;;  %v4324_v4 = vld [vmem:[#allocation3 + $0x62] sm:$0xff] }
 0x4e8   : > { %v4305_v61 = vpack.c.bf16 %v4275_v52, %v4274_v23  ;;  %v4354_v27 = vpack.c.bf16 %v4325_v60, %v4324_v4  ;;  %v4328_v4 = vld [vmem:[#allocation3 + $0x92] sm:$0xff]  ;;  %v4329_v60 = vld [vmem:[#allocation3 + $0x9a] sm:$0xff] }
 0x4ec   : > { %v3584_v43 = vpop.f32.mrf.mxu2 }
 0x4ed   : > { %v3639_v15 = vadd.f32 %v3584_v43, %v7127_v21  ;;  %v3758_v2 = vpop.f32.mrf.mxu3 }
 0x4ee   : > { %v4170_v47 = vpop.f32.mrf.mxu1 }
 0x4ef   : > { %v7280_v26 = vadd.f32 %v4170_v47, %v7186_v59  ;;  %v7284_v32 = vadd.f32 %v3758_v2, %v3639_v15  ;;  %v3901_v47 = vld [vmem:[#allocation3 + $0x159] sm:$0xff]  ;;  %v4278_v2 = vld [vmem:[#allocation2 + $0x7a] sm:$0xff] }
 0x4f1   : > { %5408 = vmatmul.msk.bf16.gmra.mxu1 %vm575_vm1, %v3918_v3  ;;  %5416 = vmatmul.msk.bf16.gmra.mxu2 %vm575_vm1, %v4305_v61  ;;  %v3900_v3 = vld [vmem:[#allocation3 + $0x151] sm:$0xff]  ;;  %v4326_v61 = vld [vmem:[#allocation3 + $0x7a] sm:$0xff] }
 0x4f2   : > { %5433 = vmatmul.msk.bf16.gmra.mxu3 %vm575_vm1, %v4353_v14  ;;  %v3920_v52 = vpack.c.bf16 %v3901_v47, %v3900_v3  ;;  %v4327_v14 = vld [vmem:[#allocation3 + $0x82] sm:$0xff] }
 0x4f3   : > { %v4355_v1 = vpack.c.bf16 %v4327_v14, %v4326_v61  ;;  %v3905_v3 = vld [vmem:[#allocation3 + $0x189] sm:$0xff]  ;;  %v4331_v61 = vld [vmem:[#allocation3 + $0xb2] sm:$0xff] }
 0x4f4   : > { %v3587_v40 = vpop.f32.mrf.mxu2 }
 0x4f5   : > { %v3640_v21 = vadd.f32 %v3587_v40, %v7134_v8  ;;  %v3761_v29 = vpop.f32.mrf.mxu3  ;;  %v4307_v40 = vpack.c.bf16 %v4279_v46, %v4278_v2  ;;  %v4283_v2 = vld [vmem:[#allocation2 + $0xb2] sm:$0xff] }
 0x4f6   : > { %v4172_v24 = vpop.f32.mrf.mxu1 }
 0x4f7   : > { %v7288_v59 = vadd.f32 %v4172_v24, %v7195_v22  ;;  %v7292_v31 = vadd.f32 %v3761_v29, %v3640_v21  ;;  %v4276_v22 = vld [vmem:[#allocation2 + $0x62] sm:$0xff] }
 0x4f8   : > { %v4306_v8 = vpack.c.bf16 %v4277_v37, %v4276_v22  ;;  %v3903_v21 = vld [vmem:[#allocation3 + $0x171] sm:$0xff]  ;;  %v4280_v22 = vld [vmem:[#allocation2 + $0x92] sm:$0xff] }
 0x4f9   : > { %v4281_v37 = vld [vmem:[#allocation2 + $0x9a] sm:$0xff] }
 0x4fc   : > { %v3589_v17 = vpop.f32.mrf.mxu2 }
 0x4fd   : > { %v3641_v35 = vadd.f32 %v3589_v17, %v7143_v34  ;;  %v3763_v62 = vpop.f32.mrf.mxu3 }
 0x4fe   : > { %v4175_v57 = vpop.f32.mrf.mxu1 }
 0x4ff   : > { %v7295_v11 = vadd.f32 %v4175_v57, %v7202_v20  ;;  %v7299_v30 = vadd.f32 %v3763_v62, %v3641_v35 }
 0x501   : > { %5409 = vmatmul.msk.bf16.gmra.mxu1 %vm575_vm1, %v3919_v16  ;;  %5417 = vmatmul.msk.bf16.gmra.mxu2 %vm575_vm1, %v4306_v8 }
 0x502   : > { %5434 = vmatmul.msk.bf16.gmra.mxu3 %vm575_vm1, %v4354_v27  ;;  %v4308_v27 = vpack.c.bf16 %v4281_v37, %v4280_v22  ;;  %v4285_v22 = vld [vmem:[#allocation2 + $0xca] sm:$0xff] }
 0x504   : > { %v3592_v25 = vpop.f32.mrf.mxu2 }
 0x505   : > { %v3642_v34 = vadd.f32 %v3592_v25, %v7150_v36  ;;  %v3766_v43 = vpop.f32.mrf.mxu3  ;;  %v3904_v25 = vld [vmem:[#allocation3 + $0x181] sm:$0xff] }
 0x506   : > { %v4177_v55 = vpop.f32.mrf.mxu1 }
 0x507   : > { %v7303_v20 = vadd.f32 %v4177_v55, %v7213_v44  ;;  %v7307_v23 = vadd.f32 %v3766_v43, %v3642_v34  ;;  %v4356_v55 = vpack.c.bf16 %v4329_v60, %v4328_v4  ;;  %v4333_v4 = vld [vmem:[#allocation3 + $0xca] sm:$0xff] }
 0x50c   : > { %v3594_v15 = vpop.f32.mrf.mxu2 }
 0x50d   : > { %v3643_v6 = vadd.f32 %v3594_v15, %v7159_v41  ;;  %v3768_v44 = vpop.f32.mrf.mxu3  ;;  %v3921_v41 = vpack.c.bf16 %v3903_v21, %v3902_v63  ;;  %v4282_v15 = vld [vmem:[#allocation2 + $0xaa] sm:$0xff] }
 0x50e   : > { %v3907_v63 = vld [vmem:[#allocation3 + $0x1a1] sm:$0xff] }
 0x50f   : > { %v7311_v24 = vadd.f32 %v3768_v44, %v3643_v6  ;;  %v4330_v44 = vld [vmem:[#allocation3 + $0xaa] sm:$0xff] }
 0x511   : > { %5410 = vmatmul.msk.bf16.gmra.mxu1 %vm575_vm1, %v3920_v52  ;;  %5418 = vmatmul.msk.bf16.gmra.mxu2 %vm575_vm1, %v4307_v40  ;;  %v4309_v40 = vpack.c.bf16 %v4283_v2, %v4282_v15  ;;  %v4334_v15 = vld [vmem:[#allocation3 + $0xda] sm:$0xff]  ;;  %v4335_v2 = vld [vmem:[#allocation3 + $0xe2] sm:$0xff] }
 0x512   : > { %5435 = vmatmul.msk.bf16.gmra.mxu3 %vm575_vm1, %v4355_v1  ;;  %v4357_v1 = vpack.c.bf16 %v4331_v61, %v4330_v44  ;;  %v4359_v44 = vpack.c.bf16 %v4335_v2, %v4334_v15 }
 0x514   : > { %v3597_v36 = vpop.f32.mrf.mxu2 }
 0x515   : > { %v3644_v29 = vadd.f32 %v3597_v36, %v7166_v45  ;;  %v3771_v16 = vpop.f32.mrf.mxu3  ;;  %v3906_v36 = vld [vmem:[#allocation3 + $0x199] sm:$0xff] }
 0x517   : > { %v7316_v57 = vadd.f32 %v3771_v16, %v3644_v29 }
 0x51c   : > { %v3599_v17 = vpop.f32.mrf.mxu2 }
 0x51d   : > { %v3645_v35 = vadd.f32 %v3599_v17, %v7175_v12  ;;  %v3773_v62 = vpop.f32.mrf.mxu3  ;;  %v3922_v12 = vpack.c.bf16 %v3905_v3, %v3904_v25  ;;  %v4284_v17 = vld [vmem:[#allocation2 + $0xc2] sm:$0xff] }
 0x51f   : > { %v7320_v8 = vadd.f32 %v3773_v62, %v3645_v35  ;;  %v4332_v62 = vld [vmem:[#allocation3 + $0xc2] sm:$0xff] }
 0x521   : > { %5411 = vmatmul.msk.bf16.gmra.mxu1 %vm575_vm1, %v3921_v41  ;;  %5419 = vmatmul.msk.bf16.gmra.mxu2 %vm575_vm1, %v4308_v27  ;;  %v4310_v27 = vpack.c.bf16 %v4285_v22, %v4284_v17 }
 0x522   : > { %5436 = vmatmul.msk.bf16.gmra.mxu3 %vm575_vm1, %v4356_v55  ;;  %v4358_v55 = vpack.c.bf16 %v4333_v4, %v4332_v62  ;;  %v4290_v4 = vld [vmem:[#allocation2 + $0x10a] sm:$0xff] }
 0x524   : > { %v3602_v45 = vpop.f32.mrf.mxu2 }
 0x525   : > { %v3646_v47 = vadd.f32 %v3602_v45, %v7182_v48  ;;  %v3776_v34 = vpop.f32.mrf.mxu3 }
 0x527   : > { %v7325_v43 = vadd.f32 %v3776_v34, %v3646_v47  ;;  %v4286_v34 = vld [vmem:[#allocation2 + $0xda] sm:$0xff] }
 0x52c   : > { %v3604_v52 = vpop.f32.mrf.mxu2 }
 0x52d   : > { %v3647_v46 = vadd.f32 %v3604_v52, %v7191_v56  ;;  %v3778_v6 = vpop.f32.mrf.mxu3  ;;  %v3923_v56 = vpack.c.bf16 %v3907_v63, %v3906_v36  ;;  %v4289_v36 = vld [vmem:[#allocation2 + $0xfa] sm:$0xff] }
 0x52f   : > { %v7329_v14 = vadd.f32 %v3778_v6, %v3647_v46 }
 0x531   : > { %5412 = vmatmul.msk.bf16.gmra.mxu1 %vm575_vm1, %v3922_v12  ;;  %5420 = vmatmul.msk.bf16.gmra.mxu2 %vm575_vm1, %v4309_v40 }
 0x532   : > { %5437 = vmatmul.msk.bf16.gmra.mxu3 %vm575_vm1, %v4357_v1 }
 0x534   : > { %v3607_v48 = vpop.f32.mrf.mxu2 }
 0x535   : > { %v3648_v21 = vadd.f32 %v3607_v48, %v7198_v50  ;;  %v3781_v29 = vpop.f32.mrf.mxu3  ;;  %v4288_v48 = vld [vmem:[#allocation2 + $0xf2] sm:$0xff] }
 0x536   : > { %v4312_v17 = vpack.c.bf16 %v4289_v36, %v4288_v48  ;;  %v4340_v36 = vld [vmem:[#allocation3 + $0x122] sm:$0xff] }
 0x537   : > { %v7334_v16 = vadd.f32 %v3781_v29, %v3648_v21  ;;  %v4336_v29 = vld [vmem:[#allocation3 + $0xf2] sm:$0xff] }
 0x53c   : > { %v3609_v41 = vpop.f32.mrf.mxu2 }
 0x53d   : > { %v3649_v37 = vadd.f32 %v3609_v41, %v7207_v39  ;;  %v3783_v35 = vpop.f32.mrf.mxu3  ;;  %v4287_v39 = vld [vmem:[#allocation2 + $0xe2] sm:$0xff] }
 0x53e   : > { %v4311_v6 = vpack.c.bf16 %v4287_v39, %v4286_v34  ;;  %v7371_v39 = vpop.f32.mrf.mxu0 }
 0x53f   : > { %v7338_v60 = vadd.f32 %v3783_v35, %v3649_v37 }
 0x541   : > { %5413 = vmatmul.msk.bf16.gmra.mxu1 %vm575_vm1, %v3923_v56  ;;  %5421 = vmatmul.msk.bf16.gmra.mxu2 %vm575_vm1, %v4310_v27  ;;  %v4337_v56 = vld [vmem:[#allocation3 + $0xfa] sm:$0xff]  ;;  %v4291_v27 = vld [vmem:[#allocation2 + $0x112] sm:$0xff] }
 0x542   : > { %5438 = vmatmul.msk.bf16.gmra.mxu3 %vm575_vm1, %v4358_v55  ;;  %v4360_v22 = vpack.c.bf16 %v4337_v56, %v4336_v29 }
 0x544   : > { %v3612_v50 = vpop.f32.mrf.mxu2 }
 0x545   : > { %v3650_v45 = vadd.f32 %v3612_v50, %v7216_v53  ;;  %v3786_v25 = vpop.f32.mrf.mxu3 }
 0x547   : > { %v7343_v3 = vadd.f32 %v3786_v25, %v3650_v45  ;;  %v4338_v45 = vld [vmem:[#allocation3 + $0x10a] sm:$0xff]  ;;  %v4339_v25 = vld [vmem:[#allocation3 + $0x112] sm:$0xff] }
 0x548   : > { %v4361_v34 = vpack.c.bf16 %v4339_v25, %v4338_v45  ;;  %v4342_v45 = vld [vmem:[#allocation3 + $0x13a] sm:$0xff]  ;;  %v4343_v25 = vld [vmem:[#allocation3 + $0x142] sm:$0xff] }
 0x54c   : > { %v3614_v47 = vpop.f32.mrf.mxu2 }
 0x54d   : > { %v3651_v12 = vadd.f32 %v3614_v47, %v7225_v5  ;;  %v3788_v52 = vpop.f32.mrf.mxu3 }
 0x54f   : > { %v7346_v46 = vadd.f32 %v3788_v52, %v3651_v12  ;;  %v7376_v12 = vpop.f32.mrf.mxu1 }
 0x551   : > { %5422 = vmatmul.msk.bf16.gmra.mxu2 %vm575_vm1, %v4311_v6  ;;  %v7384_v6 = vpop.f32.mrf.mxu0 }
 0x552   : > { %5439 = vmatmul.msk.bf16.gmra.mxu3 %vm575_vm1, %v4359_v44 }
 0x554   : > { %v3617_v53 = vpop.f32.mrf.mxu2 }
 0x555   : > { %v3652_v61 = vadd.f32 %v3617_v53, %v7232_v7  ;;  %v3791_v40 = vpop.f32.mrf.mxu3 }
 0x557   : > { %v7351_v1 = vadd.f32 %v3791_v40, %v3652_v61  ;;  %v7386_v44 = vpop.f32.mrf.mxu1  ;;  %v4292_v61 = vld [vmem:[#allocation2 + $0x122] sm:$0xff]  ;;  %v4293_v40 = vld [vmem:[#allocation2 + $0x12a] sm:$0xff] }
 0x559   : > { %v7395_v56 = vpop.f32.mrf.mxu0 }
 0x55c   : > { %v3619_v5 = vpop.f32.mrf.mxu2 }
 0x55d   : > { %v3653_v63 = vadd.f32 %v3619_v5, %v7241_v42  ;;  %v3793_v21 = vpop.f32.mrf.mxu3 }
 0x55f   : > { %v7354_v41 = vadd.f32 %v3793_v21, %v3653_v63  ;;  %v4341_v63 = vld [vmem:[#allocation3 + $0x12a] sm:$0xff]  ;;  %v4314_v21 = vpack.c.bf16 %v4293_v40, %v4292_v61 }
 0x560   : > { %v4362_v29 = vpack.c.bf16 %v4341_v63, %v4340_v36  ;;  %v4297_v36 = vld [vmem:[#allocation2 + $0x15a] sm:$0xff] }
 0x561   : > { %5423 = vmatmul.msk.bf16.gmra.mxu2 %vm575_vm1, %v4312_v17 }
 0x562   : > { %5440 = vmatmul.msk.bf16.gmra.mxu3 %vm575_vm1, %v4360_v22 }
 0x564   : > { %v4430_v7 = vpop.f32.mrf.mxu2 }
 0x565   : > { %v4510_v37 = vadd.f32 %v4430_v7, %v7248_v18  ;;  %v4604_v35 = vpop.f32.mrf.mxu3  ;;  %v4313_v18 = vpack.c.bf16 %v4291_v27, %v4290_v4  ;;  %v7398_v7 = vpop.f32.mrf.mxu1  ;;  %v4295_v4 = vld [vmem:[#allocation2 + $0x142] sm:$0xff] }
 0x567   : > { %v7362_v62 = vadd.f32 %v4604_v35, %v4510_v37 }
 0x569   : > { %4716 = vst [vmem:[%s7364_s18] sm:$0xff] %v7362_v62 }
 0x56c   : > { %v4432_v42 = vpop.f32.mrf.mxu2 }
 0x56d   : > { %v4511_v55 = vadd.f32 %v4432_v42, %v7257_v0  ;;  %v4606_v50 = vpop.f32.mrf.mxu3  ;;  %v4294_v42 = vld [vmem:[#allocation2 + $0x13a] sm:$0xff] }
 0x56f   : > { %v7369_v47 = vadd.f32 %v4606_v50, %v4511_v55  ;;  %v7405_v50 = vpop.f32.mrf.mxu0 }
 0x571   : > { %4717 = vst [vmem:[%s7364_s18 + $0x8] sm:$0xff] %v7369_v47  ;;  %5424 = vmatmul.msk.bf16.gmra.mxu2 %vm575_vm1, %v4313_v18  ;;  %v4315_v18 = vpack.c.bf16 %v4295_v4, %v4294_v42 }
 0x572   : > { %5441 = vmatmul.msk.bf16.gmra.mxu3 %vm575_vm1, %v4361_v34  ;;  %v4363_v34 = vpack.c.bf16 %v4343_v25, %v4342_v45 }
 0x574   : > { %v4435_v52 = vpop.f32.mrf.mxu2 }
 0x575   : > { %v4512_v0 = vadd.f32 %v4435_v52, %v7264_v58  ;;  %v4609_v15 = vpop.f32.mrf.mxu3  ;;  %v4187_v52 = vpop.f32.mrf.mxu1 }
 0x577   : > { %v7380_v2 = vadd.f32 %v4609_v15, %v4512_v0  ;;  %v7416_v61 = vpop.f32.mrf.mxu0 }
 0x579   : > { %4718 = vst [vmem:[%s7364_s18 + $0x10] sm:$0xff] %v7380_v2 }
 0x57c   : > { %v4437_v53 = vpop.f32.mrf.mxu2 }
 0x57d   : > { %v4513_v5 = vadd.f32 %v4437_v53, %v7273_v51  ;;  %v4611_v48 = vpop.f32.mrf.mxu3  ;;  %v7420_v40 = vpop.f32.mrf.mxu1 }
 0x57f   : > { %v7389_v58 = vadd.f32 %v4611_v48, %v4513_v5  ;;  %v4296_v48 = vld [vmem:[#allocation2 + $0x152] sm:$0xff]  ;;  %v4018_v42 = vpop.f32.mrf.mxu0 }
 0x581   : > { %4719 = vst [vmem:[%s7364_s18 + $0x18] sm:$0xff] %v7389_v58  ;;  %5425 = vmatmul.msk.bf16.gmra.mxu2 %vm575_vm1, %v4314_v21 }
 0x582   : > { %5442 = vmatmul.msk.bf16.gmra.mxu3 %vm575_vm1, %v4362_v29  ;;  %v4344_v29 = vld [vmem:[#allocation3 + $0x152] sm:$0xff] }
 0x584   : > { %v4440_v17 = vpop.f32.mrf.mxu2 }
 0x585   : > { %v4514_v22 = vadd.f32 %v4440_v17, %v7280_v26  ;;  %v4614_v51 = vpop.f32.mrf.mxu3  ;;  %v4345_v17 = vld [vmem:[#allocation3 + $0x15a] sm:$0xff]  ;;  %v4192_v4 = vpop.f32.mrf.mxu1 }
 0x587   : > { %v7400_v37 = vadd.f32 %v4614_v51, %v4514_v22  ;;  %v4316_v22 = vpack.c.bf16 %v4297_v36, %v4296_v48  ;;  %v4364_v51 = vpack.c.bf16 %v4345_v17, %v4344_v29 }
 0x589   : > { %4720 = vst [vmem:[%s7364_s18 + $0x20] sm:$0xff] %v7400_v37 }
 0x58c   : > { %v4442_v35 = vpop.f32.mrf.mxu2 }
 0x58d   : > { %v4515_v27 = vadd.f32 %v4442_v35, %v7288_v59  ;;  %v4616_v55 = vpop.f32.mrf.mxu3  ;;  %v4074_v35 = vadd.f32 %v7371_v39, %v7211_v33  ;;  %v4346_v39 = vld [vmem:[#allocation3 + $0x16a] sm:$0xff]  ;;  %v4195_v36 = vpop.f32.mrf.mxu1 }
 0x58f   : > { %v7407_v26 = vadd.f32 %v4616_v55, %v4515_v27 }
 0x591   : > { %4721 = vst [vmem:[%s7364_s18 + $0x28] sm:$0xff] %v7407_v26  ;;  %5426 = vmatmul.msk.bf16.gmra.mxu2 %vm575_vm1, %v4315_v18  ;;  %v4075_v18 = vadd.f32 %v7384_v6, %v7220_v54  ;;  %v4076_v54 = vadd.f32 %v7395_v56, %v7229_v10  ;;  %v4348_v56 = vld [vmem:[#allocation3 + $0x182] sm:$0xff] }
 0x592   : > { %5443 = vmatmul.msk.bf16.gmra.mxu3 %vm575_vm1, %v4363_v34  ;;  %v4347_v34 = vld [vmem:[#allocation3 + $0x172] sm:$0xff] }
 0x593   : > { %v4249_v33 = vadd.f32 %v7386_v44, %v4075_v18  ;;  %v4250_v6 = vadd.f32 %v7398_v7, %v4076_v54  ;;  %v4300_v18 = vld [vmem:[#allocation2 + $0x182] sm:$0xff]  ;;  %v4079_v54 = vadd.f32 %v4018_v42, %v7252_v19 }
 0x594   : > { %v4445_v0 = vpop.f32.mrf.mxu2 }
 0x595   : > { %v4516_v59 = vadd.f32 %v4445_v0, %v7295_v11  ;;  %v4619_v15 = vpop.f32.mrf.mxu3  ;;  %v4021_v0 = vpop.f32.mrf.mxu0 }
 0x596   : > { %v4080_v19 = vadd.f32 %v4021_v0, %v7261_v13 }
 0x597   : > { %v7414_v53 = vadd.f32 %v4619_v15, %v4516_v59  ;;  %v4298_v15 = vld [vmem:[#allocation2 + $0x16a] sm:$0xff] }
 0x598   : > { %v4254_v42 = vadd.f32 %v4195_v36, %v4080_v19 }
 0x599   : > { %4722 = vst [vmem:[%s7364_s18 + $0x30] sm:$0xff] %v7414_v53 }
 0x59c   : > { %v4447_v5 = vpop.f32.mrf.mxu2 }
 0x59d   : > { %v4517_v63 = vadd.f32 %v4447_v5, %v7303_v20  ;;  %v4621_v21 = vpop.f32.mrf.mxu3  ;;  %v4248_v20 = vadd.f32 %v7376_v12, %v4074_v35  ;;  %v4299_v12 = vld [vmem:[#allocation2 + $0x172] sm:$0xff] }
 0x59e   : > { %v4317_v29 = vpack.c.bf16 %v4299_v12, %v4298_v15 }
 0x59f   : > { %v7423_v11 = vadd.f32 %v4621_v21, %v4517_v63  ;;  %v4365_v63 = vpack.c.bf16 %v4347_v34, %v4346_v39 }
 0x5a1   : > { %4723 = vst [vmem:[%s7364_s18 + $0x38] sm:$0xff] %v7423_v11  ;;  %5427 = vmatmul.msk.bf16.gmra.mxu2 %vm575_vm1, %v4316_v22 }
 0x5a2   : > { %5444 = vmatmul.msk.bf16.gmra.mxu3 %vm575_vm1, %v4364_v51  ;;  %v4023_v51 = vpop.f32.mrf.mxu0 }
 0x5a4   : > { %v4450_v27 = vpop.f32.mrf.mxu2 }
 0x5a5   : > { %v4518_v55 = vadd.f32 %v4450_v27, %v4248_v20  ;;  %v4624_v45 = vpop.f32.mrf.mxu3  ;;  %v4197_v20 = vpop.f32.mrf.mxu1  ;;  %v4077_v27 = vadd.f32 %v7405_v50, %v7236_v28 }
 0x5a7   : > { %v7432_v25 = vadd.f32 %v4624_v45, %v4518_v55  ;;  %v4251_v10 = vadd.f32 %v4187_v52, %v4077_v27  ;;  %v4349_v55 = vld [vmem:[#allocation3 + $0x18a] sm:$0xff] }
 0x5a8   : > { %v4366_v34 = vpack.c.bf16 %v4349_v55, %v4348_v56 }
 0x5a9   : > { %4724 = vst [vmem:[%s7364_s18 + $0x40] sm:$0xff] %v7432_v25 }
 0x5aa   : > { %v4026_v12 = vpop.f32.mrf.mxu0 }
 0x5ac   : > { %v4452_v59 = vpop.f32.mrf.mxu2 }
 0x5ad   : > { %v4519_v5 = vadd.f32 %v4452_v59, %v4249_v33  ;;  %v4626_v48 = vpop.f32.mrf.mxu3  ;;  %v4301_v33 = vld [vmem:[#allocation2 + $0x18a] sm:$0xff]  ;;  %v4200_v28 = vpop.f32.mrf.mxu1 }
 0x5ae   : > { %v4318_v15 = vpack.c.bf16 %v4301_v33, %v4300_v18 }
 0x5af   : > { %v7439_v21 = vadd.f32 %v4626_v48, %v4519_v5  ;;  %v4078_v5 = vadd.f32 %v7416_v61, %v7245_v49  ;;  %v4302_v61 = vld [vmem:[#allocation2 + $0x19a] sm:$0xff] }
 0x5b1   : > { %4725 = vst [vmem:[%s7364_s18 + $0x48] sm:$0xff] %v7439_v21  ;;  %5428 = vmatmul.msk.bf16.gmra.mxu2 %vm575_vm1, %v4317_v29  ;;  %v4252_v50 = vadd.f32 %v7420_v40, %v4078_v5  ;;  %v4081_v5 = vadd.f32 %v4023_v51, %v7268_v9 }
 0x5b2   : > { %5445 = vmatmul.msk.bf16.gmra.mxu3 %vm575_vm1, %v4365_v63  ;;  %v4028_v49 = vpop.f32.mrf.mxu0 }
 0x5b3   : > { %v4255_v13 = vadd.f32 %v4197_v20, %v4081_v5 }
 0x5b4   : > { %v4455_v44 = vpop.f32.mrf.mxu2 }
 0x5b5   : > { %v4520_v17 = vadd.f32 %v4455_v44, %v4250_v6  ;;  %v4629_v22 = vpop.f32.mrf.mxu3  ;;  %v4303_v6 = vld [vmem:[#allocation2 + $0x1a2] sm:$0xff]  ;;  %v4253_v44 = vadd.f32 %v4192_v4, %v4079_v54  ;;  %v4202_v27 = vpop.f32.mrf.mxu1  ;;  %v4082_v54 = vadd.f32 %v4026_v12, %v7277_v38 }
 0x5b6   : > { %v4319_v55 = vpack.c.bf16 %v4303_v6, %v4302_v61 }
 0x5b7   : > { %v7448_v35 = vadd.f32 %v4629_v22, %v4520_v17  ;;  %v4350_v17 = vld [vmem:[#allocation3 + $0x19a] sm:$0xff]  ;;  %v4351_v22 = vld [vmem:[#allocation3 + $0x1a2] sm:$0xff]  ;;  %v4256_v61 = vadd.f32 %v4200_v28, %v4082_v54 }
 0x5b9   : > { %4726 = vst [vmem:[%s7364_s18 + $0x50] sm:$0xff] %v7448_v35 }
 0x5ba   : > { %v4031_v4 = vpop.f32.mrf.mxu0 }
 0x5bb   : > { %v4084_v28 = vadd.f32 %v4031_v4, %v7292_v31 }
 0x5bc   : > { %v4457_v45 = vpop.f32.mrf.mxu2 }
 0x5bd   : > { %v4521_v7 = vadd.f32 %v4457_v45, %v4251_v10  ;;  %v4631_v39 = vpop.f32.mrf.mxu3  ;;  %v4367_v45 = vpack.c.bf16 %v4351_v22, %v4350_v17  ;;  %v4083_v17 = vadd.f32 %v4028_v49, %v7284_v32 }
 0x5bf   : > { %v7454_v59 = vadd.f32 %v4631_v39, %v4521_v7 }
 0x5c1   : > { %4727 = vst [vmem:[%s7364_s18 + $0x58] sm:$0xff] %v7454_v59  ;;  %5429 = vmatmul.msk.bf16.gmra.mxu2 %vm575_vm1, %v4318_v15 }
 0x5c2   : > { %5446 = vmatmul.msk.bf16.gmra.mxu3 %vm575_vm1, %v4366_v34  ;;  %v4205_v34 = vpop.f32.mrf.mxu1 }
 0x5c4   : > { %v4460_v52 = vpop.f32.mrf.mxu2 }
 0x5c5   : > { %v4522_v48 = vadd.f32 %v4460_v52, %v4252_v50  ;;  %v4634_v63 = vpop.f32.mrf.mxu3 }
 0x5c7   : > { %v7463_v29 = vadd.f32 %v4634_v63, %v4522_v48  ;;  %v4033_v48 = vpop.f32.mrf.mxu0 }
 0x5c9   : > { %4728 = vst [vmem:[%s7364_s18 + $0x60] sm:$0xff] %v7463_v29 }
 0x5ca   : > { %v4207_v36 = vpop.f32.mrf.mxu1 }
 0x5cc   : > { %v4462_v10 = vpop.f32.mrf.mxu2 }
 0x5cd   : > { %v4523_v56 = vadd.f32 %v4462_v10, %v4253_v44  ;;  %v4636_v40 = vpop.f32.mrf.mxu3  ;;  %v4257_v10 = vadd.f32 %v4202_v27, %v4083_v17  ;;  %v4085_v27 = vadd.f32 %v4033_v48, %v7299_v30 }
 0x5cf   : > { %v7468_v18 = vadd.f32 %v4636_v40, %v4523_v56  ;;  %v4036_v20 = vpop.f32.mrf.mxu0 }
 0x5d1   : > { %4729 = vst [vmem:[%s7364_s18 + $0x68] sm:$0xff] %v7468_v18  ;;  %5430 = vmatmul.msk.bf16.gmra.mxu2 %vm575_vm1, %v4319_v55 }
 0x5d2   : > { %5447 = vmatmul.msk.bf16.gmra.mxu3 %vm575_vm1, %v4367_v45  ;;  %v4210_v22 = vpop.f32.mrf.mxu1  ;;  %v4258_v45 = vadd.f32 %v4205_v34, %v4084_v28  ;;  %v4086_v34 = vadd.f32 %v4036_v20, %v7307_v23  ;;  %v4748_v23 = vadd.f32 %v7369_v47, %v7362_v62 }
 0x5d4   : > { %v4465_v33 = vpop.f32.mrf.mxu2 }
 0x5d5   : > { %v4524_v7 = vadd.f32 %v4465_v33, %v4254_v42  ;;  %v4639_v39 = vpop.f32.mrf.mxu3 }
 0x5d7   : > { %v7475_v15 = vadd.f32 %v4639_v39, %v4524_v7  ;;  %v4038_v55 = vpop.f32.mrf.mxu0  ;;  %v4259_v7 = vadd.f32 %v4207_v36, %v4085_v27 }
 0x5d9   : > { %4730 = vst [vmem:[%s7364_s18 + $0x70] sm:$0xff] %v7475_v15 }
 0x5da   : > { %v4212_v19 = vpop.f32.mrf.mxu1 }
 0x5dc   : > { %v4467_v0 = vpop.f32.mrf.mxu2 }
 0x5dd   : > { %v4525_v50 = vadd.f32 %v4467_v0, %v4255_v13  ;;  %v4641_v52 = vpop.f32.mrf.mxu3 }
 0x5df   : > { %v7480_v63 = vadd.f32 %v4641_v52, %v4525_v50  ;;  %v4041_v39 = vpop.f32.mrf.mxu0  ;;  %v4260_v50 = vadd.f32 %v4210_v22, %v4086_v34  ;;  %v4749_v22 = vadd.f32 %v4748_v23, %v7380_v2 }
 0x5e1   : > { %4731 = vst [vmem:[%s7364_s18 + $0x78] sm:$0xff] %v7480_v63 }
 0x5e2   : > { %v4215_v13 = vpop.f32.mrf.mxu1 }
 0x5e4   : > { %v4470_v6 = vpop.f32.mrf.mxu2 }
 0x5e5   : > { %v4526_v44 = vadd.f32 %v4470_v6, %v4256_v61  ;;  %v4644_v9 = vpop.f32.mrf.mxu3  ;;  %v4087_v6 = vadd.f32 %v4038_v55, %v7311_v24 }
 0x5e7   : > { %v7485_v51 = vadd.f32 %v4644_v9, %v4526_v44  ;;  %v4043_v30 = vpop.f32.mrf.mxu0  ;;  %v4261_v44 = vadd.f32 %v4212_v19, %v4087_v6 }
 0x5e9   : > { %4732 = vst [vmem:[%s7364_s18 + $0x80] sm:$0xff] %v7485_v51 }
 0x5ea   : > { %v4217_v36 = vpop.f32.mrf.mxu1 }
 0x5ec   : > { %v4472_v56 = vpop.f32.mrf.mxu2 }
 0x5ed   : > { %v4527_v40 = vadd.f32 %v4472_v56, %v4257_v10  ;;  %v4646_v38 = vpop.f32.mrf.mxu3 }
 0x5ef   : > { %v7490_v12 = vadd.f32 %v4646_v38, %v4527_v40  ;;  %v4046_v56 = vpop.f32.mrf.mxu0  ;;  %v4088_v40 = vadd.f32 %v4041_v39, %v7316_v57  ;;  %v4750_v38 = vadd.f32 %v4749_v22, %v7389_v58  ;;  %v4089_v57 = vadd.f32 %v4043_v30, %v7320_v8 }
 0x5f0   : > { %v4090_v8 = vadd.f32 %v4046_v56, %v7325_v43 }
 0x5f1   : > { %4733 = vst [vmem:[%s7364_s18 + $0x88] sm:$0xff] %v7490_v12  ;;  %v4262_v28 = vadd.f32 %v4215_v13, %v4088_v40  ;;  %v4751_v55 = vadd.f32 %v4750_v38, %v7400_v37 }
 0x5f2   : > { %v4220_v24 = vpop.f32.mrf.mxu1 }
 0x5f3   : > { %v4752_v19 = vadd.f32 %v4751_v55, %v7407_v26 }
 0x5f4   : > { %v4475_v42 = vpop.f32.mrf.mxu2 }
 0x5f5   : > { %v4528_v32 = vadd.f32 %v4475_v42, %v4258_v45  ;;  %v4649_v49 = vpop.f32.mrf.mxu3 }
 0x5f7   : > { %v7495_v33 = vadd.f32 %v4649_v49, %v4528_v32  ;;  %v4753_v49 = vadd.f32 %v4752_v19, %v7414_v53  ;;  %v4048_v39 = vpop.f32.mrf.mxu0 }
 0x5f8   : > { %v4091_v43 = vadd.f32 %v4048_v39, %v7329_v14 }
 0x5f9   : > { %4734 = vst [vmem:[%s7364_s18 + $0x90] sm:$0xff] %v7495_v33 }
 0x5fc   : > { %v4477_v5 = vpop.f32.mrf.mxu2 }
 0x5fd   : > { %v4529_v31 = vadd.f32 %v4477_v5, %v4259_v7  ;;  %v4651_v4 = vpop.f32.mrf.mxu3  ;;  %v4754_v7 = vadd.f32 %v4753_v49, %v7423_v11  ;;  %v4263_v5 = vadd.f32 %v4217_v36, %v4089_v57  ;;  %v4264_v36 = vadd.f32 %v4220_v24, %v4090_v8 }
 0x5ff   : > { %v7500_v0 = vadd.f32 %v4651_v4, %v4529_v31  ;;  %v4755_v31 = vadd.f32 %v4754_v7, %v7432_v25  ;;  %v4222_v4 = vpop.f32.mrf.mxu1 }
 0x600   : > { %v4265_v24 = vadd.f32 %v4222_v4, %v4091_v43 }
 0x601   : > { %4735 = vst [vmem:[%s7364_s18 + $0x98] sm:$0xff] %v7500_v0  ;;  %v4756_v34 = vadd.f32 %v4755_v31, %v7439_v21 }
 0x604   : > { %v4480_v52 = vpop.f32.mrf.mxu2 }
 0x605   : > { %v4530_v54 = vadd.f32 %v4480_v52, %v4260_v50  ;;  %v4654_v61 = vpop.f32.mrf.mxu3 }
 0x607   : > { %v7505_v48 = vadd.f32 %v4654_v61, %v4530_v54  ;;  %v4757_v54 = vadd.f32 %v4756_v34, %v7448_v35  ;;  %v4225_v22 = vpop.f32.mrf.mxu1 }
 0x609   : > { %4736 = vst [vmem:[%s7364_s18 + $0xa0] sm:$0xff] %v7505_v48  ;;  %v4758_v30 = vadd.f32 %v4757_v54, %v7454_v59 }
 0x60b   : > { %v4759_v6 = vadd.f32 %v4758_v30, %v7463_v29 }
 0x60c   : > { %v4482_v9 = vpop.f32.mrf.mxu2 }
 0x60d   : > { %v4531_v20 = vadd.f32 %v4482_v9, %v4261_v44  ;;  %v4656_v17 = vpop.f32.mrf.mxu3  ;;  %v4051_v44 = vpop.f32.mrf.mxu0  ;;  %v4760_v23 = vadd.f32 %v4759_v6, %v7468_v18 }
 0x60e   : > { %v4092_v14 = vadd.f32 %v4051_v44, %v7334_v16 }
 0x60f   : > { %v7513_v10 = vadd.f32 %v4656_v17, %v4531_v20  ;;  %v4761_v40 = vadd.f32 %v4760_v23, %v7475_v15  ;;  %v4227_v7 = vpop.f32.mrf.mxu1 }
 0x611   : > { %4737 = vst [vmem:[%s7364_s18 + $0xa8] sm:$0xff] %v7513_v10  ;;  %v4762_v56 = vadd.f32 %v4761_v40, %v7480_v63 }
 0x614   : > { %v4485_v45 = vpop.f32.mrf.mxu2 }
 0x615   : > { %v4532_v42 = vadd.f32 %v4485_v45, %v4262_v28  ;;  %v4659_v32 = vpop.f32.mrf.mxu3  ;;  %v4763_v28 = vadd.f32 %v4762_v56, %v7485_v51 }
 0x617   : > { %v7522_v27 = vadd.f32 %v4659_v32, %v4532_v42  ;;  %v4764_v45 = vadd.f32 %v4763_v28, %v7490_v12  ;;  %v4053_v32 = vpop.f32.mrf.mxu0 }
 0x618   : > { %v4093_v16 = vadd.f32 %v4053_v32, %v7338_v60 }
 0x619   : > { %4738 = vst [vmem:[%s7364_s18 + $0xb0] sm:$0xff] %v7522_v27  ;;  %v4765_v49 = vadd.f32 %v4764_v45, %v7495_v33 }
 0x61a   : > { %v4267_v6 = vadd.f32 %v4227_v7, %v4093_v16 }
 0x61b   : > { %v4766_v39 = vadd.f32 %v4765_v49, %v7500_v0 }
 0x61c   : > { %v4487_v13 = vpop.f32.mrf.mxu2 }
 0x61d   : > { %v4533_v50 = vadd.f32 %v4487_v13, %v4263_v5  ;;  %v4661_v52 = vpop.f32.mrf.mxu3  ;;  %v4266_v5 = vadd.f32 %v4225_v22, %v4092_v14  ;;  %v4767_v31 = vadd.f32 %v4766_v39, %v7505_v48 }
 0x61f   : > { %v7531_v61 = vadd.f32 %v4661_v52, %v4533_v50  ;;  %v4768_v13 = vadd.f32 %v4767_v31, %v7513_v10  ;;  %v4056_v8 = vpop.f32.mrf.mxu0 }
 0x620   : > { %v4094_v43 = vadd.f32 %v4056_v8, %v7343_v3 }
 0x621   : > { %4739 = vst [vmem:[%s7364_s18 + $0xb8] sm:$0xff] %v7531_v61  ;;  %v4769_v52 = vadd.f32 %v4768_v13, %v7522_v27 }
 0x623   : > { %v4770_v30 = vadd.f32 %v4769_v52, %v7531_v61 }
 0x624   : > { %v4490_v9 = vpop.f32.mrf.mxu2 }
 0x625   : > { %v4534_v20 = vadd.f32 %v4490_v9, %v4264_v36  ;;  %v4664_v17 = vpop.f32.mrf.mxu3  ;;  %v4230_v36 = vpop.f32.mrf.mxu1 }
 0x627   : > { %v7540_v38 = vadd.f32 %v4664_v17, %v4534_v20  ;;  %v4058_v56 = vpop.f32.mrf.mxu0 }
 0x628   : > { %v4095_v32 = vadd.f32 %v4058_v56, %v7346_v46 }
 0x629   : > { %4740 = vst [vmem:[%s7364_s18 + $0xc0] sm:$0xff] %v7540_v38  ;;  %v4771_v44 = vadd.f32 %v4770_v30, %v7540_v38 }
 0x62c   : > { %v4492_v55 = vpop.f32.mrf.mxu2 }
 0x62d   : > { %v4535_v19 = vadd.f32 %v4492_v55, %v4265_v24  ;;  %v4666_v42 = vpop.f32.mrf.mxu3  ;;  %v4268_v24 = vadd.f32 %v4230_v36, %v4094_v43  ;;  %v4232_v28 = vpop.f32.mrf.mxu1  ;;  %v5623_v36 = vmov 256.0  }
 0x62e   : > { %v4269_v7 = vadd.f32 %v4232_v28, %v4095_v32  ;;  %5518 = vrcp.f32 %v5623_v36 }
 0x62f   : > { %v7549_v57 = vadd.f32 %v4666_v42, %v4535_v19  ;;  %v4061_v14 = vpop.f32.mrf.mxu0 }
 0x630   : > { %v4096_v13 = vadd.f32 %v4061_v14, %v7351_v1 }
 0x631   : > { %4741 = vst [vmem:[%s7364_s18 + $0xc8] sm:$0xff] %v7549_v57  ;;  %v4772_v23 = vadd.f32 %v4771_v44, %v7549_v57 }
 0x634   : > { %v4495_v4 = vpop.f32.mrf.mxu2 }
 0x635   : > { %v4536_v34 = vadd.f32 %v4495_v4, %v4266_v5  ;;  %v4669_v50 = vpop.f32.mrf.mxu3  ;;  %v4235_v3 = vpop.f32.mrf.mxu1 }
 0x637   : > { %v7558_v54 = vadd.f32 %v4669_v50, %v4536_v34  ;;  %v4270_v50 = vadd.f32 %v4235_v3, %v4096_v13  ;;  %v4063_v46 = vpop.f32.mrf.mxu0 }
 0x638   : > { %v4097_v44 = vadd.f32 %v4063_v46, %v7354_v41 }
 0x639   : > { %4742 = vst [vmem:[%s7364_s18 + $0xd0] sm:$0xff] %v7558_v54  ;;  %v4773_v22 = vadd.f32 %v4772_v23, %v7558_v54 }
 0x63c   : > { %v4497_v9 = vpop.f32.mrf.mxu2 }
 0x63d   : > { %v4537_v20 = vadd.f32 %v4497_v9, %v4267_v6  ;;  %v4671_v17 = vpop.f32.mrf.mxu3  ;;  %v4237_v6 = vpop.f32.mrf.mxu1 }
 0x63e   : > { %v4271_v23 = vadd.f32 %v4237_v6, %v4097_v44 }
 0x63f   : > { %v4711_v40 = vadd.f32 %v4671_v17, %v4537_v20  ;;  %v5519_v17 = vpop.eup %5518 }
 0x640   : > { %vm4790_vm4 = vweird.f32 %v5519_v17 }
 0x641   : > { %4743 = vst [vmem:[%s7364_s18 + $0xd8] sm:$0xff] %v4711_v40  ;;  %v4774_v60 = vadd.f32 %v4773_v22, %v4711_v40 }
 0x644   : > { %v4500_v55 = vpop.f32.mrf.mxu2 }
 0x645   : > { %v4538_v45 = vadd.f32 %v4500_v55, %v4268_v24  ;;  %v4674_v19 = vpop.f32.mrf.mxu3 }
 0x647   : > { %v4712_v42 = vadd.f32 %v4674_v19, %v4538_v45 }
 0x649   : > { %4744 = vst [vmem:[%s7364_s18 + $0xe0] sm:$0xff] %v4712_v42  ;;  %v4775_v49 = vadd.f32 %v4774_v60, %v4712_v42  ;;  %v4786_v60 = vmul.f32 256.0, %v5519_v17 }
 0x64b   : > { %v4787_v28 = vsub.f32 1.0, %v4786_v60 }
 0x64c   : > { %v4502_v39 = vpop.f32.mrf.mxu2 }
 0x64d   : > { %v4539_v5 = vadd.f32 %v4502_v39, %v4269_v7  ;;  %v4676_v31 = vpop.f32.mrf.mxu3  ;;  %v4788_v19 = vmul.f32 %v5519_v17, %v4787_v28 }
 0x64f   : > { %v4713_v4 = vadd.f32 %v4676_v31, %v4539_v5  ;;  %v4789_v7 = vadd.f32 %v5519_v17, %v4788_v19 }
 0x651   : > { %4745 = vst [vmem:[%s7364_s18 + $0xe8] sm:$0xff] %v4713_v4  ;;  %v4776_v34 = vadd.f32 %v4775_v49, %v4713_v4  ;;  %v4791_v14 = vsel %vm4790_vm4, %v5519_v17, %v4789_v7 }
 0x654   : > { %v4505_v52 = vpop.f32.mrf.mxu2 }
 0x655   : > { %v4540_v8 = vadd.f32 %v4505_v52, %v4270_v50  ;;  %v4679_v16 = vpop.f32.mrf.mxu3 }
 0x657   : > { %v4714_v30 = vadd.f32 %v4679_v16, %v4540_v8 }
 0x659   : > { %4746 = vst [vmem:[%s7364_s18 + $0xf0] sm:$0xff] %v4714_v30  ;;  %v4777_v9 = vadd.f32 %v4776_v34, %v4714_v30 }
 0x65c   : > { %v4507_v20 = vpop.f32.mrf.mxu2 }
 0x65d   : > { %v4541_v1 = vadd.f32 %v4507_v20, %v4271_v23  ;;  %v4681_v22 = vpop.f32.mrf.mxu3 }
 0x65f   : > { %v4715_v43 = vadd.f32 %v4681_v22, %v4541_v1 }
 0x661   : > { %4747 = vst [vmem:[%s7364_s18 + $0xf8] sm:$0xff] %v4715_v43  ;;  %v4778_v56 = vadd.f32 %v4777_v9, %v4715_v43 }
 0x663   : > { %v4779_v24 = vrot.slane %v4778_v56, 4 }
 0x665   : > { %v4780_v55 = vadd.f32 %v4779_v24, %v4778_v56 }
 0x667   : > { %v4781_v45 = vrot.slane %v4780_v55, 2 }
 0x669   : > { %v4782_v32 = vadd.f32 %v4781_v45, %v4780_v55 }
 0x66b   : > { %v4783_v49 = vrot.slane %v4782_v32, 1 }
 0x66d   : > { %v4784_v41 = vadd.f32 %v4783_v49, %v4782_v32 }
 0x66f   : > { %v7576_v39 = vmul.f32 %v4791_v14, %v4784_v41 }
 0x671   : > { %v7580_v5 = vsub.f32 %v7558_v54, %v7576_v39  ;;  %v7583_v31 = vsub.f32 %v4711_v40, %v7576_v39  ;;  %v7586_v3 = vsub.f32 %v4712_v42, %v7576_v39  ;;  %v7589_v13 = vsub.f32 %v4713_v4, %v7576_v39 }
 0x672   : > { %v7592_v34 = vsub.f32 %v4714_v30, %v7576_v39  ;;  %v7595_v50 = vsub.f32 %v4715_v43, %v7576_v39  ;;  %v4793_v52 = vsub.f32 %v7362_v62, %v7576_v39  ;;  %v4794_v54 = vsub.f32 %v7369_v47, %v7576_v39 }
 0x673   : > { %v4795_v40 = vsub.f32 %v7380_v2, %v7576_v39  ;;  %v4796_v4 = vsub.f32 %v7389_v58, %v7576_v39  ;;  %v4797_v16 = vsub.f32 %v7400_v37, %v7576_v39  ;;  %v4798_v36 = vsub.f32 %v7407_v26, %v7576_v39 }
 0x674   : > { %v4825_v42 = vmul.f32 %v4793_v52, %v4793_v52  ;;  %v4826_v8 = vmul.f32 %v4794_v54, %v4794_v54  ;;  %v4799_v47 = vsub.f32 %v7414_v53, %v7576_v39  ;;  %v4800_v9 = vsub.f32 %v7423_v11, %v7576_v39 }
 0x675   : > { %v4827_v46 = vmul.f32 %v4795_v40, %v4795_v40  ;;  %v4828_v62 = vmul.f32 %v4796_v4, %v4796_v4  ;;  %v4829_v44 = vmul.f32 %v4797_v16, %v4797_v16  ;;  %v4830_v23 = vmul.f32 %v4798_v36, %v4798_v36 }
 0x676   : > { %v4857_v30 = vadd.f32 %v4826_v8, %v4825_v42  ;;  %v4801_v37 = vsub.f32 %v7432_v25, %v7576_v39  ;;  %v4831_v20 = vmul.f32 %v4799_v47, %v4799_v47  ;;  %v4802_v26 = vsub.f32 %v7439_v21, %v7576_v39 }
 0x677   : > { %v4832_v1 = vmul.f32 %v4800_v9, %v4800_v9  ;;  %v4803_v53 = vsub.f32 %v7448_v35, %v7576_v39  ;;  %v4804_v11 = vsub.f32 %v7454_v59, %v7576_v39  ;;  %v4805_v25 = vsub.f32 %v7463_v29, %v7576_v39 }
 0x678   : > { %v4858_v6 = vadd.f32 %v4857_v30, %v4827_v46  ;;  %v4833_v43 = vmul.f32 %v4801_v37, %v4801_v37  ;;  %v4834_v56 = vmul.f32 %v4802_v26, %v4802_v26  ;;  %v4806_v21 = vsub.f32 %v7468_v18, %v7576_v39 }
 0x679   : > { %v4835_v28 = vmul.f32 %v4803_v53, %v4803_v53  ;;  %v4836_v45 = vmul.f32 %v4804_v11, %v4804_v11  ;;  %v4807_v35 = vsub.f32 %v7475_v15, %v7576_v39  ;;  %v4837_v32 = vmul.f32 %v4805_v25, %v4805_v25 }
 0x67a   : > { %v4859_v2 = vadd.f32 %v4858_v6, %v4828_v62  ;;  %v4808_v59 = vsub.f32 %v7480_v63, %v7576_v39  ;;  %v4838_v7 = vmul.f32 %v4806_v21, %v4806_v21  ;;  %v4809_v29 = vsub.f32 %v7485_v51, %v7576_v39 }
 0x67b   : > { %v4839_v14 = vmul.f32 %v4807_v35, %v4807_v35  ;;  %v4810_v18 = vsub.f32 %v7490_v12, %v7576_v39  ;;  %v4811_v15 = vsub.f32 %v7495_v33, %v7576_v39  ;;  %v4812_v63 = vsub.f32 %v7500_v0, %v7576_v39 }
 0x67c   : > { %v4860_v58 = vadd.f32 %v4859_v2, %v4829_v44  ;;  %v4840_v54 = vmul.f32 %v4808_v59, %v4808_v59  ;;  %v4841_v42 = vmul.f32 %v4809_v29, %v4809_v29  ;;  %v4813_v51 = vsub.f32 %v7505_v48, %v7576_v39 }
 0x67d   : > { %v4842_v4 = vmul.f32 %v4810_v18, %v4810_v18  ;;  %v4843_v46 = vmul.f32 %v4811_v15, %v4811_v15  ;;  %v4814_v12 = vsub.f32 %v7513_v10, %v7576_v39  ;;  %v4844_v36 = vmul.f32 %v4812_v63, %v4812_v63 }
 0x67e   : > { %v4861_v17 = vadd.f32 %v4860_v58, %v4830_v23  ;;  %v4815_v33 = vsub.f32 %v7522_v27, %v7576_v39  ;;  %v4845_v6 = vmul.f32 %v4813_v51, %v4813_v51  ;;  %v4816_v0 = vsub.f32 %v7531_v61, %v7576_v39 }
 0x67f   : > { %v4846_v44 = vmul.f32 %v4814_v12, %v4814_v12  ;;  %v4817_v48 = vsub.f32 %v7540_v38, %v7576_v39  ;;  %v4818_v10 = vsub.f32 %v7549_v57, %v7576_v39  ;;  %v4853_v38 = vmul.f32 %v7586_v3, %v7586_v3 }
 0x680   : > { %v4862_v22 = vadd.f32 %v4861_v17, %v4831_v20  ;;  %v4847_v9 = vmul.f32 %v4815_v33, %v4815_v33  ;;  %v4848_v58 = vmul.f32 %v4816_v0, %v4816_v0  ;;  %v4854_v57 = vmul.f32 %v7589_v13, %v7589_v13 }
 0x681   : > { %v4849_v20 = vmul.f32 %v4817_v48, %v4817_v48  ;;  %v4850_v27 = vmul.f32 %v4818_v10, %v4818_v10  ;;  %v4855_v11 = vmul.f32 %v7592_v34, %v7592_v34 }
 0x682   : > { %v4863_v60 = vadd.f32 %v4862_v22, %v4832_v1  ;;  %v4851_v1 = vmul.f32 %v7580_v5, %v7580_v5  ;;  %v4852_v22 = vmul.f32 %v7583_v31, %v7583_v31  ;;  %v4856_v5 = vmul.f32 %v7595_v50, %v7595_v50 }
 0x684   : > { %v4864_v24 = vadd.f32 %v4863_v60, %v4833_v43 }
 0x686   : > { %v4865_v55 = vadd.f32 %v4864_v24, %v4834_v56 }
 0x688   : > { %v4866_v19 = vadd.f32 %v4865_v55, %v4835_v28 }
 0x68a   : > { %v4867_v49 = vadd.f32 %v4866_v19, %v4836_v45 }
 0x68c   : > { %v4868_v41 = vadd.f32 %v4867_v49, %v4837_v32 }
 0x68e   : > { %v4869_v52 = vadd.f32 %v4868_v41, %v4838_v7 }
 0x690   : > { %v4870_v40 = vadd.f32 %v4869_v52, %v4839_v14 }
 0x692   : > { %v4871_v8 = vadd.f32 %v4870_v40, %v4840_v54 }
 0x694   : > { %v4872_v16 = vadd.f32 %v4871_v8, %v4841_v42 }
 0x696   : > { %v4873_v30 = vadd.f32 %v4872_v16, %v4842_v4 }
 0x698   : > { %v4874_v62 = vadd.f32 %v4873_v30, %v4843_v46 }
 0x69a   : > { %v4875_v47 = vadd.f32 %v4874_v62, %v4844_v36 }
 0x69c   : > { %v4876_v2 = vadd.f32 %v4875_v47, %v4845_v6 }
 0x69e   : > { %v4877_v23 = vadd.f32 %v4876_v2, %v4846_v44 }
 0x6a0   : > { %v4878_v37 = vadd.f32 %v4877_v23, %v4847_v9 }
 0x6a2   : > { %v4879_v17 = vadd.f32 %v4878_v37, %v4848_v58 }
 0x6a4   : > { %v4880_v26 = vadd.f32 %v4879_v17, %v4849_v20 }
 0x6a6   : > { %v4881_v61 = vadd.f32 %v4880_v26, %v4850_v27 }
 0x6a8   : > { %v4882_v53 = vadd.f32 %v4881_v61, %v4851_v1 }
 0x6aa   : > { %v4883_v43 = vadd.f32 %v4882_v53, %v4852_v22 }
 0x6ac   : > { %v4884_v60 = vadd.f32 %v4883_v43, %v4853_v38 }
 0x6ae   : > { %v4885_v56 = vadd.f32 %v4884_v60, %v4854_v57 }
 0x6b0   : > { %v4886_v24 = vadd.f32 %v4885_v56, %v4855_v11 }
 0x6b2   : > { %v4887_v25 = vadd.f32 %v4886_v24, %v4856_v5 }
 0x6b4   : > { %v4888_v28 = vrot.slane %v4887_v25, 4 }
 0x6b6   : > { %v4889_v31 = vadd.f32 %v4888_v28, %v4887_v25 }
 0x6b8   : > { %v4890_v55 = vrot.slane %v4889_v31, 2 }
 0x6ba   : > { %v4891_v21 = vadd.f32 %v4890_v55, %v4889_v31  ;;  %4897 = sbr.rel (%p5448_p11) target bundleno = 1730 (0x6c2), region = 52 }
 0x6bc   : > { %v4892_v45 = vrot.slane %v4891_v21, 1 }
 0x6be   : > { %v4893_v3 = vadd.f32 %v4892_v45, %v4891_v21 }
 0x6bf   : > { %4898 = vst [vmem:[#allocation4] sm:$0x1] %v7576_v39  ;;  %v5624_v13 = vmov 0.0  }
 0x6c0   : > { %4899 = vst [vmem:[#allocation5] sm:$0x1] %v4893_v3 }
 0x6c1   : > { %4900 = vst [vmem:[#allocation8] sm:$0x3] %v5624_v13 }
 0x6c2 PF: > { %p5449_p12 = scmp.le.s32.totalorder %s5695_s9, 0 }
 0x6c3   : > { %s4905_s19 = scvt.s32.f32 (!%p5449_p12), %s5695_s9 }
 0x6c4   : > { %4904 = sbr.rel (%p5449_p12) target bundleno = 1814 (0x716), region = 56 }
 0x6c5   : > { %s4906_s20 = smul.f32 (!%p5449_p12), 256.0, %s4905_s19 }
 0x6c7   : > { %s4907_s10 = sadd.f32 (!%p5449_p12), 256.0, %s4906_s20  ;;  %s4934_s21 = smul.f32 (!%p5449_p12), 256.0, %s4906_s20 }
 0x6c9   : > { %v4910_v34 = vstv %s4907_s10  ;;  %v4908_v52 = vld [vmem:[#allocation4] sm:$0x1]  ;;  %v4931_v54 = vld [vmem:[#allocation5] sm:$0x1] }
 0x6ca   : > { %5520 = vrcp.f32 %v4910_v34  ;;  %v4922_v35 = vand.u32 2147483648, %v4910_v34  ;;  %vm4916_vm5 = vweird.f32 %v4910_v34  ;;  %v4920_v49 = vand.u32 2147483647, %v4910_v34 }
 0x6cb   : > { %v4909_v18 = vsub.f32 %v7576_v39, %v4908_v52  ;;  %v4932_v42 = vadd.f32 %v4931_v54, %v4893_v3 }
 0x6cc   : > { %v4923_v7 = vor.u32 1.1754944e-38, %v4922_v35  ;;  %vm4921_vm8 = vcmp.eq.f32.partialorder %v4920_v49, 8.507059e+37 }
 0x6cd   : > { %v4933_v40 = vmul.f32 %v4909_v18, %v4909_v18 }
 0x6d0   : > { %v5521_v50 = vpop.eup %5520 }
 0x6d1   : > { %v4912_v19 = vmul.f32 %v5521_v50, %v4910_v34  ;;  %vm4917_vm6 = vweird.f32 %v5521_v50 }
 0x6d2   : > { %vm4918_vm7 = vmor %vm4916_vm5, %vm4917_vm6 }
 0x6d3   : > { %v4913_v32 = vsub.f32 1.0, %v4912_v19 }
 0x6d5   : > { %v4914_v59 = vmul.f32 %v5521_v50, %v4913_v32 }
 0x6d7   : > { %v4915_v41 = vadd.f32 %v5521_v50, %v4914_v59 }
 0x6d9   : > { %v4919_v29 = vsel %vm4918_vm7, %v5521_v50, %v4915_v41 }
 0x6da   : > { %v4924_v14 = vsel %vm4921_vm8, %v4923_v7, %v4919_v29 }
 0x6db   : > { %5464 = vpush %v4924_v14 }
 0x70c   : > { %s5465_s22 = spop %5464 }
 0x70d   : > { %s4926_s23 = smul.f32 256.0, %s5465_s22 }
 0x70e   : > { %s4951_s24 = smul.f32 %s5465_s22, %s4934_s21 }
 0x70f   : > { %v4927_v15 = vstv %s4926_s23 }
 0x710   : > { %v4928_v8 = vmul.f32 %v4927_v15, %v4909_v18  ;;  %v4952_v63 = vstv %s4951_s24 }
 0x711   : > { %v4953_v4 = vmul.f32 %v4952_v63, %v4933_v40 }
 0x712   : > { %v4929_v16 = vadd.f32 %v4928_v8, %v4908_v52 }
 0x713   : > { %v4954_v51 = vadd.f32 %v4953_v4, %v4932_v42 }
 0x714   : > { %4930 = vst [vmem:[#allocation4] sm:$0x1] %v4929_v16 }
 0x715   : > { %4955 = vst [vmem:[#allocation5] sm:$0x1] %v4954_v51 }
 0x716 PF: > { %p5450_p13 = scmp.ne.s32.totalorder %s5695_s9, 1 }
 0x718   : > { %4959 = sbr.rel (%p5450_p13) target bundleno = 1869 (0x74d), region = 60 }
 0x71d   : > { %v5625_v39 = vmov 512.0   ;;  %v4960_v62 = vld [vmem:[#allocation5] sm:$0x1]  ;;  %v4970_v58 = vld [vmem:[%s7721_s5] sm:$0x1] }
 0x71e   : > { %5522 = vrcp.f32 %v5625_v39  ;;  %v4984_v17 = vld [vmem:[#allocation4] sm:$0x1] }
 0x71f   : > { %v4983_v26 = vld [vmem:[%s7722_s6] sm:$0x1] }
 0x724   : > { %v5523_v46 = vpop.eup %5522 }
 0x725   : > { %v4962_v30 = vmul.f32 512.0, %v5523_v46  ;;  %vm4966_vm9 = vweird.f32 %v5523_v46 }
 0x727   : > { %v4963_v12 = vsub.f32 1.0, %v4962_v30 }
 0x729   : > { %v4964_v36 = vmul.f32 %v5523_v46, %v4963_v12 }
 0x72b   : > { %v4965_v33 = vadd.f32 %v5523_v46, %v4964_v36 }
 0x72d   : > { %v4967_v6 = vsel %vm4966_vm9, %v5523_v46, %v4965_v33 }
 0x72e   : > { %v4968_v47 = vmul.f32 %v4967_v6, %v4960_v62 }
 0x730   : > { %v4969_v0 = vmax.f32 %v4968_v47, 0.0 }
 0x732   : > { %v4971_v44 = vadd.f32 1e-05, %v4969_v0 }
 0x734   : > { %5524 = vrsqrt.f32 %v4971_v44  ;;  %vm4978_vm10 = vweird.f32 %v4971_v44 }
 0x73a   : > { %v5525_v2 = vpop.eup %5524 }
 0x73b   : > { %v4973_v48 = vmul.f32 %v5525_v2, %v4971_v44  ;;  %vm4979_vm11 = vweird.f32 %v5525_v2 }
 0x73c   : > { %vm4980_vm12 = vmor %vm4978_vm10, %vm4979_vm11 }
 0x73d   : > { %v4974_v9 = vmul.f32 %v5525_v2, %v4973_v48 }
 0x73f   : > { %v4975_v23 = vmul.f32 0.5, %v4974_v9 }
 0x741   : > { %v4976_v10 = vsub.f32 1.5, %v4975_v23 }
 0x743   : > { %v4977_v37 = vmul.f32 %v5525_v2, %v4976_v10 }
 0x745   : > { %v4981_v20 = vsel %vm4980_vm12, %v5525_v2, %v4977_v37 }
 0x746   : > { %v4982_v27 = vmul.f32 %v4981_v20, %v4970_v58 }
 0x748   : > { %4987 = vst [vmem:[#allocation8] sm:$0x1] %v4982_v27  ;;  %v4985_v1 = vmul.f32 %v4984_v17, %v4982_v27 }
 0x74a   : > { %v4986_v61 = vsub.f32 %v4983_v26, %v4985_v1 }
 0x74c   : > { %4988 = vst [vmem:[#allocation8 + $0x1] sm:$0x1] %v4986_v61 }
 0x74d PF: > { %s5460_s19 = sshll.u32 %s5695_s9, 8  ;;  %s5002_s22 = sshll.u32 %s7364_s18, 4  ;;  %s5003_s22 = int_to_ptr.vmem [resolvable:$true] %s5002_s22 }
 0x74e   : > { %s5001_s21 = scalar_lea.hbm %s7723_s7, %s5460_s19  ;;  %s4990_s24 = scalar_lea.sflag [#allocation7], %s308_s13 }
 0x74f   : > { %s5004_s23 = sshll.u32 %s5001_s21, 4  ;;  %s5546_s0 = scalar_lea.hbm %s7723_s7, 512  ;;  %s5005_s23 = int_to_ptr.hbm [resolvable:$true] %s5004_s23 }
 0x750   : > { %s5540_s25 = sshra.s32 %s5005_s23, 4  ;;  %s5541_s25 = int_to_ptr.hbm [resolvable:$true] %s5540_s25 }
 0x751   : > { %s5542_s26 = scalar_lea.hbm %s5541_s25, 256  ;;  %p5547_p4 = scmp.lt.s32.totalorder %s5541_s25, %s7723_s7 }
 0x752   : > { %p5543_p0 = scmp.ne.s32.totalorder %s5541_s25, %s5542_s26  ;;  %p5548_p7 = scmp.lt.s32.totalorder %s5546_s0, %s5542_s26 }
 0x754   : > { %p5544_p1 = pnand %p5543_p0, %p5714_p5  ;;  %p5549_p8 = por %p5548_p7, %p5547_p4 }
 0x756   : > { %p5545_p3 = pneg %p5544_p1 }
 0x758   : > { %p5550_p9 = pnand %p5549_p8, %p5545_p3 }
 0x75a   : > { %5553 = shalt.err (!%p5550_p9)
}
 0x75b   : > { %s5626_s13 = smov 128   ;;  %s5627_s18 = smov 8  }
 0x75c   : > { %5466 = dma.vmem_to_hbm [thread:$0]  (%p5714_p5), %s5003_s22, 4096, %s5005_s23, %s4990_s24, %s5626_s13, %s5626_s13, %s5627_s18  }
 0x75d   : > { %s5628_s19 = smov [#allocation8]   ;;  %s5019_s17 = sshll.u32 %s7724_s8, 4  ;;  %s5020_s17 = int_to_ptr.hbm [resolvable:$true] %s5019_s17 }
 0x75e   : > { %s5017_s10 = sshll.u32 %s5628_s19, 4  ;;  %s5018_s10 = int_to_ptr.vmem [resolvable:$true] %s5017_s10 }
 0x75f   : > { %5468 = dma.vmem_to_hbm [thread:$0]  (%p198_p2), %s5018_s10, 32, %s5020_s17, [#allocation9]  }
 0x760   : > { %5599 = dma.done.wait (%p198_p2), [#allocation9], 32  }
 0x761   : > { %5601 = vsyncadd (%p198_p2), [#allocation9], 4294967264 }
 0x762 PF: > { %p5478_p5 = scmp.ge.s32.totalorder %s5620_s30, 2  ;;  %s5036_s0 = sand.u32 1, %s5608_s27  }
 0x763   : > { %s5037_s1 = scalar_lea.sflag [#allocation7], %s5036_s0 }
 0x764   : > { %p5473_p10 = pnand %p5478_p5, %p5718_p6 }
 0x766   : > { %p5474_p11 = pneg %p5473_p10 }
 0x768   : > { %5603 = dma.done.wait (%p5474_p11), %s5037_s1, 4096  }
 0x769   : > { %5605 = vsyncadd (%p5474_p11), %s5037_s1, 4294963200  ;;  %p20_p12 = scmp.ge.s32.totalorder %s5699_s11, 4   ;;  %s7731_s27 = smov %s5612_s28 }
 0x76a   : > { %s7732_s28 = smov %s5616_s29  ;;  %s7733_s29 = smov %s5710_s14 }
 0x76b   : > { %s7734_s30 = smov %s5699_s11  ;;  %22 = sbr.rel (!%p20_p12) target bundleno = 7 (0x7), region = 126 }
 0x770   :  { %5043 = vsyncpa [#allocation7], 1 }
 0x771   :  { %5045 = vsyncpa [#allocation7 + $0x1], 1 }
 0x772   :  { %5046 = vsyncpa [#allocation9], 1 }

</bundles_post_ra>
